<compile_context>
chip_gen: v5e
topology: v5e:2x2
jax: 0.10.0
libtpu: 0.0.40
codegen_flags: <defaults>
</compile_context>

<pallas_src>
import math
from functools import partial

import numpy as np
import jax
import jax.numpy as jnp
from jax.experimental import pallas as pl
from jax.experimental.pallas import tpu as pltpu

LANE = 128  # pad the final-FC output to a lane-dense 128-column store


# ----------------------------------------------------------------------------
# Fused Pallas kernel: 4 bi-LSTM layers + final Linear, all in VMEM.
# ----------------------------------------------------------------------------
def fused_bilstm_kernel(x_ref, wih_ref, whh_ref, b_ref, fcw_ref, fcb_ref, o_ref,
                        *, seq_len, batch, hidden, num_layers):
    T, B, H, L = seq_len, batch, hidden, num_layers
    H4 = 4 * H

    def cell(g, c, first):
        # g: (B, 4H) pre-activations in PyTorch gate order (i, f, g, o).
        # The i/f/o columns were pre-scaled by 0.5 when packing the weights, so
        # sigmoid(x) == 0.5 * tanh(g_col) + 0.5  -> one EUP tanh covers all four gates.
        t = jnp.tanh(g)
        i = 0.5 * t[:, 0:H] + 0.5
        f = 0.5 * t[:, H:2 * H] + 0.5
        gg = t[:, 2 * H:3 * H]
        o = 0.5 * t[:, 3 * H:4 * H] + 0.5
        c_new = i * gg if first else f * c + i * gg
        h_new = o * jnp.tanh(c_new)
        return h_new, c_new

    act = x_ref[...]                                        # (T*B, 2H), time-major rows

    for l in range(L):
        # Hoisted input projection for both directions over the whole sequence,
        # bias folded in: one (T*B, 2H) @ (2H, 8H) matmul per layer.
        gx = jnp.dot(act, wih_ref[l], preferred_element_type=jnp.float32) + b_ref[l]
        whh = whh_ref[l]                                    # (2H, 8H) block-diag [fwd|bwd]

        h = None                                            # (B, 2H) = [h_fwd | h_bwd]
        c_f = c_b = None
        out_f = [None] * T
        out_b = [None] * T

        # Fully unrolled recurrence: h/c stay in vregs; one 128-lane MXU matmul per
        # step drives both directions (forward reads time s, backward reads T-1-s).
        for s in range(T):
            tb = T - 1 - s
            if s == 0:
                g_f = gx[s * B:(s + 1) * B, 0:H4]
                g_b = gx[tb * B:(tb + 1) * B, H4:2 * H4]
            else:
                m = jnp.dot(h, whh, preferred_element_type=jnp.float32)  # (B, 8H)
                g_f = gx[s * B:(s + 1) * B, 0:H4] + m[:, 0:H4]
                g_b = gx[tb * B:(tb + 1) * B, H4:2 * H4] + m[:, H4:2 * H4]

            h_f, c_f = cell(g_f, c_f, s == 0)
            h_b, c_b = cell(g_b, c_b, s == 0)
            out_f[s] = h_f
            out_b[tb] = h_b
            if s + 1 < T:
                h = jnp.concatenate([h_f, h_b], axis=1)

        # Next layer's input: (T*B, 2H) with [forward | backward] columns, kept in VMEM.
        act = jnp.concatenate(
            [jnp.concatenate(out_f, axis=0), jnp.concatenate(out_b, axis=0)],
            axis=1)

    # Fused final Linear; output lane-padded to 128 columns (lane-dense HBM store).
    # TODO(synk): on v7x the two directions could be pinned to the 2 TensorCores via
    # pl.core_map; layers are serial and shapes tiny, so a single core is kept here.
    o_ref[...] = (jnp.dot(act, fcw_ref[...], preferred_element_type=jnp.float32)
                  + fcb_ref[...])


# ----------------------------------------------------------------------------
# Parameters: raw PyTorch-layout init + packing into the fused-kernel layout.
# ----------------------------------------------------------------------------
def init_raw_params(key, input_size, hidden_size, num_layers, out_dim):
    """PyTorch-layout parameters: U(-1/sqrt(H), 1/sqrt(H)) like nn.LSTM / nn.Linear."""
    H = hidden_size
    bound = 1.0 / math.sqrt(H)
    layers = []
    for l in range(num_layers):
        in_size = input_size if l == 0 else 2 * H
        dirs = []
        for _d in range(2):
            key, k1, k2, k3, k4 = jax.random.split(key, 5)
            w_ih = jax.random.uniform(k1, (4 * H, in_size), jnp.float32, -bound, bound)
            w_hh = jax.random.uniform(k2, (4 * H, H), jnp.float32, -bound, bound)
            b_ih = jax.random.uniform(k3, (4 * H,), jnp.float32, -bound, bound)
            b_hh = jax.random.uniform(k4, (4 * H,), jnp.float32, -bound, bound)
            dirs.append((w_ih, w_hh, b_ih, b_hh))
        layers.append(dirs)
    fc_bound = 1.0 / math.sqrt(2 * H)
    key, kf1, kf2 = jax.random.split(key, 3)
    fc_w = jax.random.uniform(kf1, (out_dim, 2 * H), jnp.float32, -fc_bound, fc_bound)
    fc_b = jax.random.uniform(kf2, (out_dim,), jnp.float32, -fc_bound, fc_bound)
    return {"lstm": layers, "fc_w": fc_w, "fc_b": fc_b}


def pack_params(raw, hidden_size):
    """Pack PyTorch-layout weights into the fused-kernel layout.

    Per layer: wih (2H, 8H) = [fwd | bwd] input->gate weights (layer-0 rows zero-padded
    from in=1 to 2H), whh (2H, 8H) block-diagonal recurrent weights, b (1, 8H) combined
    bias.  Gate column order is (i, f, g, o); sigmoid-gate columns (i, f, o) carry a 0.5
    pre-scale so the kernel can use sigmoid(x) = 0.5*tanh(0.5*x) + 0.5 with a single tanh.
    """
    H = hidden_size
    col_scale = np.concatenate([np.full(2 * H, 0.5), np.ones(H), np.full(H, 0.5)])
    col_scale = jnp.asarray(col_scale, jnp.float32)[None, :]           # (1, 4H)

    wih_l, whh_l, b_l = [], [], []
    for layer in raw["lstm"]:
        wih_d, whh_d, b_d = [], [], []
        for (w_ih, w_hh, b_ih, b_hh) in layer:
            in_size = w_ih.shape[1]
            wih = w_ih.T * col_scale                                   # (in, 4H)
            if in_size < 2 * H:                                        # pad layer-0 rows
                wih = jnp.pad(wih, ((0, 2 * H - in_size), (0, 0)))
            whh = w_hh.T * col_scale                                   # (H, 4H)
            b = (b_ih + b_hh)[None, :] * col_scale                     # (1, 4H)
            wih_d.append(wih)
            whh_d.append(whh)
            b_d.append(b)
        wih_l.append(jnp.concatenate(wih_d, axis=1))                   # (2H, 8H)
        z = jnp.zeros((H, 4 * H), jnp.float32)
        whh_l.append(jnp.concatenate([                                 # block-diagonal
            jnp.concatenate([whh_d[0], z], axis=1),
            jnp.concatenate([z, whh_d[1]], axis=1)], axis=0))          # (2H, 8H)
        b_l.append(jnp.concatenate(b_d, axis=1))                       # (1, 8H)

    out_dim = raw["fc_w"].shape[0]
    fc_w = jnp.zeros((2 * H, LANE), jnp.float32).at[:, :out_dim].set(raw["fc_w"].T)
    fc_b = jnp.zeros((1, LANE), jnp.float32).at[0, :out_dim].set(raw["fc_b"])
    return {"wih": jnp.stack(wih_l), "whh": jnp.stack(whh_l), "b": jnp.stack(b_l),
            "fc_w": fc_w, "fc_b": fc_b}


# ----------------------------------------------------------------------------
# Wrapper: one pallas_call for the whole forward pass.
# ----------------------------------------------------------------------------
def bilstm_forward(x, packed, *, out_dim):
    """x: (B, T, F) batch-first, like the PyTorch module. Returns (B, T, out_dim)."""
    B, T, F = x.shape
    L, two_h, _ = packed["wih"].shape
    H = two_h // 2

    # Pad features to 2H (layer-0 W_ih rows are zero-padded to match) and flatten to
    # time-major (T*B, 2H) rows.
    xp = jnp.zeros((B, T, 2 * H), jnp.float32).at[:, :, :F].set(x.astype(jnp.float32))
    x_flat = jnp.transpose(xp, (1, 0, 2)).reshape(T * B, 2 * H)

    kern = partial(fused_bilstm_kernel, seq_len=T, batch=B, hidden=H, num_layers=L)
    out_pad = pl.pallas_call(
        kern,
        out_shape=jax.ShapeDtypeStruct((T * B, LANE), jnp.float32),
        in_specs=[pl.BlockSpec(memory_space=pltpu.MemorySpace.VMEM)] * 6,
        out_specs=pl.BlockSpec(memory_space=pltpu.MemorySpace.VMEM),
    )(x_flat, packed["wih"], packed["whh"], packed["b"], packed["fc_w"], packed["fc_b"])

    out = out_pad[:, :out_dim].reshape(T, B, out_dim)
    return jnp.transpose(out, (1, 0, 2))


# ----------------------------------------------------------------------------
# Pure-JAX reference with PyTorch nn.LSTM semantics (standard sigmoid, raw weights).
# ----------------------------------------------------------------------------
def ref_forward(x, raw):
    B, T, _ = x.shape
    inp = x.astype(jnp.float32)                         # (B, T, F)
    for layer in raw["lstm"]:
        outs = []
        for d, (w_ih, w_hh, b_ih, b_hh) in enumerate(layer):
            H = w_hh.shape[1]
            seq = inp if d == 0 else inp[:, ::-1]
            h = jnp.zeros((B, H), jnp.float32)
            c = jnp.zeros((B, H), jnp.float32)
            ys = []
            for t in range(T):
                g = seq[:, t] @ w_ih.T + h @ w_hh.T + b_ih + b_hh
                i = jax.nn.sigmoid(g[:, 0:H])
                f = jax.nn.sigmoid(g[:, H:2 * H])
                gg = jnp.tanh(g[:, 2 * H:3 * H])
                o = jax.nn.sigmoid(g[:, 3 * H:4 * H])
                c = f * c + i * gg
                h = o * jnp.tanh(c)
                ys.append(h)
            y = jnp.stack(ys, axis=1)                   # (B, T, H)
            if d == 1:
                y = y[:, ::-1]
            outs.append(y)
        inp = jnp.concatenate(outs, axis=-1)            # (B, T, 2H)
    return inp @ raw["fc_w"].T + raw["fc_b"]


# ----------------------------------------------------------------------------
if __name__ == "__main__":
    # Module hyperparameters implied by the PyTorch script (num = 0):
    num_country = 0
    input_size = num_country + 1     # 1
    hidden_size = 16
    num_layers = 4
    out_dim = num_country + 1        # 1

    batch, seq_len = 2, 8

    key = jax.random.PRNGKey(0)
    key, kx, kp = jax.random.split(key, 3)
    x = jax.random.normal(kx, (batch, seq_len, input_size), jnp.float32)

    raw = init_raw_params(kp, input_size, hidden_size, num_layers, out_dim)
    packed = pack_params(raw, hidden_size)

    fwd = jax.jit(partial(bilstm_forward, out_dim=out_dim))
    out = jax.block_until_ready(fwd(x, packed))

    ref = jax.block_until_ready(ref_forward(x, raw))
    assert out.shape == (batch, seq_len, out_dim), out.shape
    np.testing.assert_allclose(np.asarray(out), np.asarray(ref), atol=1e-4, rtol=1e-4)

    print("KERNEL_OK")
</pallas_src>

<mosaic_0001>
module attributes {stable_mosaic.version = 11 : i64} {
  func.func @fused_bilstm_kernel(%arg0: memref<16x32xf32, #tpu.memory_space<vmem>>, %arg1: memref<4x32x128xf32, #tpu.memory_space<vmem>>, %arg2: memref<4x32x128xf32, #tpu.memory_space<vmem>>, %arg3: memref<4x1x128xf32, #tpu.memory_space<vmem>>, %arg4: memref<32x128xf32, #tpu.memory_space<vmem>>, %arg5: memref<1x128xf32, #tpu.memory_space<vmem>>, %arg6: memref<16x128xf32, #tpu.memory_space<vmem>>) attributes {dimension_semantics = [], scalar_prefetch = 0 : i64, scratch_operands = 0 : i64, tpu.core_type = #tpu.core_type<tc>} {
    %c0 = arith.constant 0 : index
    %c0_0 = arith.constant 0 : index
    %0 = vector.load %arg0[%c0, %c0_0] : memref<16x32xf32, #tpu.memory_space<vmem>>, vector<16x32xf32>
    %c0_1 = arith.constant 0 : index
    %c0_2 = arith.constant 0 : index
    %c0_3 = arith.constant 0 : index
    %1 = vector.load %arg1[%c0_1, %c0_2, %c0_3] : memref<4x32x128xf32, #tpu.memory_space<vmem>>, vector<1x32x128xf32>
    %2 = vector.shape_cast %1 : vector<1x32x128xf32> to vector<32x128xf32>
    %cst = arith.constant dense<0.000000e+00> : vector<16x128xf32>
    %3 = tpu.matmul %0, %2, %cst {dimension_numbers = #tpu.dot_dimension_numbers<[1], [0], [0], [1], [0, 0, 1, 1], [], []>} : vector<16x32xf32>, vector<32x128xf32>, vector<16x128xf32> -> vector<16x128xf32>
    %c0_4 = arith.constant 0 : index
    %c0_5 = arith.constant 0 : index
    %c0_6 = arith.constant 0 : index
    %4 = vector.load %arg3[%c0_4, %c0_5, %c0_6] : memref<4x1x128xf32, #tpu.memory_space<vmem>>, vector<1x1x128xf32>
    %5 = vector.shape_cast %4 : vector<1x1x128xf32> to vector<1x128xf32>
    %6 = vector.broadcast %5 : vector<1x128xf32> to vector<16x128xf32>
    %7 = arith.addf %3, %6 : vector<16x128xf32>
    %c0_7 = arith.constant 0 : index
    %c0_8 = arith.constant 0 : index
    %c0_9 = arith.constant 0 : index
    %8 = vector.load %arg2[%c0_7, %c0_8, %c0_9] : memref<4x32x128xf32, #tpu.memory_space<vmem>>, vector<1x32x128xf32>
    %9 = vector.shape_cast %8 : vector<1x32x128xf32> to vector<32x128xf32>
    %10 = vector.extract_strided_slice %7 {offsets = [0, 0], sizes = [2, 64], strides = [1, 1]} : vector<16x128xf32> to vector<2x64xf32>
    %11 = vector.extract_strided_slice %7 {offsets = [14, 64], sizes = [2, 64], strides = [1, 1]} : vector<16x128xf32> to vector<2x64xf32>
    %12 = math.tanh %10 : vector<2x64xf32>
    %13 = vector.extract_strided_slice %12 {offsets = [0, 0], sizes = [2, 16], strides = [1, 1]} : vector<2x64xf32> to vector<2x16xf32>
    %cst_10 = arith.constant 5.000000e-01 : f32
    %14 = vector.broadcast %cst_10 : f32 to vector<2x16xf32>
    %15 = arith.mulf %14, %13 : vector<2x16xf32>
    %cst_11 = arith.constant 5.000000e-01 : f32
    %16 = vector.broadcast %cst_11 : f32 to vector<2x16xf32>
    %17 = arith.addf %15, %16 : vector<2x16xf32>
    %18 = vector.extract_strided_slice %12 {offsets = [0, 32], sizes = [2, 16], strides = [1, 1]} : vector<2x64xf32> to vector<2x16xf32>
    %19 = vector.extract_strided_slice %12 {offsets = [0, 48], sizes = [2, 16], strides = [1, 1]} : vector<2x64xf32> to vector<2x16xf32>
    %cst_12 = arith.constant 5.000000e-01 : f32
    %20 = vector.broadcast %cst_12 : f32 to vector<2x16xf32>
    %21 = arith.mulf %20, %19 : vector<2x16xf32>
    %cst_13 = arith.constant 5.000000e-01 : f32
    %22 = vector.broadcast %cst_13 : f32 to vector<2x16xf32>
    %23 = arith.addf %21, %22 : vector<2x16xf32>
    %24 = arith.mulf %17, %18 : vector<2x16xf32>
    %25 = math.tanh %24 : vector<2x16xf32>
    %26 = arith.mulf %23, %25 : vector<2x16xf32>
    %27 = math.tanh %11 : vector<2x64xf32>
    %28 = vector.extract_strided_slice %27 {offsets = [0, 0], sizes = [2, 16], strides = [1, 1]} : vector<2x64xf32> to vector<2x16xf32>
    %cst_14 = arith.constant 5.000000e-01 : f32
    %29 = vector.broadcast %cst_14 : f32 to vector<2x16xf32>
    %30 = arith.mulf %29, %28 : vector<2x16xf32>
    %cst_15 = arith.constant 5.000000e-01 : f32
    %31 = vector.broadcast %cst_15 : f32 to vector<2x16xf32>
    %32 = arith.addf %30, %31 : vector<2x16xf32>
    %33 = vector.extract_strided_slice %27 {offsets = [0, 32], sizes = [2, 16], strides = [1, 1]} : vector<2x64xf32> to vector<2x16xf32>
    %34 = vector.extract_strided_slice %27 {offsets = [0, 48], sizes = [2, 16], strides = [1, 1]} : vector<2x64xf32> to vector<2x16xf32>
    %cst_16 = arith.constant 5.000000e-01 : f32
    %35 = vector.broadcast %cst_16 : f32 to vector<2x16xf32>
    %36 = arith.mulf %35, %34 : vector<2x16xf32>
    %cst_17 = arith.constant 5.000000e-01 : f32
    %37 = vector.broadcast %cst_17 : f32 to vector<2x16xf32>
    %38 = arith.addf %36, %37 : vector<2x16xf32>
    %39 = arith.mulf %32, %33 : vector<2x16xf32>
    %40 = math.tanh %39 : vector<2x16xf32>
    %41 = arith.mulf %38, %40 : vector<2x16xf32>
    %42 = tpu.concatenate %26, %41 in 1 : vector<2x16xf32>, vector<2x16xf32> -> vector<2x32xf32>
    %cst_18 = arith.constant dense<0.000000e+00> : vector<2x128xf32>
    %43 = tpu.matmul %42, %9, %cst_18 {dimension_numbers = #tpu.dot_dimension_numbers<[1], [0], [0], [1], [0, 0, 1, 1], [], []>} : vector<2x32xf32>, vector<32x128xf32>, vector<2x128xf32> -> vector<2x128xf32>
    %44 = vector.extract_strided_slice %7 {offsets = [2, 0], sizes = [2, 64], strides = [1, 1]} : vector<16x128xf32> to vector<2x64xf32>
    %45 = vector.extract_strided_slice %43 {offsets = [0, 0], sizes = [2, 64], strides = [1, 1]} : vector<2x128xf32> to vector<2x64xf32>
    %46 = arith.addf %44, %45 : vector<2x64xf32>
    %47 = vector.extract_strided_slice %7 {offsets = [12, 64], sizes = [2, 64], strides = [1, 1]} : vector<16x128xf32> to vector<2x64xf32>
    %48 = vector.extract_strided_slice %43 {offsets = [0, 64], sizes = [2, 64], strides = [1, 1]} : vector<2x128xf32> to vector<2x64xf32>
    %49 = arith.addf %47, %48 : vector<2x64xf32>
    %50 = math.tanh %46 : vector<2x64xf32>
    %51 = vector.extract_strided_slice %50 {offsets = [0, 0], sizes = [2, 16], strides = [1, 1]} : vector<2x64xf32> to vector<2x16xf32>
    %cst_19 = arith.constant 5.000000e-01 : f32
    %52 = vector.broadcast %cst_19 : f32 to vector<2x16xf32>
    %53 = arith.mulf %52, %51 : vector<2x16xf32>
    %cst_20 = arith.constant 5.000000e-01 : f32
    %54 = vector.broadcast %cst_20 : f32 to vector<2x16xf32>
    %55 = arith.addf %53, %54 : vector<2x16xf32>
    %56 = vector.extract_strided_slice %50 {offsets = [0, 16], sizes = [2, 16], strides = [1, 1]} : vector<2x64xf32> to vector<2x16xf32>
    %cst_21 = arith.constant 5.000000e-01 : f32
    %57 = vector.broadcast %cst_21 : f32 to vector<2x16xf32>
    %58 = arith.mulf %57, %56 : vector<2x16xf32>
    %cst_22 = arith.constant 5.000000e-01 : f32
    %59 = vector.broadcast %cst_22 : f32 to vector<2x16xf32>
    %60 = arith.addf %58, %59 : vector<2x16xf32>
    %61 = vector.extract_strided_slice %50 {offsets = [0, 32], sizes = [2, 16], strides = [1, 1]} : vector<2x64xf32> to vector<2x16xf32>
    %62 = vector.extract_strided_slice %50 {offsets = [0, 48], sizes = [2, 16], strides = [1, 1]} : vector<2x64xf32> to vector<2x16xf32>
    %cst_23 = arith.constant 5.000000e-01 : f32
    %63 = vector.broadcast %cst_23 : f32 to vector<2x16xf32>
    %64 = arith.mulf %63, %62 : vector<2x16xf32>
    %cst_24 = arith.constant 5.000000e-01 : f32
    %65 = vector.broadcast %cst_24 : f32 to vector<2x16xf32>
    %66 = arith.addf %64, %65 : vector<2x16xf32>
    %67 = arith.mulf %60, %24 : vector<2x16xf32>
    %68 = arith.mulf %55, %61 : vector<2x16xf32>
    %69 = arith.addf %67, %68 : vector<2x16xf32>
    %70 = math.tanh %69 : vector<2x16xf32>
    %71 = arith.mulf %66, %70 : vector<2x16xf32>
    %72 = math.tanh %49 : vector<2x64xf32>
    %73 = vector.extract_strided_slice %72 {offsets = [0, 0], sizes = [2, 16], strides = [1, 1]} : vector<2x64xf32> to vector<2x16xf32>
    %cst_25 = arith.constant 5.000000e-01 : f32
    %74 = vector.broadcast %cst_25 : f32 to vector<2x16xf32>
    %75 = arith.mulf %74, %73 : vector<2x16xf32>
    %cst_26 = arith.constant 5.000000e-01 : f32
    %76 = vector.broadcast %cst_26 : f32 to vector<2x16xf32>
    %77 = arith.addf %75, %76 : vector<2x16xf32>
    %78 = vector.extract_strided_slice %72 {offsets = [0, 16], sizes = [2, 16], strides = [1, 1]} : vector<2x64xf32> to vector<2x16xf32>
    %cst_27 = arith.constant 5.000000e-01 : f32
    %79 = vector.broadcast %cst_27 : f32 to vector<2x16xf32>
    %80 = arith.mulf %79, %78 : vector<2x16xf32>
    %cst_28 = arith.constant 5.000000e-01 : f32
    %81 = vector.broadcast %cst_28 : f32 to vector<2x16xf32>
    %82 = arith.addf %80, %81 : vector<2x16xf32>
    %83 = vector.extract_strided_slice %72 {offsets = [0, 32], sizes = [2, 16], strides = [1, 1]} : vector<2x64xf32> to vector<2x16xf32>
    %84 = vector.extract_strided_slice %72 {offsets = [0, 48], sizes = [2, 16], strides = [1, 1]} : vector<2x64xf32> to vector<2x16xf32>
    %cst_29 = arith.constant 5.000000e-01 : f32
    %85 = vector.broadcast %cst_29 : f32 to vector<2x16xf32>
    %86 = arith.mulf %85, %84 : vector<2x16xf32>
    %cst_30 = arith.constant 5.000000e-01 : f32
    %87 = vector.broadcast %cst_30 : f32 to vector<2x16xf32>
    %88 = arith.addf %86, %87 : vector<2x16xf32>
    %89 = arith.mulf %82, %39 : vector<2x16xf32>
    %90 = arith.mulf %77, %83 : vector<2x16xf32>
    %91 = arith.addf %89, %90 : vector<2x16xf32>
    %92 = math.tanh %91 : vector<2x16xf32>
    %93 = arith.mulf %88, %92 : vector<2x16xf32>
    %94 = tpu.concatenate %71, %93 in 1 : vector<2x16xf32>, vector<2x16xf32> -> vector<2x32xf32>
    %cst_31 = arith.constant dense<0.000000e+00> : vector<2x128xf32>
    %95 = tpu.matmul %94, %9, %cst_31 {dimension_numbers = #tpu.dot_dimension_numbers<[1], [0], [0], [1], [0, 0, 1, 1], [], []>} : vector<2x32xf32>, vector<32x128xf32>, vector<2x128xf32> -> vector<2x128xf32>
    %96 = vector.extract_strided_slice %7 {offsets = [4, 0], sizes = [2, 64], strides = [1, 1]} : vector<16x128xf32> to vector<2x64xf32>
    %97 = vector.extract_strided_slice %95 {offsets = [0, 0], sizes = [2, 64], strides = [1, 1]} : vector<2x128xf32> to vector<2x64xf32>
    %98 = arith.addf %96, %97 : vector<2x64xf32>
    %99 = vector.extract_strided_slice %7 {offsets = [10, 64], sizes = [2, 64], strides = [1, 1]} : vector<16x128xf32> to vector<2x64xf32>
    %100 = vector.extract_strided_slice %95 {offsets = [0, 64], sizes = [2, 64], strides = [1, 1]} : vector<2x128xf32> to vector<2x64xf32>
    %101 = arith.addf %99, %100 : vector<2x64xf32>
    %102 = math.tanh %98 : vector<2x64xf32>
    %103 = vector.extract_strided_slice %102 {offsets = [0, 0], sizes = [2, 16], strides = [1, 1]} : vector<2x64xf32> to vector<2x16xf32>
    %cst_32 = arith.constant 5.000000e-01 : f32
    %104 = vector.broadcast %cst_32 : f32 to vector<2x16xf32>
    %105 = arith.mulf %104, %103 : vector<2x16xf32>
    %cst_33 = arith.constant 5.000000e-01 : f32
    %106 = vector.broadcast %cst_33 : f32 to vector<2x16xf32>
    %107 = arith.addf %105, %106 : vector<2x16xf32>
    %108 = vector.extract_strided_slice %102 {offsets = [0, 16], sizes = [2, 16], strides = [1, 1]} : vector<2x64xf32> to vector<2x16xf32>
    %cst_34 = arith.constant 5.000000e-01 : f32
    %109 = vector.broadcast %cst_34 : f32 to vector<2x16xf32>
    %110 = arith.mulf %109, %108 : vector<2x16xf32>
    %cst_35 = arith.constant 5.000000e-01 : f32
    %111 = vector.broadcast %cst_35 : f32 to vector<2x16xf32>
    %112 = arith.addf %110, %111 : vector<2x16xf32>
    %113 = vector.extract_strided_slice %102 {offsets = [0, 32], sizes = [2, 16], strides = [1, 1]} : vector<2x64xf32> to vector<2x16xf32>
    %114 = vector.extract_strided_slice %102 {offsets = [0, 48], sizes = [2, 16], strides = [1, 1]} : vector<2x64xf32> to vector<2x16xf32>
    %cst_36 = arith.constant 5.000000e-01 : f32
    %115 = vector.broadcast %cst_36 : f32 to vector<2x16xf32>
    %116 = arith.mulf %115, %114 : vector<2x16xf32>
    %cst_37 = arith.constant 5.000000e-01 : f32
    %117 = vector.broadcast %cst_37 : f32 to vector<2x16xf32>
    %118 = arith.addf %116, %117 : vector<2x16xf32>
    %119 = arith.mulf %112, %69 : vector<2x16xf32>
    %120 = arith.mulf %107, %113 : vector<2x16xf32>
    %121 = arith.addf %119, %120 : vector<2x16xf32>
    %122 = math.tanh %121 : vector<2x16xf32>
    %123 = arith.mulf %118, %122 : vector<2x16xf32>
    %124 = math.tanh %101 : vector<2x64xf32>
    %125 = vector.extract_strided_slice %124 {offsets = [0, 0], sizes = [2, 16], strides = [1, 1]} : vector<2x64xf32> to vector<2x16xf32>
    %cst_38 = arith.constant 5.000000e-01 : f32
    %126 = vector.broadcast %cst_38 : f32 to vector<2x16xf32>
    %127 = arith.mulf %126, %125 : vector<2x16xf32>
    %cst_39 = arith.constant 5.000000e-01 : f32
    %128 = vector.broadcast %cst_39 : f32 to vector<2x16xf32>
    %129 = arith.addf %127, %128 : vector<2x16xf32>
    %130 = vector.extract_strided_slice %124 {offsets = [0, 16], sizes = [2, 16], strides = [1, 1]} : vector<2x64xf32> to vector<2x16xf32>
    %cst_40 = arith.constant 5.000000e-01 : f32
    %131 = vector.broadcast %cst_40 : f32 to vector<2x16xf32>
    %132 = arith.mulf %131, %130 : vector<2x16xf32>
    %cst_41 = arith.constant 5.000000e-01 : f32
    %133 = vector.broadcast %cst_41 : f32 to vector<2x16xf32>
    %134 = arith.addf %132, %133 : vector<2x16xf32>
    %135 = vector.extract_strided_slice %124 {offsets = [0, 32], sizes = [2, 16], strides = [1, 1]} : vector<2x64xf32> to vector<2x16xf32>
    %136 = vector.extract_strided_slice %124 {offsets = [0, 48], sizes = [2, 16], strides = [1, 1]} : vector<2x64xf32> to vector<2x16xf32>
    %cst_42 = arith.constant 5.000000e-01 : f32
    %137 = vector.broadcast %cst_42 : f32 to vector<2x16xf32>
    %138 = arith.mulf %137, %136 : vector<2x16xf32>
    %cst_43 = arith.constant 5.000000e-01 : f32
    %139 = vector.broadcast %cst_43 : f32 to vector<2x16xf32>
    %140 = arith.addf %138, %139 : vector<2x16xf32>
    %141 = arith.mulf %134, %91 : vector<2x16xf32>
    %142 = arith.mulf %129, %135 : vector<2x16xf32>
    %143 = arith.addf %141, %142 : vector<2x16xf32>
    %144 = math.tanh %143 : vector<2x16xf32>
    %145 = arith.mulf %140, %144 : vector<2x16xf32>
    %146 = tpu.concatenate %123, %145 in 1 : vector<2x16xf32>, vector<2x16xf32> -> vector<2x32xf32>
    %cst_44 = arith.constant dense<0.000000e+00> : vector<2x128xf32>
    %147 = tpu.matmul %146, %9, %cst_44 {dimension_numbers = #tpu.dot_dimension_numbers<[1], [0], [0], [1], [0, 0, 1, 1], [], []>} : vector<2x32xf32>, vector<32x128xf32>, vector<2x128xf32> -> vector<2x128xf32>
    %148 = vector.extract_strided_slice %7 {offsets = [6, 0], sizes = [2, 64], strides = [1, 1]} : vector<16x128xf32> to vector<2x64xf32>
    %149 = vector.extract_strided_slice %147 {offsets = [0, 0], sizes = [2, 64], strides = [1, 1]} : vector<2x128xf32> to vector<2x64xf32>
    %150 = arith.addf %148, %149 : vector<2x64xf32>
    %151 = vector.extract_strided_slice %7 {offsets = [8, 64], sizes = [2, 64], strides = [1, 1]} : vector<16x128xf32> to vector<2x64xf32>
    %152 = vector.extract_strided_slice %147 {offsets = [0, 64], sizes = [2, 64], strides = [1, 1]} : vector<2x128xf32> to vector<2x64xf32>
    %153 = arith.addf %151, %152 : vector<2x64xf32>
    %154 = math.tanh %150 : vector<2x64xf32>
    %155 = vector.extract_strided_slice %154 {offsets = [0, 0], sizes = [2, 16], strides = [1, 1]} : vector<2x64xf32> to vector<2x16xf32>
    %cst_45 = arith.constant 5.000000e-01 : f32
    %156 = vector.broadcast %cst_45 : f32 to vector<2x16xf32>
    %157 = arith.mulf %156, %155 : vector<2x16xf32>
    %cst_46 = arith.constant 5.000000e-01 : f32
    %158 = vector.broadcast %cst_46 : f32 to vector<2x16xf32>
    %159 = arith.addf %157, %158 : vector<2x16xf32>
    %160 = vector.extract_strided_slice %154 {offsets = [0, 16], sizes = [2, 16], strides = [1, 1]} : vector<2x64xf32> to vector<2x16xf32>
    %cst_47 = arith.constant 5.000000e-01 : f32
    %161 = vector.broadcast %cst_47 : f32 to vector<2x16xf32>
    %162 = arith.mulf %161, %160 : vector<2x16xf32>
    %cst_48 = arith.constant 5.000000e-01 : f32
    %163 = vector.broadcast %cst_48 : f32 to vector<2x16xf32>
    %164 = arith.addf %162, %163 : vector<2x16xf32>
    %165 = vector.extract_strided_slice %154 {offsets = [0, 32], sizes = [2, 16], strides = [1, 1]} : vector<2x64xf32> to vector<2x16xf32>
    %166 = vector.extract_strided_slice %154 {offsets = [0, 48], sizes = [2, 16], strides = [1, 1]} : vector<2x64xf32> to vector<2x16xf32>
    %cst_49 = arith.constant 5.000000e-01 : f32
    %167 = vector.broadcast %cst_49 : f32 to vector<2x16xf32>
    %168 = arith.mulf %167, %166 : vector<2x16xf32>
    %cst_50 = arith.constant 5.000000e-01 : f32
    %169 = vector.broadcast %cst_50 : f32 to vector<2x16xf32>
    %170 = arith.addf %168, %169 : vector<2x16xf32>
    %171 = arith.mulf %164, %121 : vector<2x16xf32>
    %172 = arith.mulf %159, %165 : vector<2x16xf32>
    %173 = arith.addf %171, %172 : vector<2x16xf32>
    %174 = math.tanh %173 : vector<2x16xf32>
    %175 = arith.mulf %170, %174 : vector<2x16xf32>
    %176 = math.tanh %153 : vector<2x64xf32>
    %177 = vector.extract_strided_slice %176 {offsets = [0, 0], sizes = [2, 16], strides = [1, 1]} : vector<2x64xf32> to vector<2x16xf32>
    %cst_51 = arith.constant 5.000000e-01 : f32
    %178 = vector.broadcast %cst_51 : f32 to vector<2x16xf32>
    %179 = arith.mulf %178, %177 : vector<2x16xf32>
    %cst_52 = arith.constant 5.000000e-01 : f32
    %180 = vector.broadcast %cst_52 : f32 to vector<2x16xf32>
    %181 = arith.addf %179, %180 : vector<2x16xf32>
    %182 = vector.extract_strided_slice %176 {offsets = [0, 16], sizes = [2, 16], strides = [1, 1]} : vector<2x64xf32> to vector<2x16xf32>
    %cst_53 = arith.constant 5.000000e-01 : f32
    %183 = vector.broadcast %cst_53 : f32 to vector<2x16xf32>
    %184 = arith.mulf %183, %182 : vector<2x16xf32>
    %cst_54 = arith.constant 5.000000e-01 : f32
    %185 = vector.broadcast %cst_54 : f32 to vector<2x16xf32>
    %186 = arith.addf %184, %185 : vector<2x16xf32>
    %187 = vector.extract_strided_slice %176 {offsets = [0, 32], sizes = [2, 16], strides = [1, 1]} : vector<2x64xf32> to vector<2x16xf32>
    %188 = vector.extract_strided_slice %176 {offsets = [0, 48], sizes = [2, 16], strides = [1, 1]} : vector<2x64xf32> to vector<2x16xf32>
    %cst_55 = arith.constant 5.000000e-01 : f32
    %189 = vector.broadcast %cst_55 : f32 to vector<2x16xf32>
    %190 = arith.mulf %189, %188 : vector<2x16xf32>
    %cst_56 = arith.constant 5.000000e-01 : f32
    %191 = vector.broadcast %cst_56 : f32 to vector<2x16xf32>
    %192 = arith.addf %190, %191 : vector<2x16xf32>
    %193 = arith.mulf %186, %143 : vector<2x16xf32>
    %194 = arith.mulf %181, %187 : vector<2x16xf32>
    %195 = arith.addf %193, %194 : vector<2x16xf32>
    %196 = math.tanh %195 : vector<2x16xf32>
    %197 = arith.mulf %192, %196 : vector<2x16xf32>
    %198 = tpu.concatenate %175, %197 in 1 : vector<2x16xf32>, vector<2x16xf32> -> vector<2x32xf32>
    %cst_57 = arith.constant dense<0.000000e+00> : vector<2x128xf32>
    %199 = tpu.matmul %198, %9, %cst_57 {dimension_numbers = #tpu.dot_dimension_numbers<[1], [0], [0], [1], [0, 0, 1, 1], [], []>} : vector<2x32xf32>, vector<32x128xf32>, vector<2x128xf32> -> vector<2x128xf32>
    %200 = vector.extract_strided_slice %7 {offsets = [8, 0], sizes = [2, 64], strides = [1, 1]} : vector<16x128xf32> to vector<2x64xf32>
    %201 = vector.extract_strided_slice %199 {offsets = [0, 0], sizes = [2, 64], strides = [1, 1]} : vector<2x128xf32> to vector<2x64xf32>
    %202 = arith.addf %200, %201 : vector<2x64xf32>
    %203 = vector.extract_strided_slice %7 {offsets = [6, 64], sizes = [2, 64], strides = [1, 1]} : vector<16x128xf32> to vector<2x64xf32>
    %204 = vector.extract_strided_slice %199 {offsets = [0, 64], sizes = [2, 64], strides = [1, 1]} : vector<2x128xf32> to vector<2x64xf32>
    %205 = arith.addf %203, %204 : vector<2x64xf32>
    %206 = math.tanh %202 : vector<2x64xf32>
    %207 = vector.extract_strided_slice %206 {offsets = [0, 0], sizes = [2, 16], strides = [1, 1]} : vector<2x64xf32> to vector<2x16xf32>
    %cst_58 = arith.constant 5.000000e-01 : f32
    %208 = vector.broadcast %cst_58 : f32 to vector<2x16xf32>
    %209 = arith.mulf %208, %207 : vector<2x16xf32>
    %cst_59 = arith.constant 5.000000e-01 : f32
    %210 = vector.broadcast %cst_59 : f32 to vector<2x16xf32>
    %211 = arith.addf %209, %210 : vector<2x16xf32>
    %212 = vector.extract_strided_slice %206 {offsets = [0, 16], sizes = [2, 16], strides = [1, 1]} : vector<2x64xf32> to vector<2x16xf32>
    %cst_60 = arith.constant 5.000000e-01 : f32
    %213 = vector.broadcast %cst_60 : f32 to vector<2x16xf32>
    %214 = arith.mulf %213, %212 : vector<2x16xf32>
    %cst_61 = arith.constant 5.000000e-01 : f32
    %215 = vector.broadcast %cst_61 : f32 to vector<2x16xf32>
    %216 = arith.addf %214, %215 : vector<2x16xf32>
    %217 = vector.extract_strided_slice %206 {offsets = [0, 32], sizes = [2, 16], strides = [1, 1]} : vector<2x64xf32> to vector<2x16xf32>
    %218 = vector.extract_strided_slice %206 {offsets = [0, 48], sizes = [2, 16], strides = [1, 1]} : vector<2x64xf32> to vector<2x16xf32>
    %cst_62 = arith.constant 5.000000e-01 : f32
    %219 = vector.broadcast %cst_62 : f32 to vector<2x16xf32>
    %220 = arith.mulf %219, %218 : vector<2x16xf32>
    %cst_63 = arith.constant 5.000000e-01 : f32
    %221 = vector.broadcast %cst_63 : f32 to vector<2x16xf32>
    %222 = arith.addf %220, %221 : vector<2x16xf32>
    %223 = arith.mulf %216, %173 : vector<2x16xf32>
    %224 = arith.mulf %211, %217 : vector<2x16xf32>
    %225 = arith.addf %223, %224 : vector<2x16xf32>
    %226 = math.tanh %225 : vector<2x16xf32>
    %227 = arith.mulf %222, %226 : vector<2x16xf32>
    %228 = math.tanh %205 : vector<2x64xf32>
    %229 = vector.extract_strided_slice %228 {offsets = [0, 0], sizes = [2, 16], strides = [1, 1]} : vector<2x64xf32> to vector<2x16xf32>
    %cst_64 = arith.constant 5.000000e-01 : f32
    %230 = vector.broadcast %cst_64 : f32 to vector<2x16xf32>
    %231 = arith.mulf %230, %229 : vector<2x16xf32>
    %cst_65 = arith.constant 5.000000e-01 : f32
    %232 = vector.broadcast %cst_65 : f32 to vector<2x16xf32>
    %233 = arith.addf %231, %232 : vector<2x16xf32>
    %234 = vector.extract_strided_slice %228 {offsets = [0, 16], sizes = [2, 16], strides = [1, 1]} : vector<2x64xf32> to vector<2x16xf32>
    %cst_66 = arith.constant 5.000000e-01 : f32
    %235 = vector.broadcast %cst_66 : f32 to vector<2x16xf32>
    %236 = arith.mulf %235, %234 : vector<2x16xf32>
    %cst_67 = arith.constant 5.000000e-01 : f32
    %237 = vector.broadcast %cst_67 : f32 to vector<2x16xf32>
    %238 = arith.addf %236, %237 : vector<2x16xf32>
    %239 = vector.extract_strided_slice %228 {offsets = [0, 32], sizes = [2, 16], strides = [1, 1]} : vector<2x64xf32> to vector<2x16xf32>
    %240 = vector.extract_strided_slice %228 {offsets = [0, 48], sizes = [2, 16], strides = [1, 1]} : vector<2x64xf32> to vector<2x16xf32>
    %cst_68 = arith.constant 5.000000e-01 : f32
    %241 = vector.broadcast %cst_68 : f32 to vector<2x16xf32>
    %242 = arith.mulf %241, %240 : vector<2x16xf32>
    %cst_69 = arith.constant 5.000000e-01 : f32
    %243 = vector.broadcast %cst_69 : f32 to vector<2x16xf32>
    %244 = arith.addf %242, %243 : vector<2x16xf32>
    %245 = arith.mulf %238, %195 : vector<2x16xf32>
    %246 = arith.mulf %233, %239 : vector<2x16xf32>
    %247 = arith.addf %245, %246 : vector<2x16xf32>
    %248 = math.tanh %247 : vector<2x16xf32>
    %249 = arith.mulf %244, %248 : vector<2x16xf32>
    %250 = tpu.concatenate %227, %249 in 1 : vector<2x16xf32>, vector<2x16xf32> -> vector<2x32xf32>
    %cst_70 = arith.constant dense<0.000000e+00> : vector<2x128xf32>
    %251 = tpu.matmul %250, %9, %cst_70 {dimension_numbers = #tpu.dot_dimension_numbers<[1], [0], [0], [1], [0, 0, 1, 1], [], []>} : vector<2x32xf32>, vector<32x128xf32>, vector<2x128xf32> -> vector<2x128xf32>
    %252 = vector.extract_strided_slice %7 {offsets = [10, 0], sizes = [2, 64], strides = [1, 1]} : vector<16x128xf32> to vector<2x64xf32>
    %253 = vector.extract_strided_slice %251 {offsets = [0, 0], sizes = [2, 64], strides = [1, 1]} : vector<2x128xf32> to vector<2x64xf32>
    %254 = arith.addf %252, %253 : vector<2x64xf32>
    %255 = vector.extract_strided_slice %7 {offsets = [4, 64], sizes = [2, 64], strides = [1, 1]} : vector<16x128xf32> to vector<2x64xf32>
    %256 = vector.extract_strided_slice %251 {offsets = [0, 64], sizes = [2, 64], strides = [1, 1]} : vector<2x128xf32> to vector<2x64xf32>
    %257 = arith.addf %255, %256 : vector<2x64xf32>
    %258 = math.tanh %254 : vector<2x64xf32>
    %259 = vector.extract_strided_slice %258 {offsets = [0, 0], sizes = [2, 16], strides = [1, 1]} : vector<2x64xf32> to vector<2x16xf32>
    %cst_71 = arith.constant 5.000000e-01 : f32
    %260 = vector.broadcast %cst_71 : f32 to vector<2x16xf32>
    %261 = arith.mulf %260, %259 : vector<2x16xf32>
    %cst_72 = arith.constant 5.000000e-01 : f32
    %262 = vector.broadcast %cst_72 : f32 to vector<2x16xf32>
    %263 = arith.addf %261, %262 : vector<2x16xf32>
    %264 = vector.extract_strided_slice %258 {offsets = [0, 16], sizes = [2, 16], strides = [1, 1]} : vector<2x64xf32> to vector<2x16xf32>
    %cst_73 = arith.constant 5.000000e-01 : f32
    %265 = vector.broadcast %cst_73 : f32 to vector<2x16xf32>
    %266 = arith.mulf %265, %264 : vector<2x16xf32>
    %cst_74 = arith.constant 5.000000e-01 : f32
    %267 = vector.broadcast %cst_74 : f32 to vector<2x16xf32>
    %268 = arith.addf %266, %267 : vector<2x16xf32>
    %269 = vector.extract_strided_slice %258 {offsets = [0, 32], sizes = [2, 16], strides = [1, 1]} : vector<2x64xf32> to vector<2x16xf32>
    %270 = vector.extract_strided_slice %258 {offsets = [0, 48], sizes = [2, 16], strides = [1, 1]} : vector<2x64xf32> to vector<2x16xf32>
    %cst_75 = arith.constant 5.000000e-01 : f32
    %271 = vector.broadcast %cst_75 : f32 to vector<2x16xf32>
    %272 = arith.mulf %271, %270 : vector<2x16xf32>
    %cst_76 = arith.constant 5.000000e-01 : f32
    %273 = vector.broadcast %cst_76 : f32 to vector<2x16xf32>
    %274 = arith.addf %272, %273 : vector<2x16xf32>
    %275 = arith.mulf %268, %225 : vector<2x16xf32>
    %276 = arith.mulf %263, %269 : vector<2x16xf32>
    %277 = arith.addf %275, %276 : vector<2x16xf32>
    %278 = math.tanh %277 : vector<2x16xf32>
    %279 = arith.mulf %274, %278 : vector<2x16xf32>
    %280 = math.tanh %257 : vector<2x64xf32>
    %281 = vector.extract_strided_slice %280 {offsets = [0, 0], sizes = [2, 16], strides = [1, 1]} : vector<2x64xf32> to vector<2x16xf32>
    %cst_77 = arith.constant 5.000000e-01 : f32
    %282 = vector.broadcast %cst_77 : f32 to vector<2x16xf32>
    %283 = arith.mulf %282, %281 : vector<2x16xf32>
    %cst_78 = arith.constant 5.000000e-01 : f32
    %284 = vector.broadcast %cst_78 : f32 to vector<2x16xf32>
    %285 = arith.addf %283, %284 : vector<2x16xf32>
    %286 = vector.extract_strided_slice %280 {offsets = [0, 16], sizes = [2, 16], strides = [1, 1]} : vector<2x64xf32> to vector<2x16xf32>
    %cst_79 = arith.constant 5.000000e-01 : f32
    %287 = vector.broadcast %cst_79 : f32 to vector<2x16xf32>
    %288 = arith.mulf %287, %286 : vector<2x16xf32>
    %cst_80 = arith.constant 5.000000e-01 : f32
    %289 = vector.broadcast %cst_80 : f32 to vector<2x16xf32>
    %290 = arith.addf %288, %289 : vector<2x16xf32>
    %291 = vector.extract_strided_slice %280 {offsets = [0, 32], sizes = [2, 16], strides = [1, 1]} : vector<2x64xf32> to vector<2x16xf32>
    %292 = vector.extract_strided_slice %280 {offsets = [0, 48], sizes = [2, 16], strides = [1, 1]} : vector<2x64xf32> to vector<2x16xf32>
    %cst_81 = arith.constant 5.000000e-01 : f32
    %293 = vector.broadcast %cst_81 : f32 to vector<2x16xf32>
    %294 = arith.mulf %293, %292 : vector<2x16xf32>
    %cst_82 = arith.constant 5.000000e-01 : f32
    %295 = vector.broadcast %cst_82 : f32 to vector<2x16xf32>
    %296 = arith.addf %294, %295 : vector<2x16xf32>
    %297 = arith.mulf %290, %247 : vector<2x16xf32>
    %298 = arith.mulf %285, %291 : vector<2x16xf32>
    %299 = arith.addf %297, %298 : vector<2x16xf32>
    %300 = math.tanh %299 : vector<2x16xf32>
    %301 = arith.mulf %296, %300 : vector<2x16xf32>
    %302 = tpu.concatenate %279, %301 in 1 : vector<2x16xf32>, vector<2x16xf32> -> vector<2x32xf32>
    %cst_83 = arith.constant dense<0.000000e+00> : vector<2x128xf32>
    %303 = tpu.matmul %302, %9, %cst_83 {dimension_numbers = #tpu.dot_dimension_numbers<[1], [0], [0], [1], [0, 0, 1, 1], [], []>} : vector<2x32xf32>, vector<32x128xf32>, vector<2x128xf32> -> vector<2x128xf32>
    %304 = vector.extract_strided_slice %7 {offsets = [12, 0], sizes = [2, 64], strides = [1, 1]} : vector<16x128xf32> to vector<2x64xf32>
    %305 = vector.extract_strided_slice %303 {offsets = [0, 0], sizes = [2, 64], strides = [1, 1]} : vector<2x128xf32> to vector<2x64xf32>
    %306 = arith.addf %304, %305 : vector<2x64xf32>
    %307 = vector.extract_strided_slice %7 {offsets = [2, 64], sizes = [2, 64], strides = [1, 1]} : vector<16x128xf32> to vector<2x64xf32>
    %308 = vector.extract_strided_slice %303 {offsets = [0, 64], sizes = [2, 64], strides = [1, 1]} : vector<2x128xf32> to vector<2x64xf32>
    %309 = arith.addf %307, %308 : vector<2x64xf32>
    %310 = math.tanh %306 : vector<2x64xf32>
    %311 = vector.extract_strided_slice %310 {offsets = [0, 0], sizes = [2, 16], strides = [1, 1]} : vector<2x64xf32> to vector<2x16xf32>
    %cst_84 = arith.constant 5.000000e-01 : f32
    %312 = vector.broadcast %cst_84 : f32 to vector<2x16xf32>
    %313 = arith.mulf %312, %311 : vector<2x16xf32>
    %cst_85 = arith.constant 5.000000e-01 : f32
    %314 = vector.broadcast %cst_85 : f32 to vector<2x16xf32>
    %315 = arith.addf %313, %314 : vector<2x16xf32>
    %316 = vector.extract_strided_slice %310 {offsets = [0, 16], sizes = [2, 16], strides = [1, 1]} : vector<2x64xf32> to vector<2x16xf32>
    %cst_86 = arith.constant 5.000000e-01 : f32
    %317 = vector.broadcast %cst_86 : f32 to vector<2x16xf32>
    %318 = arith.mulf %317, %316 : vector<2x16xf32>
    %cst_87 = arith.constant 5.000000e-01 : f32
    %319 = vector.broadcast %cst_87 : f32 to vector<2x16xf32>
    %320 = arith.addf %318, %319 : vector<2x16xf32>
    %321 = vector.extract_strided_slice %310 {offsets = [0, 32], sizes = [2, 16], strides = [1, 1]} : vector<2x64xf32> to vector<2x16xf32>
    %322 = vector.extract_strided_slice %310 {offsets = [0, 48], sizes = [2, 16], strides = [1, 1]} : vector<2x64xf32> to vector<2x16xf32>
    %cst_88 = arith.constant 5.000000e-01 : f32
    %323 = vector.broadcast %cst_88 : f32 to vector<2x16xf32>
    %324 = arith.mulf %323, %322 : vector<2x16xf32>
    %cst_89 = arith.constant 5.000000e-01 : f32
    %325 = vector.broadcast %cst_89 : f32 to vector<2x16xf32>
    %326 = arith.addf %324, %325 : vector<2x16xf32>
    %327 = arith.mulf %320, %277 : vector<2x16xf32>
    %328 = arith.mulf %315, %321 : vector<2x16xf32>
    %329 = arith.addf %327, %328 : vector<2x16xf32>
    %330 = math.tanh %329 : vector<2x16xf32>
    %331 = arith.mulf %326, %330 : vector<2x16xf32>
    %332 = math.tanh %309 : vector<2x64xf32>
    %333 = vector.extract_strided_slice %332 {offsets = [0, 0], sizes = [2, 16], strides = [1, 1]} : vector<2x64xf32> to vector<2x16xf32>
    %cst_90 = arith.constant 5.000000e-01 : f32
    %334 = vector.broadcast %cst_90 : f32 to vector<2x16xf32>
    %335 = arith.mulf %334, %333 : vector<2x16xf32>
    %cst_91 = arith.constant 5.000000e-01 : f32
    %336 = vector.broadcast %cst_91 : f32 to vector<2x16xf32>
    %337 = arith.addf %335, %336 : vector<2x16xf32>
    %338 = vector.extract_strided_slice %332 {offsets = [0, 16], sizes = [2, 16], strides = [1, 1]} : vector<2x64xf32> to vector<2x16xf32>
    %cst_92 = arith.constant 5.000000e-01 : f32
    %339 = vector.broadcast %cst_92 : f32 to vector<2x16xf32>
    %340 = arith.mulf %339, %338 : vector<2x16xf32>
    %cst_93 = arith.constant 5.000000e-01 : f32
    %341 = vector.broadcast %cst_93 : f32 to vector<2x16xf32>
    %342 = arith.addf %340, %341 : vector<2x16xf32>
    %343 = vector.extract_strided_slice %332 {offsets = [0, 32], sizes = [2, 16], strides = [1, 1]} : vector<2x64xf32> to vector<2x16xf32>
    %344 = vector.extract_strided_slice %332 {offsets = [0, 48], sizes = [2, 16], strides = [1, 1]} : vector<2x64xf32> to vector<2x16xf32>
    %cst_94 = arith.constant 5.000000e-01 : f32
    %345 = vector.broadcast %cst_94 : f32 to vector<2x16xf32>
    %346 = arith.mulf %345, %344 : vector<2x16xf32>
    %cst_95 = arith.constant 5.000000e-01 : f32
    %347 = vector.broadcast %cst_95 : f32 to vector<2x16xf32>
    %348 = arith.addf %346, %347 : vector<2x16xf32>
    %349 = arith.mulf %342, %299 : vector<2x16xf32>
    %350 = arith.mulf %337, %343 : vector<2x16xf32>
    %351 = arith.addf %349, %350 : vector<2x16xf32>
    %352 = math.tanh %351 : vector<2x16xf32>
    %353 = arith.mulf %348, %352 : vector<2x16xf32>
    %354 = tpu.concatenate %331, %353 in 1 : vector<2x16xf32>, vector<2x16xf32> -> vector<2x32xf32>
    %cst_96 = arith.constant dense<0.000000e+00> : vector<2x128xf32>
    %355 = tpu.matmul %354, %9, %cst_96 {dimension_numbers = #tpu.dot_dimension_numbers<[1], [0], [0], [1], [0, 0, 1, 1], [], []>} : vector<2x32xf32>, vector<32x128xf32>, vector<2x128xf32> -> vector<2x128xf32>
    %356 = vector.extract_strided_slice %7 {offsets = [14, 0], sizes = [2, 64], strides = [1, 1]} : vector<16x128xf32> to vector<2x64xf32>
    %357 = vector.extract_strided_slice %355 {offsets = [0, 0], sizes = [2, 64], strides = [1, 1]} : vector<2x128xf32> to vector<2x64xf32>
    %358 = arith.addf %356, %357 : vector<2x64xf32>
    %359 = vector.extract_strided_slice %7 {offsets = [0, 64], sizes = [2, 64], strides = [1, 1]} : vector<16x128xf32> to vector<2x64xf32>
    %360 = vector.extract_strided_slice %355 {offsets = [0, 64], sizes = [2, 64], strides = [1, 1]} : vector<2x128xf32> to vector<2x64xf32>
    %361 = arith.addf %359, %360 : vector<2x64xf32>
    %362 = math.tanh %358 : vector<2x64xf32>
    %363 = vector.extract_strided_slice %362 {offsets = [0, 0], sizes = [2, 16], strides = [1, 1]} : vector<2x64xf32> to vector<2x16xf32>
    %cst_97 = arith.constant 5.000000e-01 : f32
    %364 = vector.broadcast %cst_97 : f32 to vector<2x16xf32>
    %365 = arith.mulf %364, %363 : vector<2x16xf32>
    %cst_98 = arith.constant 5.000000e-01 : f32
    %366 = vector.broadcast %cst_98 : f32 to vector<2x16xf32>
    %367 = arith.addf %365, %366 : vector<2x16xf32>
    %368 = vector.extract_strided_slice %362 {offsets = [0, 16], sizes = [2, 16], strides = [1, 1]} : vector<2x64xf32> to vector<2x16xf32>
    %cst_99 = arith.constant 5.000000e-01 : f32
    %369 = vector.broadcast %cst_99 : f32 to vector<2x16xf32>
    %370 = arith.mulf %369, %368 : vector<2x16xf32>
    %cst_100 = arith.constant 5.000000e-01 : f32
    %371 = vector.broadcast %cst_100 : f32 to vector<2x16xf32>
    %372 = arith.addf %370, %371 : vector<2x16xf32>
    %373 = vector.extract_strided_slice %362 {offsets = [0, 32], sizes = [2, 16], strides = [1, 1]} : vector<2x64xf32> to vector<2x16xf32>
    %374 = vector.extract_strided_slice %362 {offsets = [0, 48], sizes = [2, 16], strides = [1, 1]} : vector<2x64xf32> to vector<2x16xf32>
    %cst_101 = arith.constant 5.000000e-01 : f32
    %375 = vector.broadcast %cst_101 : f32 to vector<2x16xf32>
    %376 = arith.mulf %375, %374 : vector<2x16xf32>
    %cst_102 = arith.constant 5.000000e-01 : f32
    %377 = vector.broadcast %cst_102 : f32 to vector<2x16xf32>
    %378 = arith.addf %376, %377 : vector<2x16xf32>
    %379 = arith.mulf %372, %329 : vector<2x16xf32>
    %380 = arith.mulf %367, %373 : vector<2x16xf32>
    %381 = arith.addf %379, %380 : vector<2x16xf32>
    %382 = math.tanh %381 : vector<2x16xf32>
    %383 = arith.mulf %378, %382 : vector<2x16xf32>
    %384 = math.tanh %361 : vector<2x64xf32>
    %385 = vector.extract_strided_slice %384 {offsets = [0, 0], sizes = [2, 16], strides = [1, 1]} : vector<2x64xf32> to vector<2x16xf32>
    %cst_103 = arith.constant 5.000000e-01 : f32
    %386 = vector.broadcast %cst_103 : f32 to vector<2x16xf32>
    %387 = arith.mulf %386, %385 : vector<2x16xf32>
    %cst_104 = arith.constant 5.000000e-01 : f32
    %388 = vector.broadcast %cst_104 : f32 to vector<2x16xf32>
    %389 = arith.addf %387, %388 : vector<2x16xf32>
    %390 = vector.extract_strided_slice %384 {offsets = [0, 16], sizes = [2, 16], strides = [1, 1]} : vector<2x64xf32> to vector<2x16xf32>
    %cst_105 = arith.constant 5.000000e-01 : f32
    %391 = vector.broadcast %cst_105 : f32 to vector<2x16xf32>
    %392 = arith.mulf %391, %390 : vector<2x16xf32>
    %cst_106 = arith.constant 5.000000e-01 : f32
    %393 = vector.broadcast %cst_106 : f32 to vector<2x16xf32>
    %394 = arith.addf %392, %393 : vector<2x16xf32>
    %395 = vector.extract_strided_slice %384 {offsets = [0, 32], sizes = [2, 16], strides = [1, 1]} : vector<2x64xf32> to vector<2x16xf32>
    %396 = vector.extract_strided_slice %384 {offsets = [0, 48], sizes = [2, 16], strides = [1, 1]} : vector<2x64xf32> to vector<2x16xf32>
    %cst_107 = arith.constant 5.000000e-01 : f32
    %397 = vector.broadcast %cst_107 : f32 to vector<2x16xf32>
    %398 = arith.mulf %397, %396 : vector<2x16xf32>
    %cst_108 = arith.constant 5.000000e-01 : f32
    %399 = vector.broadcast %cst_108 : f32 to vector<2x16xf32>
    %400 = arith.addf %398, %399 : vector<2x16xf32>
    %401 = arith.mulf %394, %351 : vector<2x16xf32>
    %402 = arith.mulf %389, %395 : vector<2x16xf32>
    %403 = arith.addf %401, %402 : vector<2x16xf32>
    %404 = math.tanh %403 : vector<2x16xf32>
    %405 = arith.mulf %400, %404 : vector<2x16xf32>
    %406 = tpu.concatenate %26, %71, %123, %175, %227, %279, %331, %383 in 0 : vector<2x16xf32>, vector<2x16xf32>, vector<2x16xf32>, vector<2x16xf32>, vector<2x16xf32>, vector<2x16xf32>, vector<2x16xf32>, vector<2x16xf32> -> vector<16x16xf32>
    %407 = tpu.concatenate %405, %353, %301, %249, %197, %145, %93, %41 in 0 : vector<2x16xf32>, vector<2x16xf32>, vector<2x16xf32>, vector<2x16xf32>, vector<2x16xf32>, vector<2x16xf32>, vector<2x16xf32>, vector<2x16xf32> -> vector<16x16xf32>
    %408 = tpu.concatenate %406, %407 in 1 : vector<16x16xf32>, vector<16x16xf32> -> vector<16x32xf32>
    %c1 = arith.constant 1 : index
    %c0_109 = arith.constant 0 : index
    %c0_110 = arith.constant 0 : index
    %409 = vector.load %arg1[%c1, %c0_109, %c0_110] : memref<4x32x128xf32, #tpu.memory_space<vmem>>, vector<1x32x128xf32>
    %410 = vector.shape_cast %409 : vector<1x32x128xf32> to vector<32x128xf32>
    %cst_111 = arith.constant dense<0.000000e+00> : vector<16x128xf32>
    %411 = tpu.matmul %408, %410, %cst_111 {dimension_numbers = #tpu.dot_dimension_numbers<[1], [0], [0], [1], [0, 0, 1, 1], [], []>} : vector<16x32xf32>, vector<32x128xf32>, vector<16x128xf32> -> vector<16x128xf32>
    %c1_112 = arith.constant 1 : index
    %c0_113 = arith.constant 0 : index
    %c0_114 = arith.constant 0 : index
    %412 = vector.load %arg3[%c1_112, %c0_113, %c0_114] : memref<4x1x128xf32, #tpu.memory_space<vmem>>, vector<1x1x128xf32>
    %413 = vector.shape_cast %412 : vector<1x1x128xf32> to vector<1x128xf32>
    %414 = vector.broadcast %413 : vector<1x128xf32> to vector<16x128xf32>
    %415 = arith.addf %411, %414 : vector<16x128xf32>
    %c1_115 = arith.constant 1 : index
    %c0_116 = arith.constant 0 : index
    %c0_117 = arith.constant 0 : index
    %416 = vector.load %arg2[%c1_115, %c0_116, %c0_117] : memref<4x32x128xf32, #tpu.memory_space<vmem>>, vector<1x32x128xf32>
    %417 = vector.shape_cast %416 : vector<1x32x128xf32> to vector<32x128xf32>
    %418 = vector.extract_strided_slice %415 {offsets = [0, 0], sizes = [2, 64], strides = [1, 1]} : vector<16x128xf32> to vector<2x64xf32>
    %419 = vector.extract_strided_slice %415 {offsets = [14, 64], sizes = [2, 64], strides = [1, 1]} : vector<16x128xf32> to vector<2x64xf32>
    %420 = math.tanh %418 : vector<2x64xf32>
    %421 = vector.extract_strided_slice %420 {offsets = [0, 0], sizes = [2, 16], strides = [1, 1]} : vector<2x64xf32> to vector<2x16xf32>
    %cst_118 = arith.constant 5.000000e-01 : f32
    %422 = vector.broadcast %cst_118 : f32 to vector<2x16xf32>
    %423 = arith.mulf %422, %421 : vector<2x16xf32>
    %cst_119 = arith.constant 5.000000e-01 : f32
    %424 = vector.broadcast %cst_119 : f32 to vector<2x16xf32>
    %425 = arith.addf %423, %424 : vector<2x16xf32>
    %426 = vector.extract_strided_slice %420 {offsets = [0, 32], sizes = [2, 16], strides = [1, 1]} : vector<2x64xf32> to vector<2x16xf32>
    %427 = vector.extract_strided_slice %420 {offsets = [0, 48], sizes = [2, 16], strides = [1, 1]} : vector<2x64xf32> to vector<2x16xf32>
    %cst_120 = arith.constant 5.000000e-01 : f32
    %428 = vector.broadcast %cst_120 : f32 to vector<2x16xf32>
    %429 = arith.mulf %428, %427 : vector<2x16xf32>
    %cst_121 = arith.constant 5.000000e-01 : f32
    %430 = vector.broadcast %cst_121 : f32 to vector<2x16xf32>
    %431 = arith.addf %429, %430 : vector<2x16xf32>
    %432 = arith.mulf %425, %426 : vector<2x16xf32>
    %433 = math.tanh %432 : vector<2x16xf32>
    %434 = arith.mulf %431, %433 : vector<2x16xf32>
    %435 = math.tanh %419 : vector<2x64xf32>
    %436 = vector.extract_strided_slice %435 {offsets = [0, 0], sizes = [2, 16], strides = [1, 1]} : vector<2x64xf32> to vector<2x16xf32>
    %cst_122 = arith.constant 5.000000e-01 : f32
    %437 = vector.broadcast %cst_122 : f32 to vector<2x16xf32>
    %438 = arith.mulf %437, %436 : vector<2x16xf32>
    %cst_123 = arith.constant 5.000000e-01 : f32
    %439 = vector.broadcast %cst_123 : f32 to vector<2x16xf32>
    %440 = arith.addf %438, %439 : vector<2x16xf32>
    %441 = vector.extract_strided_slice %435 {offsets = [0, 32], sizes = [2, 16], strides = [1, 1]} : vector<2x64xf32> to vector<2x16xf32>
    %442 = vector.extract_strided_slice %435 {offsets = [0, 48], sizes = [2, 16], strides = [1, 1]} : vector<2x64xf32> to vector<2x16xf32>
    %cst_124 = arith.constant 5.000000e-01 : f32
    %443 = vector.broadcast %cst_124 : f32 to vector<2x16xf32>
    %444 = arith.mulf %443, %442 : vector<2x16xf32>
    %cst_125 = arith.constant 5.000000e-01 : f32
    %445 = vector.broadcast %cst_125 : f32 to vector<2x16xf32>
    %446 = arith.addf %444, %445 : vector<2x16xf32>
    %447 = arith.mulf %440, %441 : vector<2x16xf32>
    %448 = math.tanh %447 : vector<2x16xf32>
    %449 = arith.mulf %446, %448 : vector<2x16xf32>
    %450 = tpu.concatenate %434, %449 in 1 : vector<2x16xf32>, vector<2x16xf32> -> vector<2x32xf32>
    %cst_126 = arith.constant dense<0.000000e+00> : vector<2x128xf32>
    %451 = tpu.matmul %450, %417, %cst_126 {dimension_numbers = #tpu.dot_dimension_numbers<[1], [0], [0], [1], [0, 0, 1, 1], [], []>} : vector<2x32xf32>, vector<32x128xf32>, vector<2x128xf32> -> vector<2x128xf32>
    %452 = vector.extract_strided_slice %415 {offsets = [2, 0], sizes = [2, 64], strides = [1, 1]} : vector<16x128xf32> to vector<2x64xf32>
    %453 = vector.extract_strided_slice %451 {offsets = [0, 0], sizes = [2, 64], strides = [1, 1]} : vector<2x128xf32> to vector<2x64xf32>
    %454 = arith.addf %452, %453 : vector<2x64xf32>
    %455 = vector.extract_strided_slice %415 {offsets = [12, 64], sizes = [2, 64], strides = [1, 1]} : vector<16x128xf32> to vector<2x64xf32>
    %456 = vector.extract_strided_slice %451 {offsets = [0, 64], sizes = [2, 64], strides = [1, 1]} : vector<2x128xf32> to vector<2x64xf32>
    %457 = arith.addf %455, %456 : vector<2x64xf32>
    %458 = math.tanh %454 : vector<2x64xf32>
    %459 = vector.extract_strided_slice %458 {offsets = [0, 0], sizes = [2, 16], strides = [1, 1]} : vector<2x64xf32> to vector<2x16xf32>
    %cst_127 = arith.constant 5.000000e-01 : f32
    %460 = vector.broadcast %cst_127 : f32 to vector<2x16xf32>
    %461 = arith.mulf %460, %459 : vector<2x16xf32>
    %cst_128 = arith.constant 5.000000e-01 : f32
    %462 = vector.broadcast %cst_128 : f32 to vector<2x16xf32>
    %463 = arith.addf %461, %462 : vector<2x16xf32>
    %464 = vector.extract_strided_slice %458 {offsets = [0, 16], sizes = [2, 16], strides = [1, 1]} : vector<2x64xf32> to vector<2x16xf32>
    %cst_129 = arith.constant 5.000000e-01 : f32
    %465 = vector.broadcast %cst_129 : f32 to vector<2x16xf32>
    %466 = arith.mulf %465, %464 : vector<2x16xf32>
    %cst_130 = arith.constant 5.000000e-01 : f32
    %467 = vector.broadcast %cst_130 : f32 to vector<2x16xf32>
    %468 = arith.addf %466, %467 : vector<2x16xf32>
    %469 = vector.extract_strided_slice %458 {offsets = [0, 32], sizes = [2, 16], strides = [1, 1]} : vector<2x64xf32> to vector<2x16xf32>
    %470 = vector.extract_strided_slice %458 {offsets = [0, 48], sizes = [2, 16], strides = [1, 1]} : vector<2x64xf32> to vector<2x16xf32>
    %cst_131 = arith.constant 5.000000e-01 : f32
    %471 = vector.broadcast %cst_131 : f32 to vector<2x16xf32>
    %472 = arith.mulf %471, %470 : vector<2x16xf32>
    %cst_132 = arith.constant 5.000000e-01 : f32
    %473 = vector.broadcast %cst_132 : f32 to vector<2x16xf32>
    %474 = arith.addf %472, %473 : vector<2x16xf32>
    %475 = arith.mulf %468, %432 : vector<2x16xf32>
    %476 = arith.mulf %463, %469 : vector<2x16xf32>
    %477 = arith.addf %475, %476 : vector<2x16xf32>
    %478 = math.tanh %477 : vector<2x16xf32>
    %479 = arith.mulf %474, %478 : vector<2x16xf32>
    %480 = math.tanh %457 : vector<2x64xf32>
    %481 = vector.extract_strided_slice %480 {offsets = [0, 0], sizes = [2, 16], strides = [1, 1]} : vector<2x64xf32> to vector<2x16xf32>
    %cst_133 = arith.constant 5.000000e-01 : f32
    %482 = vector.broadcast %cst_133 : f32 to vector<2x16xf32>
    %483 = arith.mulf %482, %481 : vector<2x16xf32>
    %cst_134 = arith.constant 5.000000e-01 : f32
    %484 = vector.broadcast %cst_134 : f32 to vector<2x16xf32>
    %485 = arith.addf %483, %484 : vector<2x16xf32>
    %486 = vector.extract_strided_slice %480 {offsets = [0, 16], sizes = [2, 16], strides = [1, 1]} : vector<2x64xf32> to vector<2x16xf32>
    %cst_135 = arith.constant 5.000000e-01 : f32
    %487 = vector.broadcast %cst_135 : f32 to vector<2x16xf32>
    %488 = arith.mulf %487, %486 : vector<2x16xf32>
    %cst_136 = arith.constant 5.000000e-01 : f32
    %489 = vector.broadcast %cst_136 : f32 to vector<2x16xf32>
    %490 = arith.addf %488, %489 : vector<2x16xf32>
    %491 = vector.extract_strided_slice %480 {offsets = [0, 32], sizes = [2, 16], strides = [1, 1]} : vector<2x64xf32> to vector<2x16xf32>
    %492 = vector.extract_strided_slice %480 {offsets = [0, 48], sizes = [2, 16], strides = [1, 1]} : vector<2x64xf32> to vector<2x16xf32>
    %cst_137 = arith.constant 5.000000e-01 : f32
    %493 = vector.broadcast %cst_137 : f32 to vector<2x16xf32>
    %494 = arith.mulf %493, %492 : vector<2x16xf32>
    %cst_138 = arith.constant 5.000000e-01 : f32
    %495 = vector.broadcast %cst_138 : f32 to vector<2x16xf32>
    %496 = arith.addf %494, %495 : vector<2x16xf32>
    %497 = arith.mulf %490, %447 : vector<2x16xf32>
    %498 = arith.mulf %485, %491 : vector<2x16xf32>
    %499 = arith.addf %497, %498 : vector<2x16xf32>
    %500 = math.tanh %499 : vector<2x16xf32>
    %501 = arith.mulf %496, %500 : vector<2x16xf32>
    %502 = tpu.concatenate %479, %501 in 1 : vector<2x16xf32>, vector<2x16xf32> -> vector<2x32xf32>
    %cst_139 = arith.constant dense<0.000000e+00> : vector<2x128xf32>
    %503 = tpu.matmul %502, %417, %cst_139 {dimension_numbers = #tpu.dot_dimension_numbers<[1], [0], [0], [1], [0, 0, 1, 1], [], []>} : vector<2x32xf32>, vector<32x128xf32>, vector<2x128xf32> -> vector<2x128xf32>
    %504 = vector.extract_strided_slice %415 {offsets = [4, 0], sizes = [2, 64], strides = [1, 1]} : vector<16x128xf32> to vector<2x64xf32>
    %505 = vector.extract_strided_slice %503 {offsets = [0, 0], sizes = [2, 64], strides = [1, 1]} : vector<2x128xf32> to vector<2x64xf32>
    %506 = arith.addf %504, %505 : vector<2x64xf32>
    %507 = vector.extract_strided_slice %415 {offsets = [10, 64], sizes = [2, 64], strides = [1, 1]} : vector<16x128xf32> to vector<2x64xf32>
    %508 = vector.extract_strided_slice %503 {offsets = [0, 64], sizes = [2, 64], strides = [1, 1]} : vector<2x128xf32> to vector<2x64xf32>
    %509 = arith.addf %507, %508 : vector<2x64xf32>
    %510 = math.tanh %506 : vector<2x64xf32>
    %511 = vector.extract_strided_slice %510 {offsets = [0, 0], sizes = [2, 16], strides = [1, 1]} : vector<2x64xf32> to vector<2x16xf32>
    %cst_140 = arith.constant 5.000000e-01 : f32
    %512 = vector.broadcast %cst_140 : f32 to vector<2x16xf32>
    %513 = arith.mulf %512, %511 : vector<2x16xf32>
    %cst_141 = arith.constant 5.000000e-01 : f32
    %514 = vector.broadcast %cst_141 : f32 to vector<2x16xf32>
    %515 = arith.addf %513, %514 : vector<2x16xf32>
    %516 = vector.extract_strided_slice %510 {offsets = [0, 16], sizes = [2, 16], strides = [1, 1]} : vector<2x64xf32> to vector<2x16xf32>
    %cst_142 = arith.constant 5.000000e-01 : f32
    %517 = vector.broadcast %cst_142 : f32 to vector<2x16xf32>
    %518 = arith.mulf %517, %516 : vector<2x16xf32>
    %cst_143 = arith.constant 5.000000e-01 : f32
    %519 = vector.broadcast %cst_143 : f32 to vector<2x16xf32>
    %520 = arith.addf %518, %519 : vector<2x16xf32>
    %521 = vector.extract_strided_slice %510 {offsets = [0, 32], sizes = [2, 16], strides = [1, 1]} : vector<2x64xf32> to vector<2x16xf32>
    %522 = vector.extract_strided_slice %510 {offsets = [0, 48], sizes = [2, 16], strides = [1, 1]} : vector<2x64xf32> to vector<2x16xf32>
    %cst_144 = arith.constant 5.000000e-01 : f32
    %523 = vector.broadcast %cst_144 : f32 to vector<2x16xf32>
    %524 = arith.mulf %523, %522 : vector<2x16xf32>
    %cst_145 = arith.constant 5.000000e-01 : f32
    %525 = vector.broadcast %cst_145 : f32 to vector<2x16xf32>
    %526 = arith.addf %524, %525 : vector<2x16xf32>
    %527 = arith.mulf %520, %477 : vector<2x16xf32>
    %528 = arith.mulf %515, %521 : vector<2x16xf32>
    %529 = arith.addf %527, %528 : vector<2x16xf32>
    %530 = math.tanh %529 : vector<2x16xf32>
    %531 = arith.mulf %526, %530 : vector<2x16xf32>
    %532 = math.tanh %509 : vector<2x64xf32>
    %533 = vector.extract_strided_slice %532 {offsets = [0, 0], sizes = [2, 16], strides = [1, 1]} : vector<2x64xf32> to vector<2x16xf32>
    %cst_146 = arith.constant 5.000000e-01 : f32
    %534 = vector.broadcast %cst_146 : f32 to vector<2x16xf32>
    %535 = arith.mulf %534, %533 : vector<2x16xf32>
    %cst_147 = arith.constant 5.000000e-01 : f32
    %536 = vector.broadcast %cst_147 : f32 to vector<2x16xf32>
    %537 = arith.addf %535, %536 : vector<2x16xf32>
    %538 = vector.extract_strided_slice %532 {offsets = [0, 16], sizes = [2, 16], strides = [1, 1]} : vector<2x64xf32> to vector<2x16xf32>
    %cst_148 = arith.constant 5.000000e-01 : f32
    %539 = vector.broadcast %cst_148 : f32 to vector<2x16xf32>
    %540 = arith.mulf %539, %538 : vector<2x16xf32>
    %cst_149 = arith.constant 5.000000e-01 : f32
    %541 = vector.broadcast %cst_149 : f32 to vector<2x16xf32>
    %542 = arith.addf %540, %541 : vector<2x16xf32>
    %543 = vector.extract_strided_slice %532 {offsets = [0, 32], sizes = [2, 16], strides = [1, 1]} : vector<2x64xf32> to vector<2x16xf32>
    %544 = vector.extract_strided_slice %532 {offsets = [0, 48], sizes = [2, 16], strides = [1, 1]} : vector<2x64xf32> to vector<2x16xf32>
    %cst_150 = arith.constant 5.000000e-01 : f32
    %545 = vector.broadcast %cst_150 : f32 to vector<2x16xf32>
    %546 = arith.mulf %545, %544 : vector<2x16xf32>
    %cst_151 = arith.constant 5.000000e-01 : f32
    %547 = vector.broadcast %cst_151 : f32 to vector<2x16xf32>
    %548 = arith.addf %546, %547 : vector<2x16xf32>
    %549 = arith.mulf %542, %499 : vector<2x16xf32>
    %550 = arith.mulf %537, %543 : vector<2x16xf32>
    %551 = arith.addf %549, %550 : vector<2x16xf32>
    %552 = math.tanh %551 : vector<2x16xf32>
    %553 = arith.mulf %548, %552 : vector<2x16xf32>
    %554 = tpu.concatenate %531, %553 in 1 : vector<2x16xf32>, vector<2x16xf32> -> vector<2x32xf32>
    %cst_152 = arith.constant dense<0.000000e+00> : vector<2x128xf32>
    %555 = tpu.matmul %554, %417, %cst_152 {dimension_numbers = #tpu.dot_dimension_numbers<[1], [0], [0], [1], [0, 0, 1, 1], [], []>} : vector<2x32xf32>, vector<32x128xf32>, vector<2x128xf32> -> vector<2x128xf32>
    %556 = vector.extract_strided_slice %415 {offsets = [6, 0], sizes = [2, 64], strides = [1, 1]} : vector<16x128xf32> to vector<2x64xf32>
    %557 = vector.extract_strided_slice %555 {offsets = [0, 0], sizes = [2, 64], strides = [1, 1]} : vector<2x128xf32> to vector<2x64xf32>
    %558 = arith.addf %556, %557 : vector<2x64xf32>
    %559 = vector.extract_strided_slice %415 {offsets = [8, 64], sizes = [2, 64], strides = [1, 1]} : vector<16x128xf32> to vector<2x64xf32>
    %560 = vector.extract_strided_slice %555 {offsets = [0, 64], sizes = [2, 64], strides = [1, 1]} : vector<2x128xf32> to vector<2x64xf32>
    %561 = arith.addf %559, %560 : vector<2x64xf32>
    %562 = math.tanh %558 : vector<2x64xf32>
    %563 = vector.extract_strided_slice %562 {offsets = [0, 0], sizes = [2, 16], strides = [1, 1]} : vector<2x64xf32> to vector<2x16xf32>
    %cst_153 = arith.constant 5.000000e-01 : f32
    %564 = vector.broadcast %cst_153 : f32 to vector<2x16xf32>
    %565 = arith.mulf %564, %563 : vector<2x16xf32>
    %cst_154 = arith.constant 5.000000e-01 : f32
    %566 = vector.broadcast %cst_154 : f32 to vector<2x16xf32>
    %567 = arith.addf %565, %566 : vector<2x16xf32>
    %568 = vector.extract_strided_slice %562 {offsets = [0, 16], sizes = [2, 16], strides = [1, 1]} : vector<2x64xf32> to vector<2x16xf32>
    %cst_155 = arith.constant 5.000000e-01 : f32
    %569 = vector.broadcast %cst_155 : f32 to vector<2x16xf32>
    %570 = arith.mulf %569, %568 : vector<2x16xf32>
    %cst_156 = arith.constant 5.000000e-01 : f32
    %571 = vector.broadcast %cst_156 : f32 to vector<2x16xf32>
    %572 = arith.addf %570, %571 : vector<2x16xf32>
    %573 = vector.extract_strided_slice %562 {offsets = [0, 32], sizes = [2, 16], strides = [1, 1]} : vector<2x64xf32> to vector<2x16xf32>
    %574 = vector.extract_strided_slice %562 {offsets = [0, 48], sizes = [2, 16], strides = [1, 1]} : vector<2x64xf32> to vector<2x16xf32>
    %cst_157 = arith.constant 5.000000e-01 : f32
    %575 = vector.broadcast %cst_157 : f32 to vector<2x16xf32>
    %576 = arith.mulf %575, %574 : vector<2x16xf32>
    %cst_158 = arith.constant 5.000000e-01 : f32
    %577 = vector.broadcast %cst_158 : f32 to vector<2x16xf32>
    %578 = arith.addf %576, %577 : vector<2x16xf32>
    %579 = arith.mulf %572, %529 : vector<2x16xf32>
    %580 = arith.mulf %567, %573 : vector<2x16xf32>
    %581 = arith.addf %579, %580 : vector<2x16xf32>
    %582 = math.tanh %581 : vector<2x16xf32>
    %583 = arith.mulf %578, %582 : vector<2x16xf32>
    %584 = math.tanh %561 : vector<2x64xf32>
    %585 = vector.extract_strided_slice %584 {offsets = [0, 0], sizes = [2, 16], strides = [1, 1]} : vector<2x64xf32> to vector<2x16xf32>
    %cst_159 = arith.constant 5.000000e-01 : f32
    %586 = vector.broadcast %cst_159 : f32 to vector<2x16xf32>
    %587 = arith.mulf %586, %585 : vector<2x16xf32>
    %cst_160 = arith.constant 5.000000e-01 : f32
    %588 = vector.broadcast %cst_160 : f32 to vector<2x16xf32>
    %589 = arith.addf %587, %588 : vector<2x16xf32>
    %590 = vector.extract_strided_slice %584 {offsets = [0, 16], sizes = [2, 16], strides = [1, 1]} : vector<2x64xf32> to vector<2x16xf32>
    %cst_161 = arith.constant 5.000000e-01 : f32
    %591 = vector.broadcast %cst_161 : f32 to vector<2x16xf32>
    %592 = arith.mulf %591, %590 : vector<2x16xf32>
    %cst_162 = arith.constant 5.000000e-01 : f32
    %593 = vector.broadcast %cst_162 : f32 to vector<2x16xf32>
    %594 = arith.addf %592, %593 : vector<2x16xf32>
    %595 = vector.extract_strided_slice %584 {offsets = [0, 32], sizes = [2, 16], strides = [1, 1]} : vector<2x64xf32> to vector<2x16xf32>
    %596 = vector.extract_strided_slice %584 {offsets = [0, 48], sizes = [2, 16], strides = [1, 1]} : vector<2x64xf32> to vector<2x16xf32>
    %cst_163 = arith.constant 5.000000e-01 : f32
    %597 = vector.broadcast %cst_163 : f32 to vector<2x16xf32>
    %598 = arith.mulf %597, %596 : vector<2x16xf32>
    %cst_164 = arith.constant 5.000000e-01 : f32
    %599 = vector.broadcast %cst_164 : f32 to vector<2x16xf32>
    %600 = arith.addf %598, %599 : vector<2x16xf32>
    %601 = arith.mulf %594, %551 : vector<2x16xf32>
    %602 = arith.mulf %589, %595 : vector<2x16xf32>
    %603 = arith.addf %601, %602 : vector<2x16xf32>
    %604 = math.tanh %603 : vector<2x16xf32>
    %605 = arith.mulf %600, %604 : vector<2x16xf32>
    %606 = tpu.concatenate %583, %605 in 1 : vector<2x16xf32>, vector<2x16xf32> -> vector<2x32xf32>
    %cst_165 = arith.constant dense<0.000000e+00> : vector<2x128xf32>
    %607 = tpu.matmul %606, %417, %cst_165 {dimension_numbers = #tpu.dot_dimension_numbers<[1], [0], [0], [1], [0, 0, 1, 1], [], []>} : vector<2x32xf32>, vector<32x128xf32>, vector<2x128xf32> -> vector<2x128xf32>
    %608 = vector.extract_strided_slice %415 {offsets = [8, 0], sizes = [2, 64], strides = [1, 1]} : vector<16x128xf32> to vector<2x64xf32>
    %609 = vector.extract_strided_slice %607 {offsets = [0, 0], sizes = [2, 64], strides = [1, 1]} : vector<2x128xf32> to vector<2x64xf32>
    %610 = arith.addf %608, %609 : vector<2x64xf32>
    %611 = vector.extract_strided_slice %415 {offsets = [6, 64], sizes = [2, 64], strides = [1, 1]} : vector<16x128xf32> to vector<2x64xf32>
    %612 = vector.extract_strided_slice %607 {offsets = [0, 64], sizes = [2, 64], strides = [1, 1]} : vector<2x128xf32> to vector<2x64xf32>
    %613 = arith.addf %611, %612 : vector<2x64xf32>
    %614 = math.tanh %610 : vector<2x64xf32>
    %615 = vector.extract_strided_slice %614 {offsets = [0, 0], sizes = [2, 16], strides = [1, 1]} : vector<2x64xf32> to vector<2x16xf32>
    %cst_166 = arith.constant 5.000000e-01 : f32
    %616 = vector.broadcast %cst_166 : f32 to vector<2x16xf32>
    %617 = arith.mulf %616, %615 : vector<2x16xf32>
    %cst_167 = arith.constant 5.000000e-01 : f32
    %618 = vector.broadcast %cst_167 : f32 to vector<2x16xf32>
    %619 = arith.addf %617, %618 : vector<2x16xf32>
    %620 = vector.extract_strided_slice %614 {offsets = [0, 16], sizes = [2, 16], strides = [1, 1]} : vector<2x64xf32> to vector<2x16xf32>
    %cst_168 = arith.constant 5.000000e-01 : f32
    %621 = vector.broadcast %cst_168 : f32 to vector<2x16xf32>
    %622 = arith.mulf %621, %620 : vector<2x16xf32>
    %cst_169 = arith.constant 5.000000e-01 : f32
    %623 = vector.broadcast %cst_169 : f32 to vector<2x16xf32>
    %624 = arith.addf %622, %623 : vector<2x16xf32>
    %625 = vector.extract_strided_slice %614 {offsets = [0, 32], sizes = [2, 16], strides = [1, 1]} : vector<2x64xf32> to vector<2x16xf32>
    %626 = vector.extract_strided_slice %614 {offsets = [0, 48], sizes = [2, 16], strides = [1, 1]} : vector<2x64xf32> to vector<2x16xf32>
    %cst_170 = arith.constant 5.000000e-01 : f32
    %627 = vector.broadcast %cst_170 : f32 to vector<2x16xf32>
    %628 = arith.mulf %627, %626 : vector<2x16xf32>
    %cst_171 = arith.constant 5.000000e-01 : f32
    %629 = vector.broadcast %cst_171 : f32 to vector<2x16xf32>
    %630 = arith.addf %628, %629 : vector<2x16xf32>
    %631 = arith.mulf %624, %581 : vector<2x16xf32>
    %632 = arith.mulf %619, %625 : vector<2x16xf32>
    %633 = arith.addf %631, %632 : vector<2x16xf32>
    %634 = math.tanh %633 : vector<2x16xf32>
    %635 = arith.mulf %630, %634 : vector<2x16xf32>
    %636 = math.tanh %613 : vector<2x64xf32>
    %637 = vector.extract_strided_slice %636 {offsets = [0, 0], sizes = [2, 16], strides = [1, 1]} : vector<2x64xf32> to vector<2x16xf32>
    %cst_172 = arith.constant 5.000000e-01 : f32
    %638 = vector.broadcast %cst_172 : f32 to vector<2x16xf32>
    %639 = arith.mulf %638, %637 : vector<2x16xf32>
    %cst_173 = arith.constant 5.000000e-01 : f32
    %640 = vector.broadcast %cst_173 : f32 to vector<2x16xf32>
    %641 = arith.addf %639, %640 : vector<2x16xf32>
    %642 = vector.extract_strided_slice %636 {offsets = [0, 16], sizes = [2, 16], strides = [1, 1]} : vector<2x64xf32> to vector<2x16xf32>
    %cst_174 = arith.constant 5.000000e-01 : f32
    %643 = vector.broadcast %cst_174 : f32 to vector<2x16xf32>
    %644 = arith.mulf %643, %642 : vector<2x16xf32>
    %cst_175 = arith.constant 5.000000e-01 : f32
    %645 = vector.broadcast %cst_175 : f32 to vector<2x16xf32>
    %646 = arith.addf %644, %645 : vector<2x16xf32>
    %647 = vector.extract_strided_slice %636 {offsets = [0, 32], sizes = [2, 16], strides = [1, 1]} : vector<2x64xf32> to vector<2x16xf32>
    %648 = vector.extract_strided_slice %636 {offsets = [0, 48], sizes = [2, 16], strides = [1, 1]} : vector<2x64xf32> to vector<2x16xf32>
    %cst_176 = arith.constant 5.000000e-01 : f32
    %649 = vector.broadcast %cst_176 : f32 to vector<2x16xf32>
    %650 = arith.mulf %649, %648 : vector<2x16xf32>
    %cst_177 = arith.constant 5.000000e-01 : f32
    %651 = vector.broadcast %cst_177 : f32 to vector<2x16xf32>
    %652 = arith.addf %650, %651 : vector<2x16xf32>
    %653 = arith.mulf %646, %603 : vector<2x16xf32>
    %654 = arith.mulf %641, %647 : vector<2x16xf32>
    %655 = arith.addf %653, %654 : vector<2x16xf32>
    %656 = math.tanh %655 : vector<2x16xf32>
    %657 = arith.mulf %652, %656 : vector<2x16xf32>
    %658 = tpu.concatenate %635, %657 in 1 : vector<2x16xf32>, vector<2x16xf32> -> vector<2x32xf32>
    %cst_178 = arith.constant dense<0.000000e+00> : vector<2x128xf32>
    %659 = tpu.matmul %658, %417, %cst_178 {dimension_numbers = #tpu.dot_dimension_numbers<[1], [0], [0], [1], [0, 0, 1, 1], [], []>} : vector<2x32xf32>, vector<32x128xf32>, vector<2x128xf32> -> vector<2x128xf32>
    %660 = vector.extract_strided_slice %415 {offsets = [10, 0], sizes = [2, 64], strides = [1, 1]} : vector<16x128xf32> to vector<2x64xf32>
    %661 = vector.extract_strided_slice %659 {offsets = [0, 0], sizes = [2, 64], strides = [1, 1]} : vector<2x128xf32> to vector<2x64xf32>
    %662 = arith.addf %660, %661 : vector<2x64xf32>
    %663 = vector.extract_strided_slice %415 {offsets = [4, 64], sizes = [2, 64], strides = [1, 1]} : vector<16x128xf32> to vector<2x64xf32>
    %664 = vector.extract_strided_slice %659 {offsets = [0, 64], sizes = [2, 64], strides = [1, 1]} : vector<2x128xf32> to vector<2x64xf32>
    %665 = arith.addf %663, %664 : vector<2x64xf32>
    %666 = math.tanh %662 : vector<2x64xf32>
    %667 = vector.extract_strided_slice %666 {offsets = [0, 0], sizes = [2, 16], strides = [1, 1]} : vector<2x64xf32> to vector<2x16xf32>
    %cst_179 = arith.constant 5.000000e-01 : f32
    %668 = vector.broadcast %cst_179 : f32 to vector<2x16xf32>
    %669 = arith.mulf %668, %667 : vector<2x16xf32>
    %cst_180 = arith.constant 5.000000e-01 : f32
    %670 = vector.broadcast %cst_180 : f32 to vector<2x16xf32>
    %671 = arith.addf %669, %670 : vector<2x16xf32>
    %672 = vector.extract_strided_slice %666 {offsets = [0, 16], sizes = [2, 16], strides = [1, 1]} : vector<2x64xf32> to vector<2x16xf32>
    %cst_181 = arith.constant 5.000000e-01 : f32
    %673 = vector.broadcast %cst_181 : f32 to vector<2x16xf32>
    %674 = arith.mulf %673, %672 : vector<2x16xf32>
    %cst_182 = arith.constant 5.000000e-01 : f32
    %675 = vector.broadcast %cst_182 : f32 to vector<2x16xf32>
    %676 = arith.addf %674, %675 : vector<2x16xf32>
    %677 = vector.extract_strided_slice %666 {offsets = [0, 32], sizes = [2, 16], strides = [1, 1]} : vector<2x64xf32> to vector<2x16xf32>
    %678 = vector.extract_strided_slice %666 {offsets = [0, 48], sizes = [2, 16], strides = [1, 1]} : vector<2x64xf32> to vector<2x16xf32>
    %cst_183 = arith.constant 5.000000e-01 : f32
    %679 = vector.broadcast %cst_183 : f32 to vector<2x16xf32>
    %680 = arith.mulf %679, %678 : vector<2x16xf32>
    %cst_184 = arith.constant 5.000000e-01 : f32
    %681 = vector.broadcast %cst_184 : f32 to vector<2x16xf32>
    %682 = arith.addf %680, %681 : vector<2x16xf32>
    %683 = arith.mulf %676, %633 : vector<2x16xf32>
    %684 = arith.mulf %671, %677 : vector<2x16xf32>
    %685 = arith.addf %683, %684 : vector<2x16xf32>
    %686 = math.tanh %685 : vector<2x16xf32>
    %687 = arith.mulf %682, %686 : vector<2x16xf32>
    %688 = math.tanh %665 : vector<2x64xf32>
    %689 = vector.extract_strided_slice %688 {offsets = [0, 0], sizes = [2, 16], strides = [1, 1]} : vector<2x64xf32> to vector<2x16xf32>
    %cst_185 = arith.constant 5.000000e-01 : f32
    %690 = vector.broadcast %cst_185 : f32 to vector<2x16xf32>
    %691 = arith.mulf %690, %689 : vector<2x16xf32>
    %cst_186 = arith.constant 5.000000e-01 : f32
    %692 = vector.broadcast %cst_186 : f32 to vector<2x16xf32>
    %693 = arith.addf %691, %692 : vector<2x16xf32>
    %694 = vector.extract_strided_slice %688 {offsets = [0, 16], sizes = [2, 16], strides = [1, 1]} : vector<2x64xf32> to vector<2x16xf32>
    %cst_187 = arith.constant 5.000000e-01 : f32
    %695 = vector.broadcast %cst_187 : f32 to vector<2x16xf32>
    %696 = arith.mulf %695, %694 : vector<2x16xf32>
    %cst_188 = arith.constant 5.000000e-01 : f32
    %697 = vector.broadcast %cst_188 : f32 to vector<2x16xf32>
    %698 = arith.addf %696, %697 : vector<2x16xf32>
    %699 = vector.extract_strided_slice %688 {offsets = [0, 32], sizes = [2, 16], strides = [1, 1]} : vector<2x64xf32> to vector<2x16xf32>
    %700 = vector.extract_strided_slice %688 {offsets = [0, 48], sizes = [2, 16], strides = [1, 1]} : vector<2x64xf32> to vector<2x16xf32>
    %cst_189 = arith.constant 5.000000e-01 : f32
    %701 = vector.broadcast %cst_189 : f32 to vector<2x16xf32>
    %702 = arith.mulf %701, %700 : vector<2x16xf32>
    %cst_190 = arith.constant 5.000000e-01 : f32
    %703 = vector.broadcast %cst_190 : f32 to vector<2x16xf32>
    %704 = arith.addf %702, %703 : vector<2x16xf32>
    %705 = arith.mulf %698, %655 : vector<2x16xf32>
    %706 = arith.mulf %693, %699 : vector<2x16xf32>
    %707 = arith.addf %705, %706 : vector<2x16xf32>
    %708 = math.tanh %707 : vector<2x16xf32>
    %709 = arith.mulf %704, %708 : vector<2x16xf32>
    %710 = tpu.concatenate %687, %709 in 1 : vector<2x16xf32>, vector<2x16xf32> -> vector<2x32xf32>
    %cst_191 = arith.constant dense<0.000000e+00> : vector<2x128xf32>
    %711 = tpu.matmul %710, %417, %cst_191 {dimension_numbers = #tpu.dot_dimension_numbers<[1], [0], [0], [1], [0, 0, 1, 1], [], []>} : vector<2x32xf32>, vector<32x128xf32>, vector<2x128xf32> -> vector<2x128xf32>
    %712 = vector.extract_strided_slice %415 {offsets = [12, 0], sizes = [2, 64], strides = [1, 1]} : vector<16x128xf32> to vector<2x64xf32>
    %713 = vector.extract_strided_slice %711 {offsets = [0, 0], sizes = [2, 64], strides = [1, 1]} : vector<2x128xf32> to vector<2x64xf32>
    %714 = arith.addf %712, %713 : vector<2x64xf32>
    %715 = vector.extract_strided_slice %415 {offsets = [2, 64], sizes = [2, 64], strides = [1, 1]} : vector<16x128xf32> to vector<2x64xf32>
    %716 = vector.extract_strided_slice %711 {offsets = [0, 64], sizes = [2, 64], strides = [1, 1]} : vector<2x128xf32> to vector<2x64xf32>
    %717 = arith.addf %715, %716 : vector<2x64xf32>
    %718 = math.tanh %714 : vector<2x64xf32>
    %719 = vector.extract_strided_slice %718 {offsets = [0, 0], sizes = [2, 16], strides = [1, 1]} : vector<2x64xf32> to vector<2x16xf32>
    %cst_192 = arith.constant 5.000000e-01 : f32
    %720 = vector.broadcast %cst_192 : f32 to vector<2x16xf32>
    %721 = arith.mulf %720, %719 : vector<2x16xf32>
    %cst_193 = arith.constant 5.000000e-01 : f32
    %722 = vector.broadcast %cst_193 : f32 to vector<2x16xf32>
    %723 = arith.addf %721, %722 : vector<2x16xf32>
    %724 = vector.extract_strided_slice %718 {offsets = [0, 16], sizes = [2, 16], strides = [1, 1]} : vector<2x64xf32> to vector<2x16xf32>
    %cst_194 = arith.constant 5.000000e-01 : f32
    %725 = vector.broadcast %cst_194 : f32 to vector<2x16xf32>
    %726 = arith.mulf %725, %724 : vector<2x16xf32>
    %cst_195 = arith.constant 5.000000e-01 : f32
    %727 = vector.broadcast %cst_195 : f32 to vector<2x16xf32>
    %728 = arith.addf %726, %727 : vector<2x16xf32>
    %729 = vector.extract_strided_slice %718 {offsets = [0, 32], sizes = [2, 16], strides = [1, 1]} : vector<2x64xf32> to vector<2x16xf32>
    %730 = vector.extract_strided_slice %718 {offsets = [0, 48], sizes = [2, 16], strides = [1, 1]} : vector<2x64xf32> to vector<2x16xf32>
    %cst_196 = arith.constant 5.000000e-01 : f32
    %731 = vector.broadcast %cst_196 : f32 to vector<2x16xf32>
    %732 = arith.mulf %731, %730 : vector<2x16xf32>
    %cst_197 = arith.constant 5.000000e-01 : f32
    %733 = vector.broadcast %cst_197 : f32 to vector<2x16xf32>
    %734 = arith.addf %732, %733 : vector<2x16xf32>
    %735 = arith.mulf %728, %685 : vector<2x16xf32>
    %736 = arith.mulf %723, %729 : vector<2x16xf32>
    %737 = arith.addf %735, %736 : vector<2x16xf32>
    %738 = math.tanh %737 : vector<2x16xf32>
    %739 = arith.mulf %734, %738 : vector<2x16xf32>
    %740 = math.tanh %717 : vector<2x64xf32>
    %741 = vector.extract_strided_slice %740 {offsets = [0, 0], sizes = [2, 16], strides = [1, 1]} : vector<2x64xf32> to vector<2x16xf32>
    %cst_198 = arith.constant 5.000000e-01 : f32
    %742 = vector.broadcast %cst_198 : f32 to vector<2x16xf32>
    %743 = arith.mulf %742, %741 : vector<2x16xf32>
    %cst_199 = arith.constant 5.000000e-01 : f32
    %744 = vector.broadcast %cst_199 : f32 to vector<2x16xf32>
    %745 = arith.addf %743, %744 : vector<2x16xf32>
    %746 = vector.extract_strided_slice %740 {offsets = [0, 16], sizes = [2, 16], strides = [1, 1]} : vector<2x64xf32> to vector<2x16xf32>
    %cst_200 = arith.constant 5.000000e-01 : f32
    %747 = vector.broadcast %cst_200 : f32 to vector<2x16xf32>
    %748 = arith.mulf %747, %746 : vector<2x16xf32>
    %cst_201 = arith.constant 5.000000e-01 : f32
    %749 = vector.broadcast %cst_201 : f32 to vector<2x16xf32>
    %750 = arith.addf %748, %749 : vector<2x16xf32>
    %751 = vector.extract_strided_slice %740 {offsets = [0, 32], sizes = [2, 16], strides = [1, 1]} : vector<2x64xf32> to vector<2x16xf32>
    %752 = vector.extract_strided_slice %740 {offsets = [0, 48], sizes = [2, 16], strides = [1, 1]} : vector<2x64xf32> to vector<2x16xf32>
    %cst_202 = arith.constant 5.000000e-01 : f32
    %753 = vector.broadcast %cst_202 : f32 to vector<2x16xf32>
    %754 = arith.mulf %753, %752 : vector<2x16xf32>
    %cst_203 = arith.constant 5.000000e-01 : f32
    %755 = vector.broadcast %cst_203 : f32 to vector<2x16xf32>
    %756 = arith.addf %754, %755 : vector<2x16xf32>
    %757 = arith.mulf %750, %707 : vector<2x16xf32>
    %758 = arith.mulf %745, %751 : vector<2x16xf32>
    %759 = arith.addf %757, %758 : vector<2x16xf32>
    %760 = math.tanh %759 : vector<2x16xf32>
    %761 = arith.mulf %756, %760 : vector<2x16xf32>
    %762 = tpu.concatenate %739, %761 in 1 : vector<2x16xf32>, vector<2x16xf32> -> vector<2x32xf32>
    %cst_204 = arith.constant dense<0.000000e+00> : vector<2x128xf32>
    %763 = tpu.matmul %762, %417, %cst_204 {dimension_numbers = #tpu.dot_dimension_numbers<[1], [0], [0], [1], [0, 0, 1, 1], [], []>} : vector<2x32xf32>, vector<32x128xf32>, vector<2x128xf32> -> vector<2x128xf32>
    %764 = vector.extract_strided_slice %415 {offsets = [14, 0], sizes = [2, 64], strides = [1, 1]} : vector<16x128xf32> to vector<2x64xf32>
    %765 = vector.extract_strided_slice %763 {offsets = [0, 0], sizes = [2, 64], strides = [1, 1]} : vector<2x128xf32> to vector<2x64xf32>
    %766 = arith.addf %764, %765 : vector<2x64xf32>
    %767 = vector.extract_strided_slice %415 {offsets = [0, 64], sizes = [2, 64], strides = [1, 1]} : vector<16x128xf32> to vector<2x64xf32>
    %768 = vector.extract_strided_slice %763 {offsets = [0, 64], sizes = [2, 64], strides = [1, 1]} : vector<2x128xf32> to vector<2x64xf32>
    %769 = arith.addf %767, %768 : vector<2x64xf32>
    %770 = math.tanh %766 : vector<2x64xf32>
    %771 = vector.extract_strided_slice %770 {offsets = [0, 0], sizes = [2, 16], strides = [1, 1]} : vector<2x64xf32> to vector<2x16xf32>
    %cst_205 = arith.constant 5.000000e-01 : f32
    %772 = vector.broadcast %cst_205 : f32 to vector<2x16xf32>
    %773 = arith.mulf %772, %771 : vector<2x16xf32>
    %cst_206 = arith.constant 5.000000e-01 : f32
    %774 = vector.broadcast %cst_206 : f32 to vector<2x16xf32>
    %775 = arith.addf %773, %774 : vector<2x16xf32>
    %776 = vector.extract_strided_slice %770 {offsets = [0, 16], sizes = [2, 16], strides = [1, 1]} : vector<2x64xf32> to vector<2x16xf32>
    %cst_207 = arith.constant 5.000000e-01 : f32
    %777 = vector.broadcast %cst_207 : f32 to vector<2x16xf32>
    %778 = arith.mulf %777, %776 : vector<2x16xf32>
    %cst_208 = arith.constant 5.000000e-01 : f32
    %779 = vector.broadcast %cst_208 : f32 to vector<2x16xf32>
    %780 = arith.addf %778, %779 : vector<2x16xf32>
    %781 = vector.extract_strided_slice %770 {offsets = [0, 32], sizes = [2, 16], strides = [1, 1]} : vector<2x64xf32> to vector<2x16xf32>
    %782 = vector.extract_strided_slice %770 {offsets = [0, 48], sizes = [2, 16], strides = [1, 1]} : vector<2x64xf32> to vector<2x16xf32>
    %cst_209 = arith.constant 5.000000e-01 : f32
    %783 = vector.broadcast %cst_209 : f32 to vector<2x16xf32>
    %784 = arith.mulf %783, %782 : vector<2x16xf32>
    %cst_210 = arith.constant 5.000000e-01 : f32
    %785 = vector.broadcast %cst_210 : f32 to vector<2x16xf32>
    %786 = arith.addf %784, %785 : vector<2x16xf32>
    %787 = arith.mulf %780, %737 : vector<2x16xf32>
    %788 = arith.mulf %775, %781 : vector<2x16xf32>
    %789 = arith.addf %787, %788 : vector<2x16xf32>
    %790 = math.tanh %789 : vector<2x16xf32>
    %791 = arith.mulf %786, %790 : vector<2x16xf32>
    %792 = math.tanh %769 : vector<2x64xf32>
    %793 = vector.extract_strided_slice %792 {offsets = [0, 0], sizes = [2, 16], strides = [1, 1]} : vector<2x64xf32> to vector<2x16xf32>
    %cst_211 = arith.constant 5.000000e-01 : f32
    %794 = vector.broadcast %cst_211 : f32 to vector<2x16xf32>
    %795 = arith.mulf %794, %793 : vector<2x16xf32>
    %cst_212 = arith.constant 5.000000e-01 : f32
    %796 = vector.broadcast %cst_212 : f32 to vector<2x16xf32>
    %797 = arith.addf %795, %796 : vector<2x16xf32>
    %798 = vector.extract_strided_slice %792 {offsets = [0, 16], sizes = [2, 16], strides = [1, 1]} : vector<2x64xf32> to vector<2x16xf32>
    %cst_213 = arith.constant 5.000000e-01 : f32
    %799 = vector.broadcast %cst_213 : f32 to vector<2x16xf32>
    %800 = arith.mulf %799, %798 : vector<2x16xf32>
    %cst_214 = arith.constant 5.000000e-01 : f32
    %801 = vector.broadcast %cst_214 : f32 to vector<2x16xf32>
    %802 = arith.addf %800, %801 : vector<2x16xf32>
    %803 = vector.extract_strided_slice %792 {offsets = [0, 32], sizes = [2, 16], strides = [1, 1]} : vector<2x64xf32> to vector<2x16xf32>
    %804 = vector.extract_strided_slice %792 {offsets = [0, 48], sizes = [2, 16], strides = [1, 1]} : vector<2x64xf32> to vector<2x16xf32>
    %cst_215 = arith.constant 5.000000e-01 : f32
    %805 = vector.broadcast %cst_215 : f32 to vector<2x16xf32>
    %806 = arith.mulf %805, %804 : vector<2x16xf32>
    %cst_216 = arith.constant 5.000000e-01 : f32
    %807 = vector.broadcast %cst_216 : f32 to vector<2x16xf32>
    %808 = arith.addf %806, %807 : vector<2x16xf32>
    %809 = arith.mulf %802, %759 : vector<2x16xf32>
    %810 = arith.mulf %797, %803 : vector<2x16xf32>
    %811 = arith.addf %809, %810 : vector<2x16xf32>
    %812 = math.tanh %811 : vector<2x16xf32>
    %813 = arith.mulf %808, %812 : vector<2x16xf32>
    %814 = tpu.concatenate %434, %479, %531, %583, %635, %687, %739, %791 in 0 : vector<2x16xf32>, vector<2x16xf32>, vector<2x16xf32>, vector<2x16xf32>, vector<2x16xf32>, vector<2x16xf32>, vector<2x16xf32>, vector<2x16xf32> -> vector<16x16xf32>
    %815 = tpu.concatenate %813, %761, %709, %657, %605, %553, %501, %449 in 0 : vector<2x16xf32>, vector<2x16xf32>, vector<2x16xf32>, vector<2x16xf32>, vector<2x16xf32>, vector<2x16xf32>, vector<2x16xf32>, vector<2x16xf32> -> vector<16x16xf32>
    %816 = tpu.concatenate %814, %815 in 1 : vector<16x16xf32>, vector<16x16xf32> -> vector<16x32xf32>
    %c2 = arith.constant 2 : index
    %c0_217 = arith.constant 0 : index
    %c0_218 = arith.constant 0 : index
    %817 = vector.load %arg1[%c2, %c0_217, %c0_218] : memref<4x32x128xf32, #tpu.memory_space<vmem>>, vector<1x32x128xf32>
    %818 = vector.shape_cast %817 : vector<1x32x128xf32> to vector<32x128xf32>
    %cst_219 = arith.constant dense<0.000000e+00> : vector<16x128xf32>
    %819 = tpu.matmul %816, %818, %cst_219 {dimension_numbers = #tpu.dot_dimension_numbers<[1], [0], [0], [1], [0, 0, 1, 1], [], []>} : vector<16x32xf32>, vector<32x128xf32>, vector<16x128xf32> -> vector<16x128xf32>
    %c2_220 = arith.constant 2 : index
    %c0_221 = arith.constant 0 : index
    %c0_222 = arith.constant 0 : index
    %820 = vector.load %arg3[%c2_220, %c0_221, %c0_222] : memref<4x1x128xf32, #tpu.memory_space<vmem>>, vector<1x1x128xf32>
    %821 = vector.shape_cast %820 : vector<1x1x128xf32> to vector<1x128xf32>
    %822 = vector.broadcast %821 : vector<1x128xf32> to vector<16x128xf32>
    %823 = arith.addf %819, %822 : vector<16x128xf32>
    %c2_223 = arith.constant 2 : index
    %c0_224 = arith.constant 0 : index
    %c0_225 = arith.constant 0 : index
    %824 = vector.load %arg2[%c2_223, %c0_224, %c0_225] : memref<4x32x128xf32, #tpu.memory_space<vmem>>, vector<1x32x128xf32>
    %825 = vector.shape_cast %824 : vector<1x32x128xf32> to vector<32x128xf32>
    %826 = vector.extract_strided_slice %823 {offsets = [0, 0], sizes = [2, 64], strides = [1, 1]} : vector<16x128xf32> to vector<2x64xf32>
    %827 = vector.extract_strided_slice %823 {offsets = [14, 64], sizes = [2, 64], strides = [1, 1]} : vector<16x128xf32> to vector<2x64xf32>
    %828 = math.tanh %826 : vector<2x64xf32>
    %829 = vector.extract_strided_slice %828 {offsets = [0, 0], sizes = [2, 16], strides = [1, 1]} : vector<2x64xf32> to vector<2x16xf32>
    %cst_226 = arith.constant 5.000000e-01 : f32
    %830 = vector.broadcast %cst_226 : f32 to vector<2x16xf32>
    %831 = arith.mulf %830, %829 : vector<2x16xf32>
    %cst_227 = arith.constant 5.000000e-01 : f32
    %832 = vector.broadcast %cst_227 : f32 to vector<2x16xf32>
    %833 = arith.addf %831, %832 : vector<2x16xf32>
    %834 = vector.extract_strided_slice %828 {offsets = [0, 32], sizes = [2, 16], strides = [1, 1]} : vector<2x64xf32> to vector<2x16xf32>
    %835 = vector.extract_strided_slice %828 {offsets = [0, 48], sizes = [2, 16], strides = [1, 1]} : vector<2x64xf32> to vector<2x16xf32>
    %cst_228 = arith.constant 5.000000e-01 : f32
    %836 = vector.broadcast %cst_228 : f32 to vector<2x16xf32>
    %837 = arith.mulf %836, %835 : vector<2x16xf32>
    %cst_229 = arith.constant 5.000000e-01 : f32
    %838 = vector.broadcast %cst_229 : f32 to vector<2x16xf32>
    %839 = arith.addf %837, %838 : vector<2x16xf32>
    %840 = arith.mulf %833, %834 : vector<2x16xf32>
    %841 = math.tanh %840 : vector<2x16xf32>
    %842 = arith.mulf %839, %841 : vector<2x16xf32>
    %843 = math.tanh %827 : vector<2x64xf32>
    %844 = vector.extract_strided_slice %843 {offsets = [0, 0], sizes = [2, 16], strides = [1, 1]} : vector<2x64xf32> to vector<2x16xf32>
    %cst_230 = arith.constant 5.000000e-01 : f32
    %845 = vector.broadcast %cst_230 : f32 to vector<2x16xf32>
    %846 = arith.mulf %845, %844 : vector<2x16xf32>
    %cst_231 = arith.constant 5.000000e-01 : f32
    %847 = vector.broadcast %cst_231 : f32 to vector<2x16xf32>
    %848 = arith.addf %846, %847 : vector<2x16xf32>
    %849 = vector.extract_strided_slice %843 {offsets = [0, 32], sizes = [2, 16], strides = [1, 1]} : vector<2x64xf32> to vector<2x16xf32>
    %850 = vector.extract_strided_slice %843 {offsets = [0, 48], sizes = [2, 16], strides = [1, 1]} : vector<2x64xf32> to vector<2x16xf32>
    %cst_232 = arith.constant 5.000000e-01 : f32
    %851 = vector.broadcast %cst_232 : f32 to vector<2x16xf32>
    %852 = arith.mulf %851, %850 : vector<2x16xf32>
    %cst_233 = arith.constant 5.000000e-01 : f32
    %853 = vector.broadcast %cst_233 : f32 to vector<2x16xf32>
    %854 = arith.addf %852, %853 : vector<2x16xf32>
    %855 = arith.mulf %848, %849 : vector<2x16xf32>
    %856 = math.tanh %855 : vector<2x16xf32>
    %857 = arith.mulf %854, %856 : vector<2x16xf32>
    %858 = tpu.concatenate %842, %857 in 1 : vector<2x16xf32>, vector<2x16xf32> -> vector<2x32xf32>
    %cst_234 = arith.constant dense<0.000000e+00> : vector<2x128xf32>
    %859 = tpu.matmul %858, %825, %cst_234 {dimension_numbers = #tpu.dot_dimension_numbers<[1], [0], [0], [1], [0, 0, 1, 1], [], []>} : vector<2x32xf32>, vector<32x128xf32>, vector<2x128xf32> -> vector<2x128xf32>
    %860 = vector.extract_strided_slice %823 {offsets = [2, 0], sizes = [2, 64], strides = [1, 1]} : vector<16x128xf32> to vector<2x64xf32>
    %861 = vector.extract_strided_slice %859 {offsets = [0, 0], sizes = [2, 64], strides = [1, 1]} : vector<2x128xf32> to vector<2x64xf32>
    %862 = arith.addf %860, %861 : vector<2x64xf32>
    %863 = vector.extract_strided_slice %823 {offsets = [12, 64], sizes = [2, 64], strides = [1, 1]} : vector<16x128xf32> to vector<2x64xf32>
    %864 = vector.extract_strided_slice %859 {offsets = [0, 64], sizes = [2, 64], strides = [1, 1]} : vector<2x128xf32> to vector<2x64xf32>
    %865 = arith.addf %863, %864 : vector<2x64xf32>
    %866 = math.tanh %862 : vector<2x64xf32>
    %867 = vector.extract_strided_slice %866 {offsets = [0, 0], sizes = [2, 16], strides = [1, 1]} : vector<2x64xf32> to vector<2x16xf32>
    %cst_235 = arith.constant 5.000000e-01 : f32
    %868 = vector.broadcast %cst_235 : f32 to vector<2x16xf32>
    %869 = arith.mulf %868, %867 : vector<2x16xf32>
    %cst_236 = arith.constant 5.000000e-01 : f32
    %870 = vector.broadcast %cst_236 : f32 to vector<2x16xf32>
    %871 = arith.addf %869, %870 : vector<2x16xf32>
    %872 = vector.extract_strided_slice %866 {offsets = [0, 16], sizes = [2, 16], strides = [1, 1]} : vector<2x64xf32> to vector<2x16xf32>
    %cst_237 = arith.constant 5.000000e-01 : f32
    %873 = vector.broadcast %cst_237 : f32 to vector<2x16xf32>
    %874 = arith.mulf %873, %872 : vector<2x16xf32>
    %cst_238 = arith.constant 5.000000e-01 : f32
    %875 = vector.broadcast %cst_238 : f32 to vector<2x16xf32>
    %876 = arith.addf %874, %875 : vector<2x16xf32>
    %877 = vector.extract_strided_slice %866 {offsets = [0, 32], sizes = [2, 16], strides = [1, 1]} : vector<2x64xf32> to vector<2x16xf32>
    %878 = vector.extract_strided_slice %866 {offsets = [0, 48], sizes = [2, 16], strides = [1, 1]} : vector<2x64xf32> to vector<2x16xf32>
    %cst_239 = arith.constant 5.000000e-01 : f32
    %879 = vector.broadcast %cst_239 : f32 to vector<2x16xf32>
    %880 = arith.mulf %879, %878 : vector<2x16xf32>
    %cst_240 = arith.constant 5.000000e-01 : f32
    %881 = vector.broadcast %cst_240 : f32 to vector<2x16xf32>
    %882 = arith.addf %880, %881 : vector<2x16xf32>
    %883 = arith.mulf %876, %840 : vector<2x16xf32>
    %884 = arith.mulf %871, %877 : vector<2x16xf32>
    %885 = arith.addf %883, %884 : vector<2x16xf32>
    %886 = math.tanh %885 : vector<2x16xf32>
    %887 = arith.mulf %882, %886 : vector<2x16xf32>
    %888 = math.tanh %865 : vector<2x64xf32>
    %889 = vector.extract_strided_slice %888 {offsets = [0, 0], sizes = [2, 16], strides = [1, 1]} : vector<2x64xf32> to vector<2x16xf32>
    %cst_241 = arith.constant 5.000000e-01 : f32
    %890 = vector.broadcast %cst_241 : f32 to vector<2x16xf32>
    %891 = arith.mulf %890, %889 : vector<2x16xf32>
    %cst_242 = arith.constant 5.000000e-01 : f32
    %892 = vector.broadcast %cst_242 : f32 to vector<2x16xf32>
    %893 = arith.addf %891, %892 : vector<2x16xf32>
    %894 = vector.extract_strided_slice %888 {offsets = [0, 16], sizes = [2, 16], strides = [1, 1]} : vector<2x64xf32> to vector<2x16xf32>
    %cst_243 = arith.constant 5.000000e-01 : f32
    %895 = vector.broadcast %cst_243 : f32 to vector<2x16xf32>
    %896 = arith.mulf %895, %894 : vector<2x16xf32>
    %cst_244 = arith.constant 5.000000e-01 : f32
    %897 = vector.broadcast %cst_244 : f32 to vector<2x16xf32>
    %898 = arith.addf %896, %897 : vector<2x16xf32>
    %899 = vector.extract_strided_slice %888 {offsets = [0, 32], sizes = [2, 16], strides = [1, 1]} : vector<2x64xf32> to vector<2x16xf32>
    %900 = vector.extract_strided_slice %888 {offsets = [0, 48], sizes = [2, 16], strides = [1, 1]} : vector<2x64xf32> to vector<2x16xf32>
    %cst_245 = arith.constant 5.000000e-01 : f32
    %901 = vector.broadcast %cst_245 : f32 to vector<2x16xf32>
    %902 = arith.mulf %901, %900 : vector<2x16xf32>
    %cst_246 = arith.constant 5.000000e-01 : f32
    %903 = vector.broadcast %cst_246 : f32 to vector<2x16xf32>
    %904 = arith.addf %902, %903 : vector<2x16xf32>
    %905 = arith.mulf %898, %855 : vector<2x16xf32>
    %906 = arith.mulf %893, %899 : vector<2x16xf32>
    %907 = arith.addf %905, %906 : vector<2x16xf32>
    %908 = math.tanh %907 : vector<2x16xf32>
    %909 = arith.mulf %904, %908 : vector<2x16xf32>
    %910 = tpu.concatenate %887, %909 in 1 : vector<2x16xf32>, vector<2x16xf32> -> vector<2x32xf32>
    %cst_247 = arith.constant dense<0.000000e+00> : vector<2x128xf32>
    %911 = tpu.matmul %910, %825, %cst_247 {dimension_numbers = #tpu.dot_dimension_numbers<[1], [0], [0], [1], [0, 0, 1, 1], [], []>} : vector<2x32xf32>, vector<32x128xf32>, vector<2x128xf32> -> vector<2x128xf32>
    %912 = vector.extract_strided_slice %823 {offsets = [4, 0], sizes = [2, 64], strides = [1, 1]} : vector<16x128xf32> to vector<2x64xf32>
    %913 = vector.extract_strided_slice %911 {offsets = [0, 0], sizes = [2, 64], strides = [1, 1]} : vector<2x128xf32> to vector<2x64xf32>
    %914 = arith.addf %912, %913 : vector<2x64xf32>
    %915 = vector.extract_strided_slice %823 {offsets = [10, 64], sizes = [2, 64], strides = [1, 1]} : vector<16x128xf32> to vector<2x64xf32>
    %916 = vector.extract_strided_slice %911 {offsets = [0, 64], sizes = [2, 64], strides = [1, 1]} : vector<2x128xf32> to vector<2x64xf32>
    %917 = arith.addf %915, %916 : vector<2x64xf32>
    %918 = math.tanh %914 : vector<2x64xf32>
    %919 = vector.extract_strided_slice %918 {offsets = [0, 0], sizes = [2, 16], strides = [1, 1]} : vector<2x64xf32> to vector<2x16xf32>
    %cst_248 = arith.constant 5.000000e-01 : f32
    %920 = vector.broadcast %cst_248 : f32 to vector<2x16xf32>
    %921 = arith.mulf %920, %919 : vector<2x16xf32>
    %cst_249 = arith.constant 5.000000e-01 : f32
    %922 = vector.broadcast %cst_249 : f32 to vector<2x16xf32>
    %923 = arith.addf %921, %922 : vector<2x16xf32>
    %924 = vector.extract_strided_slice %918 {offsets = [0, 16], sizes = [2, 16], strides = [1, 1]} : vector<2x64xf32> to vector<2x16xf32>
    %cst_250 = arith.constant 5.000000e-01 : f32
    %925 = vector.broadcast %cst_250 : f32 to vector<2x16xf32>
    %926 = arith.mulf %925, %924 : vector<2x16xf32>
    %cst_251 = arith.constant 5.000000e-01 : f32
    %927 = vector.broadcast %cst_251 : f32 to vector<2x16xf32>
    %928 = arith.addf %926, %927 : vector<2x16xf32>
    %929 = vector.extract_strided_slice %918 {offsets = [0, 32], sizes = [2, 16], strides = [1, 1]} : vector<2x64xf32> to vector<2x16xf32>
    %930 = vector.extract_strided_slice %918 {offsets = [0, 48], sizes = [2, 16], strides = [1, 1]} : vector<2x64xf32> to vector<2x16xf32>
    %cst_252 = arith.constant 5.000000e-01 : f32
    %931 = vector.broadcast %cst_252 : f32 to vector<2x16xf32>
    %932 = arith.mulf %931, %930 : vector<2x16xf32>
    %cst_253 = arith.constant 5.000000e-01 : f32
    %933 = vector.broadcast %cst_253 : f32 to vector<2x16xf32>
    %934 = arith.addf %932, %933 : vector<2x16xf32>
    %935 = arith.mulf %928, %885 : vector<2x16xf32>
    %936 = arith.mulf %923, %929 : vector<2x16xf32>
    %937 = arith.addf %935, %936 : vector<2x16xf32>
    %938 = math.tanh %937 : vector<2x16xf32>
    %939 = arith.mulf %934, %938 : vector<2x16xf32>
    %940 = math.tanh %917 : vector<2x64xf32>
    %941 = vector.extract_strided_slice %940 {offsets = [0, 0], sizes = [2, 16], strides = [1, 1]} : vector<2x64xf32> to vector<2x16xf32>
    %cst_254 = arith.constant 5.000000e-01 : f32
    %942 = vector.broadcast %cst_254 : f32 to vector<2x16xf32>
    %943 = arith.mulf %942, %941 : vector<2x16xf32>
    %cst_255 = arith.constant 5.000000e-01 : f32
    %944 = vector.broadcast %cst_255 : f32 to vector<2x16xf32>
    %945 = arith.addf %943, %944 : vector<2x16xf32>
    %946 = vector.extract_strided_slice %940 {offsets = [0, 16], sizes = [2, 16], strides = [1, 1]} : vector<2x64xf32> to vector<2x16xf32>
    %cst_256 = arith.constant 5.000000e-01 : f32
    %947 = vector.broadcast %cst_256 : f32 to vector<2x16xf32>
    %948 = arith.mulf %947, %946 : vector<2x16xf32>
    %cst_257 = arith.constant 5.000000e-01 : f32
    %949 = vector.broadcast %cst_257 : f32 to vector<2x16xf32>
    %950 = arith.addf %948, %949 : vector<2x16xf32>
    %951 = vector.extract_strided_slice %940 {offsets = [0, 32], sizes = [2, 16], strides = [1, 1]} : vector<2x64xf32> to vector<2x16xf32>
    %952 = vector.extract_strided_slice %940 {offsets = [0, 48], sizes = [2, 16], strides = [1, 1]} : vector<2x64xf32> to vector<2x16xf32>
    %cst_258 = arith.constant 5.000000e-01 : f32
    %953 = vector.broadcast %cst_258 : f32 to vector<2x16xf32>
    %954 = arith.mulf %953, %952 : vector<2x16xf32>
    %cst_259 = arith.constant 5.000000e-01 : f32
    %955 = vector.broadcast %cst_259 : f32 to vector<2x16xf32>
    %956 = arith.addf %954, %955 : vector<2x16xf32>
    %957 = arith.mulf %950, %907 : vector<2x16xf32>
    %958 = arith.mulf %945, %951 : vector<2x16xf32>
    %959 = arith.addf %957, %958 : vector<2x16xf32>
    %960 = math.tanh %959 : vector<2x16xf32>
    %961 = arith.mulf %956, %960 : vector<2x16xf32>
    %962 = tpu.concatenate %939, %961 in 1 : vector<2x16xf32>, vector<2x16xf32> -> vector<2x32xf32>
    %cst_260 = arith.constant dense<0.000000e+00> : vector<2x128xf32>
    %963 = tpu.matmul %962, %825, %cst_260 {dimension_numbers = #tpu.dot_dimension_numbers<[1], [0], [0], [1], [0, 0, 1, 1], [], []>} : vector<2x32xf32>, vector<32x128xf32>, vector<2x128xf32> -> vector<2x128xf32>
    %964 = vector.extract_strided_slice %823 {offsets = [6, 0], sizes = [2, 64], strides = [1, 1]} : vector<16x128xf32> to vector<2x64xf32>
    %965 = vector.extract_strided_slice %963 {offsets = [0, 0], sizes = [2, 64], strides = [1, 1]} : vector<2x128xf32> to vector<2x64xf32>
    %966 = arith.addf %964, %965 : vector<2x64xf32>
    %967 = vector.extract_strided_slice %823 {offsets = [8, 64], sizes = [2, 64], strides = [1, 1]} : vector<16x128xf32> to vector<2x64xf32>
    %968 = vector.extract_strided_slice %963 {offsets = [0, 64], sizes = [2, 64], strides = [1, 1]} : vector<2x128xf32> to vector<2x64xf32>
    %969 = arith.addf %967, %968 : vector<2x64xf32>
    %970 = math.tanh %966 : vector<2x64xf32>
    %971 = vector.extract_strided_slice %970 {offsets = [0, 0], sizes = [2, 16], strides = [1, 1]} : vector<2x64xf32> to vector<2x16xf32>
    %cst_261 = arith.constant 5.000000e-01 : f32
    %972 = vector.broadcast %cst_261 : f32 to vector<2x16xf32>
    %973 = arith.mulf %972, %971 : vector<2x16xf32>
    %cst_262 = arith.constant 5.000000e-01 : f32
    %974 = vector.broadcast %cst_262 : f32 to vector<2x16xf32>
    %975 = arith.addf %973, %974 : vector<2x16xf32>
    %976 = vector.extract_strided_slice %970 {offsets = [0, 16], sizes = [2, 16], strides = [1, 1]} : vector<2x64xf32> to vector<2x16xf32>
    %cst_263 = arith.constant 5.000000e-01 : f32
    %977 = vector.broadcast %cst_263 : f32 to vector<2x16xf32>
    %978 = arith.mulf %977, %976 : vector<2x16xf32>
    %cst_264 = arith.constant 5.000000e-01 : f32
    %979 = vector.broadcast %cst_264 : f32 to vector<2x16xf32>
    %980 = arith.addf %978, %979 : vector<2x16xf32>
    %981 = vector.extract_strided_slice %970 {offsets = [0, 32], sizes = [2, 16], strides = [1, 1]} : vector<2x64xf32> to vector<2x16xf32>
    %982 = vector.extract_strided_slice %970 {offsets = [0, 48], sizes = [2, 16], strides = [1, 1]} : vector<2x64xf32> to vector<2x16xf32>
    %cst_265 = arith.constant 5.000000e-01 : f32
    %983 = vector.broadcast %cst_265 : f32 to vector<2x16xf32>
    %984 = arith.mulf %983, %982 : vector<2x16xf32>
    %cst_266 = arith.constant 5.000000e-01 : f32
    %985 = vector.broadcast %cst_266 : f32 to vector<2x16xf32>
    %986 = arith.addf %984, %985 : vector<2x16xf32>
    %987 = arith.mulf %980, %937 : vector<2x16xf32>
    %988 = arith.mulf %975, %981 : vector<2x16xf32>
    %989 = arith.addf %987, %988 : vector<2x16xf32>
    %990 = math.tanh %989 : vector<2x16xf32>
    %991 = arith.mulf %986, %990 : vector<2x16xf32>
    %992 = math.tanh %969 : vector<2x64xf32>
    %993 = vector.extract_strided_slice %992 {offsets = [0, 0], sizes = [2, 16], strides = [1, 1]} : vector<2x64xf32> to vector<2x16xf32>
    %cst_267 = arith.constant 5.000000e-01 : f32
    %994 = vector.broadcast %cst_267 : f32 to vector<2x16xf32>
    %995 = arith.mulf %994, %993 : vector<2x16xf32>
    %cst_268 = arith.constant 5.000000e-01 : f32
    %996 = vector.broadcast %cst_268 : f32 to vector<2x16xf32>
    %997 = arith.addf %995, %996 : vector<2x16xf32>
    %998 = vector.extract_strided_slice %992 {offsets = [0, 16], sizes = [2, 16], strides = [1, 1]} : vector<2x64xf32> to vector<2x16xf32>
    %cst_269 = arith.constant 5.000000e-01 : f32
    %999 = vector.broadcast %cst_269 : f32 to vector<2x16xf32>
    %1000 = arith.mulf %999, %998 : vector<2x16xf32>
    %cst_270 = arith.constant 5.000000e-01 : f32
    %1001 = vector.broadcast %cst_270 : f32 to vector<2x16xf32>
    %1002 = arith.addf %1000, %1001 : vector<2x16xf32>
    %1003 = vector.extract_strided_slice %992 {offsets = [0, 32], sizes = [2, 16], strides = [1, 1]} : vector<2x64xf32> to vector<2x16xf32>
    %1004 = vector.extract_strided_slice %992 {offsets = [0, 48], sizes = [2, 16], strides = [1, 1]} : vector<2x64xf32> to vector<2x16xf32>
    %cst_271 = arith.constant 5.000000e-01 : f32
    %1005 = vector.broadcast %cst_271 : f32 to vector<2x16xf32>
    %1006 = arith.mulf %1005, %1004 : vector<2x16xf32>
    %cst_272 = arith.constant 5.000000e-01 : f32
    %1007 = vector.broadcast %cst_272 : f32 to vector<2x16xf32>
    %1008 = arith.addf %1006, %1007 : vector<2x16xf32>
    %1009 = arith.mulf %1002, %959 : vector<2x16xf32>
    %1010 = arith.mulf %997, %1003 : vector<2x16xf32>
    %1011 = arith.addf %1009, %1010 : vector<2x16xf32>
    %1012 = math.tanh %1011 : vector<2x16xf32>
    %1013 = arith.mulf %1008, %1012 : vector<2x16xf32>
    %1014 = tpu.concatenate %991, %1013 in 1 : vector<2x16xf32>, vector<2x16xf32> -> vector<2x32xf32>
    %cst_273 = arith.constant dense<0.000000e+00> : vector<2x128xf32>
    %1015 = tpu.matmul %1014, %825, %cst_273 {dimension_numbers = #tpu.dot_dimension_numbers<[1], [0], [0], [1], [0, 0, 1, 1], [], []>} : vector<2x32xf32>, vector<32x128xf32>, vector<2x128xf32> -> vector<2x128xf32>
    %1016 = vector.extract_strided_slice %823 {offsets = [8, 0], sizes = [2, 64], strides = [1, 1]} : vector<16x128xf32> to vector<2x64xf32>
    %1017 = vector.extract_strided_slice %1015 {offsets = [0, 0], sizes = [2, 64], strides = [1, 1]} : vector<2x128xf32> to vector<2x64xf32>
    %1018 = arith.addf %1016, %1017 : vector<2x64xf32>
    %1019 = vector.extract_strided_slice %823 {offsets = [6, 64], sizes = [2, 64], strides = [1, 1]} : vector<16x128xf32> to vector<2x64xf32>
    %1020 = vector.extract_strided_slice %1015 {offsets = [0, 64], sizes = [2, 64], strides = [1, 1]} : vector<2x128xf32> to vector<2x64xf32>
    %1021 = arith.addf %1019, %1020 : vector<2x64xf32>
    %1022 = math.tanh %1018 : vector<2x64xf32>
    %1023 = vector.extract_strided_slice %1022 {offsets = [0, 0], sizes = [2, 16], strides = [1, 1]} : vector<2x64xf32> to vector<2x16xf32>
    %cst_274 = arith.constant 5.000000e-01 : f32
    %1024 = vector.broadcast %cst_274 : f32 to vector<2x16xf32>
    %1025 = arith.mulf %1024, %1023 : vector<2x16xf32>
    %cst_275 = arith.constant 5.000000e-01 : f32
    %1026 = vector.broadcast %cst_275 : f32 to vector<2x16xf32>
    %1027 = arith.addf %1025, %1026 : vector<2x16xf32>
    %1028 = vector.extract_strided_slice %1022 {offsets = [0, 16], sizes = [2, 16], strides = [1, 1]} : vector<2x64xf32> to vector<2x16xf32>
    %cst_276 = arith.constant 5.000000e-01 : f32
    %1029 = vector.broadcast %cst_276 : f32 to vector<2x16xf32>
    %1030 = arith.mulf %1029, %1028 : vector<2x16xf32>
    %cst_277 = arith.constant 5.000000e-01 : f32
    %1031 = vector.broadcast %cst_277 : f32 to vector<2x16xf32>
    %1032 = arith.addf %1030, %1031 : vector<2x16xf32>
    %1033 = vector.extract_strided_slice %1022 {offsets = [0, 32], sizes = [2, 16], strides = [1, 1]} : vector<2x64xf32> to vector<2x16xf32>
    %1034 = vector.extract_strided_slice %1022 {offsets = [0, 48], sizes = [2, 16], strides = [1, 1]} : vector<2x64xf32> to vector<2x16xf32>
    %cst_278 = arith.constant 5.000000e-01 : f32
    %1035 = vector.broadcast %cst_278 : f32 to vector<2x16xf32>
    %1036 = arith.mulf %1035, %1034 : vector<2x16xf32>
    %cst_279 = arith.constant 5.000000e-01 : f32
    %1037 = vector.broadcast %cst_279 : f32 to vector<2x16xf32>
    %1038 = arith.addf %1036, %1037 : vector<2x16xf32>
    %1039 = arith.mulf %1032, %989 : vector<2x16xf32>
    %1040 = arith.mulf %1027, %1033 : vector<2x16xf32>
    %1041 = arith.addf %1039, %1040 : vector<2x16xf32>
    %1042 = math.tanh %1041 : vector<2x16xf32>
    %1043 = arith.mulf %1038, %1042 : vector<2x16xf32>
    %1044 = math.tanh %1021 : vector<2x64xf32>
    %1045 = vector.extract_strided_slice %1044 {offsets = [0, 0], sizes = [2, 16], strides = [1, 1]} : vector<2x64xf32> to vector<2x16xf32>
    %cst_280 = arith.constant 5.000000e-01 : f32
    %1046 = vector.broadcast %cst_280 : f32 to vector<2x16xf32>
    %1047 = arith.mulf %1046, %1045 : vector<2x16xf32>
    %cst_281 = arith.constant 5.000000e-01 : f32
    %1048 = vector.broadcast %cst_281 : f32 to vector<2x16xf32>
    %1049 = arith.addf %1047, %1048 : vector<2x16xf32>
    %1050 = vector.extract_strided_slice %1044 {offsets = [0, 16], sizes = [2, 16], strides = [1, 1]} : vector<2x64xf32> to vector<2x16xf32>
    %cst_282 = arith.constant 5.000000e-01 : f32
    %1051 = vector.broadcast %cst_282 : f32 to vector<2x16xf32>
    %1052 = arith.mulf %1051, %1050 : vector<2x16xf32>
    %cst_283 = arith.constant 5.000000e-01 : f32
    %1053 = vector.broadcast %cst_283 : f32 to vector<2x16xf32>
    %1054 = arith.addf %1052, %1053 : vector<2x16xf32>
    %1055 = vector.extract_strided_slice %1044 {offsets = [0, 32], sizes = [2, 16], strides = [1, 1]} : vector<2x64xf32> to vector<2x16xf32>
    %1056 = vector.extract_strided_slice %1044 {offsets = [0, 48], sizes = [2, 16], strides = [1, 1]} : vector<2x64xf32> to vector<2x16xf32>
    %cst_284 = arith.constant 5.000000e-01 : f32
    %1057 = vector.broadcast %cst_284 : f32 to vector<2x16xf32>
    %1058 = arith.mulf %1057, %1056 : vector<2x16xf32>
    %cst_285 = arith.constant 5.000000e-01 : f32
    %1059 = vector.broadcast %cst_285 : f32 to vector<2x16xf32>
    %1060 = arith.addf %1058, %1059 : vector<2x16xf32>
    %1061 = arith.mulf %1054, %1011 : vector<2x16xf32>
    %1062 = arith.mulf %1049, %1055 : vector<2x16xf32>
    %1063 = arith.addf %1061, %1062 : vector<2x16xf32>
    %1064 = math.tanh %1063 : vector<2x16xf32>
    %1065 = arith.mulf %1060, %1064 : vector<2x16xf32>
    %1066 = tpu.concatenate %1043, %1065 in 1 : vector<2x16xf32>, vector<2x16xf32> -> vector<2x32xf32>
    %cst_286 = arith.constant dense<0.000000e+00> : vector<2x128xf32>
    %1067 = tpu.matmul %1066, %825, %cst_286 {dimension_numbers = #tpu.dot_dimension_numbers<[1], [0], [0], [1], [0, 0, 1, 1], [], []>} : vector<2x32xf32>, vector<32x128xf32>, vector<2x128xf32> -> vector<2x128xf32>
    %1068 = vector.extract_strided_slice %823 {offsets = [10, 0], sizes = [2, 64], strides = [1, 1]} : vector<16x128xf32> to vector<2x64xf32>
    %1069 = vector.extract_strided_slice %1067 {offsets = [0, 0], sizes = [2, 64], strides = [1, 1]} : vector<2x128xf32> to vector<2x64xf32>
    %1070 = arith.addf %1068, %1069 : vector<2x64xf32>
    %1071 = vector.extract_strided_slice %823 {offsets = [4, 64], sizes = [2, 64], strides = [1, 1]} : vector<16x128xf32> to vector<2x64xf32>
    %1072 = vector.extract_strided_slice %1067 {offsets = [0, 64], sizes = [2, 64], strides = [1, 1]} : vector<2x128xf32> to vector<2x64xf32>
    %1073 = arith.addf %1071, %1072 : vector<2x64xf32>
    %1074 = math.tanh %1070 : vector<2x64xf32>
    %1075 = vector.extract_strided_slice %1074 {offsets = [0, 0], sizes = [2, 16], strides = [1, 1]} : vector<2x64xf32> to vector<2x16xf32>
    %cst_287 = arith.constant 5.000000e-01 : f32
    %1076 = vector.broadcast %cst_287 : f32 to vector<2x16xf32>
    %1077 = arith.mulf %1076, %1075 : vector<2x16xf32>
    %cst_288 = arith.constant 5.000000e-01 : f32
    %1078 = vector.broadcast %cst_288 : f32 to vector<2x16xf32>
    %1079 = arith.addf %1077, %1078 : vector<2x16xf32>
    %1080 = vector.extract_strided_slice %1074 {offsets = [0, 16], sizes = [2, 16], strides = [1, 1]} : vector<2x64xf32> to vector<2x16xf32>
    %cst_289 = arith.constant 5.000000e-01 : f32
    %1081 = vector.broadcast %cst_289 : f32 to vector<2x16xf32>
    %1082 = arith.mulf %1081, %1080 : vector<2x16xf32>
    %cst_290 = arith.constant 5.000000e-01 : f32
    %1083 = vector.broadcast %cst_290 : f32 to vector<2x16xf32>
    %1084 = arith.addf %1082, %1083 : vector<2x16xf32>
    %1085 = vector.extract_strided_slice %1074 {offsets = [0, 32], sizes = [2, 16], strides = [1, 1]} : vector<2x64xf32> to vector<2x16xf32>
    %1086 = vector.extract_strided_slice %1074 {offsets = [0, 48], sizes = [2, 16], strides = [1, 1]} : vector<2x64xf32> to vector<2x16xf32>
    %cst_291 = arith.constant 5.000000e-01 : f32
    %1087 = vector.broadcast %cst_291 : f32 to vector<2x16xf32>
    %1088 = arith.mulf %1087, %1086 : vector<2x16xf32>
    %cst_292 = arith.constant 5.000000e-01 : f32
    %1089 = vector.broadcast %cst_292 : f32 to vector<2x16xf32>
    %1090 = arith.addf %1088, %1089 : vector<2x16xf32>
    %1091 = arith.mulf %1084, %1041 : vector<2x16xf32>
    %1092 = arith.mulf %1079, %1085 : vector<2x16xf32>
    %1093 = arith.addf %1091, %1092 : vector<2x16xf32>
    %1094 = math.tanh %1093 : vector<2x16xf32>
    %1095 = arith.mulf %1090, %1094 : vector<2x16xf32>
    %1096 = math.tanh %1073 : vector<2x64xf32>
    %1097 = vector.extract_strided_slice %1096 {offsets = [0, 0], sizes = [2, 16], strides = [1, 1]} : vector<2x64xf32> to vector<2x16xf32>
    %cst_293 = arith.constant 5.000000e-01 : f32
    %1098 = vector.broadcast %cst_293 : f32 to vector<2x16xf32>
    %1099 = arith.mulf %1098, %1097 : vector<2x16xf32>
    %cst_294 = arith.constant 5.000000e-01 : f32
    %1100 = vector.broadcast %cst_294 : f32 to vector<2x16xf32>
    %1101 = arith.addf %1099, %1100 : vector<2x16xf32>
    %1102 = vector.extract_strided_slice %1096 {offsets = [0, 16], sizes = [2, 16], strides = [1, 1]} : vector<2x64xf32> to vector<2x16xf32>
    %cst_295 = arith.constant 5.000000e-01 : f32
    %1103 = vector.broadcast %cst_295 : f32 to vector<2x16xf32>
    %1104 = arith.mulf %1103, %1102 : vector<2x16xf32>
    %cst_296 = arith.constant 5.000000e-01 : f32
    %1105 = vector.broadcast %cst_296 : f32 to vector<2x16xf32>
    %1106 = arith.addf %1104, %1105 : vector<2x16xf32>
    %1107 = vector.extract_strided_slice %1096 {offsets = [0, 32], sizes = [2, 16], strides = [1, 1]} : vector<2x64xf32> to vector<2x16xf32>
    %1108 = vector.extract_strided_slice %1096 {offsets = [0, 48], sizes = [2, 16], strides = [1, 1]} : vector<2x64xf32> to vector<2x16xf32>
    %cst_297 = arith.constant 5.000000e-01 : f32
    %1109 = vector.broadcast %cst_297 : f32 to vector<2x16xf32>
    %1110 = arith.mulf %1109, %1108 : vector<2x16xf32>
    %cst_298 = arith.constant 5.000000e-01 : f32
    %1111 = vector.broadcast %cst_298 : f32 to vector<2x16xf32>
    %1112 = arith.addf %1110, %1111 : vector<2x16xf32>
    %1113 = arith.mulf %1106, %1063 : vector<2x16xf32>
    %1114 = arith.mulf %1101, %1107 : vector<2x16xf32>
    %1115 = arith.addf %1113, %1114 : vector<2x16xf32>
    %1116 = math.tanh %1115 : vector<2x16xf32>
    %1117 = arith.mulf %1112, %1116 : vector<2x16xf32>
    %1118 = tpu.concatenate %1095, %1117 in 1 : vector<2x16xf32>, vector<2x16xf32> -> vector<2x32xf32>
    %cst_299 = arith.constant dense<0.000000e+00> : vector<2x128xf32>
    %1119 = tpu.matmul %1118, %825, %cst_299 {dimension_numbers = #tpu.dot_dimension_numbers<[1], [0], [0], [1], [0, 0, 1, 1], [], []>} : vector<2x32xf32>, vector<32x128xf32>, vector<2x128xf32> -> vector<2x128xf32>
    %1120 = vector.extract_strided_slice %823 {offsets = [12, 0], sizes = [2, 64], strides = [1, 1]} : vector<16x128xf32> to vector<2x64xf32>
    %1121 = vector.extract_strided_slice %1119 {offsets = [0, 0], sizes = [2, 64], strides = [1, 1]} : vector<2x128xf32> to vector<2x64xf32>
    %1122 = arith.addf %1120, %1121 : vector<2x64xf32>
    %1123 = vector.extract_strided_slice %823 {offsets = [2, 64], sizes = [2, 64], strides = [1, 1]} : vector<16x128xf32> to vector<2x64xf32>
    %1124 = vector.extract_strided_slice %1119 {offsets = [0, 64], sizes = [2, 64], strides = [1, 1]} : vector<2x128xf32> to vector<2x64xf32>
    %1125 = arith.addf %1123, %1124 : vector<2x64xf32>
    %1126 = math.tanh %1122 : vector<2x64xf32>
    %1127 = vector.extract_strided_slice %1126 {offsets = [0, 0], sizes = [2, 16], strides = [1, 1]} : vector<2x64xf32> to vector<2x16xf32>
    %cst_300 = arith.constant 5.000000e-01 : f32
    %1128 = vector.broadcast %cst_300 : f32 to vector<2x16xf32>
    %1129 = arith.mulf %1128, %1127 : vector<2x16xf32>
    %cst_301 = arith.constant 5.000000e-01 : f32
    %1130 = vector.broadcast %cst_301 : f32 to vector<2x16xf32>
    %1131 = arith.addf %1129, %1130 : vector<2x16xf32>
    %1132 = vector.extract_strided_slice %1126 {offsets = [0, 16], sizes = [2, 16], strides = [1, 1]} : vector<2x64xf32> to vector<2x16xf32>
    %cst_302 = arith.constant 5.000000e-01 : f32
    %1133 = vector.broadcast %cst_302 : f32 to vector<2x16xf32>
    %1134 = arith.mulf %1133, %1132 : vector<2x16xf32>
    %cst_303 = arith.constant 5.000000e-01 : f32
    %1135 = vector.broadcast %cst_303 : f32 to vector<2x16xf32>
    %1136 = arith.addf %1134, %1135 : vector<2x16xf32>
    %1137 = vector.extract_strided_slice %1126 {offsets = [0, 32], sizes = [2, 16], strides = [1, 1]} : vector<2x64xf32> to vector<2x16xf32>
    %1138 = vector.extract_strided_slice %1126 {offsets = [0, 48], sizes = [2, 16], strides = [1, 1]} : vector<2x64xf32> to vector<2x16xf32>
    %cst_304 = arith.constant 5.000000e-01 : f32
    %1139 = vector.broadcast %cst_304 : f32 to vector<2x16xf32>
    %1140 = arith.mulf %1139, %1138 : vector<2x16xf32>
    %cst_305 = arith.constant 5.000000e-01 : f32
    %1141 = vector.broadcast %cst_305 : f32 to vector<2x16xf32>
    %1142 = arith.addf %1140, %1141 : vector<2x16xf32>
    %1143 = arith.mulf %1136, %1093 : vector<2x16xf32>
    %1144 = arith.mulf %1131, %1137 : vector<2x16xf32>
    %1145 = arith.addf %1143, %1144 : vector<2x16xf32>
    %1146 = math.tanh %1145 : vector<2x16xf32>
    %1147 = arith.mulf %1142, %1146 : vector<2x16xf32>
    %1148 = math.tanh %1125 : vector<2x64xf32>
    %1149 = vector.extract_strided_slice %1148 {offsets = [0, 0], sizes = [2, 16], strides = [1, 1]} : vector<2x64xf32> to vector<2x16xf32>
    %cst_306 = arith.constant 5.000000e-01 : f32
    %1150 = vector.broadcast %cst_306 : f32 to vector<2x16xf32>
    %1151 = arith.mulf %1150, %1149 : vector<2x16xf32>
    %cst_307 = arith.constant 5.000000e-01 : f32
    %1152 = vector.broadcast %cst_307 : f32 to vector<2x16xf32>
    %1153 = arith.addf %1151, %1152 : vector<2x16xf32>
    %1154 = vector.extract_strided_slice %1148 {offsets = [0, 16], sizes = [2, 16], strides = [1, 1]} : vector<2x64xf32> to vector<2x16xf32>
    %cst_308 = arith.constant 5.000000e-01 : f32
    %1155 = vector.broadcast %cst_308 : f32 to vector<2x16xf32>
    %1156 = arith.mulf %1155, %1154 : vector<2x16xf32>
    %cst_309 = arith.constant 5.000000e-01 : f32
    %1157 = vector.broadcast %cst_309 : f32 to vector<2x16xf32>
    %1158 = arith.addf %1156, %1157 : vector<2x16xf32>
    %1159 = vector.extract_strided_slice %1148 {offsets = [0, 32], sizes = [2, 16], strides = [1, 1]} : vector<2x64xf32> to vector<2x16xf32>
    %1160 = vector.extract_strided_slice %1148 {offsets = [0, 48], sizes = [2, 16], strides = [1, 1]} : vector<2x64xf32> to vector<2x16xf32>
    %cst_310 = arith.constant 5.000000e-01 : f32
    %1161 = vector.broadcast %cst_310 : f32 to vector<2x16xf32>
    %1162 = arith.mulf %1161, %1160 : vector<2x16xf32>
    %cst_311 = arith.constant 5.000000e-01 : f32
    %1163 = vector.broadcast %cst_311 : f32 to vector<2x16xf32>
    %1164 = arith.addf %1162, %1163 : vector<2x16xf32>
    %1165 = arith.mulf %1158, %1115 : vector<2x16xf32>
    %1166 = arith.mulf %1153, %1159 : vector<2x16xf32>
    %1167 = arith.addf %1165, %1166 : vector<2x16xf32>
    %1168 = math.tanh %1167 : vector<2x16xf32>
    %1169 = arith.mulf %1164, %1168 : vector<2x16xf32>
    %1170 = tpu.concatenate %1147, %1169 in 1 : vector<2x16xf32>, vector<2x16xf32> -> vector<2x32xf32>
    %cst_312 = arith.constant dense<0.000000e+00> : vector<2x128xf32>
    %1171 = tpu.matmul %1170, %825, %cst_312 {dimension_numbers = #tpu.dot_dimension_numbers<[1], [0], [0], [1], [0, 0, 1, 1], [], []>} : vector<2x32xf32>, vector<32x128xf32>, vector<2x128xf32> -> vector<2x128xf32>
    %1172 = vector.extract_strided_slice %823 {offsets = [14, 0], sizes = [2, 64], strides = [1, 1]} : vector<16x128xf32> to vector<2x64xf32>
    %1173 = vector.extract_strided_slice %1171 {offsets = [0, 0], sizes = [2, 64], strides = [1, 1]} : vector<2x128xf32> to vector<2x64xf32>
    %1174 = arith.addf %1172, %1173 : vector<2x64xf32>
    %1175 = vector.extract_strided_slice %823 {offsets = [0, 64], sizes = [2, 64], strides = [1, 1]} : vector<16x128xf32> to vector<2x64xf32>
    %1176 = vector.extract_strided_slice %1171 {offsets = [0, 64], sizes = [2, 64], strides = [1, 1]} : vector<2x128xf32> to vector<2x64xf32>
    %1177 = arith.addf %1175, %1176 : vector<2x64xf32>
    %1178 = math.tanh %1174 : vector<2x64xf32>
    %1179 = vector.extract_strided_slice %1178 {offsets = [0, 0], sizes = [2, 16], strides = [1, 1]} : vector<2x64xf32> to vector<2x16xf32>
    %cst_313 = arith.constant 5.000000e-01 : f32
    %1180 = vector.broadcast %cst_313 : f32 to vector<2x16xf32>
    %1181 = arith.mulf %1180, %1179 : vector<2x16xf32>
    %cst_314 = arith.constant 5.000000e-01 : f32
    %1182 = vector.broadcast %cst_314 : f32 to vector<2x16xf32>
    %1183 = arith.addf %1181, %1182 : vector<2x16xf32>
    %1184 = vector.extract_strided_slice %1178 {offsets = [0, 16], sizes = [2, 16], strides = [1, 1]} : vector<2x64xf32> to vector<2x16xf32>
    %cst_315 = arith.constant 5.000000e-01 : f32
    %1185 = vector.broadcast %cst_315 : f32 to vector<2x16xf32>
    %1186 = arith.mulf %1185, %1184 : vector<2x16xf32>
    %cst_316 = arith.constant 5.000000e-01 : f32
    %1187 = vector.broadcast %cst_316 : f32 to vector<2x16xf32>
    %1188 = arith.addf %1186, %1187 : vector<2x16xf32>
    %1189 = vector.extract_strided_slice %1178 {offsets = [0, 32], sizes = [2, 16], strides = [1, 1]} : vector<2x64xf32> to vector<2x16xf32>
    %1190 = vector.extract_strided_slice %1178 {offsets = [0, 48], sizes = [2, 16], strides = [1, 1]} : vector<2x64xf32> to vector<2x16xf32>
    %cst_317 = arith.constant 5.000000e-01 : f32
    %1191 = vector.broadcast %cst_317 : f32 to vector<2x16xf32>
    %1192 = arith.mulf %1191, %1190 : vector<2x16xf32>
    %cst_318 = arith.constant 5.000000e-01 : f32
    %1193 = vector.broadcast %cst_318 : f32 to vector<2x16xf32>
    %1194 = arith.addf %1192, %1193 : vector<2x16xf32>
    %1195 = arith.mulf %1188, %1145 : vector<2x16xf32>
    %1196 = arith.mulf %1183, %1189 : vector<2x16xf32>
    %1197 = arith.addf %1195, %1196 : vector<2x16xf32>
    %1198 = math.tanh %1197 : vector<2x16xf32>
    %1199 = arith.mulf %1194, %1198 : vector<2x16xf32>
    %1200 = math.tanh %1177 : vector<2x64xf32>
    %1201 = vector.extract_strided_slice %1200 {offsets = [0, 0], sizes = [2, 16], strides = [1, 1]} : vector<2x64xf32> to vector<2x16xf32>
    %cst_319 = arith.constant 5.000000e-01 : f32
    %1202 = vector.broadcast %cst_319 : f32 to vector<2x16xf32>
    %1203 = arith.mulf %1202, %1201 : vector<2x16xf32>
    %cst_320 = arith.constant 5.000000e-01 : f32
    %1204 = vector.broadcast %cst_320 : f32 to vector<2x16xf32>
    %1205 = arith.addf %1203, %1204 : vector<2x16xf32>
    %1206 = vector.extract_strided_slice %1200 {offsets = [0, 16], sizes = [2, 16], strides = [1, 1]} : vector<2x64xf32> to vector<2x16xf32>
    %cst_321 = arith.constant 5.000000e-01 : f32
    %1207 = vector.broadcast %cst_321 : f32 to vector<2x16xf32>
    %1208 = arith.mulf %1207, %1206 : vector<2x16xf32>
    %cst_322 = arith.constant 5.000000e-01 : f32
    %1209 = vector.broadcast %cst_322 : f32 to vector<2x16xf32>
    %1210 = arith.addf %1208, %1209 : vector<2x16xf32>
    %1211 = vector.extract_strided_slice %1200 {offsets = [0, 32], sizes = [2, 16], strides = [1, 1]} : vector<2x64xf32> to vector<2x16xf32>
    %1212 = vector.extract_strided_slice %1200 {offsets = [0, 48], sizes = [2, 16], strides = [1, 1]} : vector<2x64xf32> to vector<2x16xf32>
    %cst_323 = arith.constant 5.000000e-01 : f32
    %1213 = vector.broadcast %cst_323 : f32 to vector<2x16xf32>
    %1214 = arith.mulf %1213, %1212 : vector<2x16xf32>
    %cst_324 = arith.constant 5.000000e-01 : f32
    %1215 = vector.broadcast %cst_324 : f32 to vector<2x16xf32>
    %1216 = arith.addf %1214, %1215 : vector<2x16xf32>
    %1217 = arith.mulf %1210, %1167 : vector<2x16xf32>
    %1218 = arith.mulf %1205, %1211 : vector<2x16xf32>
    %1219 = arith.addf %1217, %1218 : vector<2x16xf32>
    %1220 = math.tanh %1219 : vector<2x16xf32>
    %1221 = arith.mulf %1216, %1220 : vector<2x16xf32>
    %1222 = tpu.concatenate %842, %887, %939, %991, %1043, %1095, %1147, %1199 in 0 : vector<2x16xf32>, vector<2x16xf32>, vector<2x16xf32>, vector<2x16xf32>, vector<2x16xf32>, vector<2x16xf32>, vector<2x16xf32>, vector<2x16xf32> -> vector<16x16xf32>
    %1223 = tpu.concatenate %1221, %1169, %1117, %1065, %1013, %961, %909, %857 in 0 : vector<2x16xf32>, vector<2x16xf32>, vector<2x16xf32>, vector<2x16xf32>, vector<2x16xf32>, vector<2x16xf32>, vector<2x16xf32>, vector<2x16xf32> -> vector<16x16xf32>
    %1224 = tpu.concatenate %1222, %1223 in 1 : vector<16x16xf32>, vector<16x16xf32> -> vector<16x32xf32>
    %c3 = arith.constant 3 : index
    %c0_325 = arith.constant 0 : index
    %c0_326 = arith.constant 0 : index
    %1225 = vector.load %arg1[%c3, %c0_325, %c0_326] : memref<4x32x128xf32, #tpu.memory_space<vmem>>, vector<1x32x128xf32>
    %1226 = vector.shape_cast %1225 : vector<1x32x128xf32> to vector<32x128xf32>
    %cst_327 = arith.constant dense<0.000000e+00> : vector<16x128xf32>
    %1227 = tpu.matmul %1224, %1226, %cst_327 {dimension_numbers = #tpu.dot_dimension_numbers<[1], [0], [0], [1], [0, 0, 1, 1], [], []>} : vector<16x32xf32>, vector<32x128xf32>, vector<16x128xf32> -> vector<16x128xf32>
    %c3_328 = arith.constant 3 : index
    %c0_329 = arith.constant 0 : index
    %c0_330 = arith.constant 0 : index
    %1228 = vector.load %arg3[%c3_328, %c0_329, %c0_330] : memref<4x1x128xf32, #tpu.memory_space<vmem>>, vector<1x1x128xf32>
    %1229 = vector.shape_cast %1228 : vector<1x1x128xf32> to vector<1x128xf32>
    %1230 = vector.broadcast %1229 : vector<1x128xf32> to vector<16x128xf32>
    %1231 = arith.addf %1227, %1230 : vector<16x128xf32>
    %c3_331 = arith.constant 3 : index
    %c0_332 = arith.constant 0 : index
    %c0_333 = arith.constant 0 : index
    %1232 = vector.load %arg2[%c3_331, %c0_332, %c0_333] : memref<4x32x128xf32, #tpu.memory_space<vmem>>, vector<1x32x128xf32>
    %1233 = vector.shape_cast %1232 : vector<1x32x128xf32> to vector<32x128xf32>
    %1234 = vector.extract_strided_slice %1231 {offsets = [0, 0], sizes = [2, 64], strides = [1, 1]} : vector<16x128xf32> to vector<2x64xf32>
    %1235 = vector.extract_strided_slice %1231 {offsets = [14, 64], sizes = [2, 64], strides = [1, 1]} : vector<16x128xf32> to vector<2x64xf32>
    %1236 = math.tanh %1234 : vector<2x64xf32>
    %1237 = vector.extract_strided_slice %1236 {offsets = [0, 0], sizes = [2, 16], strides = [1, 1]} : vector<2x64xf32> to vector<2x16xf32>
    %cst_334 = arith.constant 5.000000e-01 : f32
    %1238 = vector.broadcast %cst_334 : f32 to vector<2x16xf32>
    %1239 = arith.mulf %1238, %1237 : vector<2x16xf32>
    %cst_335 = arith.constant 5.000000e-01 : f32
    %1240 = vector.broadcast %cst_335 : f32 to vector<2x16xf32>
    %1241 = arith.addf %1239, %1240 : vector<2x16xf32>
    %1242 = vector.extract_strided_slice %1236 {offsets = [0, 32], sizes = [2, 16], strides = [1, 1]} : vector<2x64xf32> to vector<2x16xf32>
    %1243 = vector.extract_strided_slice %1236 {offsets = [0, 48], sizes = [2, 16], strides = [1, 1]} : vector<2x64xf32> to vector<2x16xf32>
    %cst_336 = arith.constant 5.000000e-01 : f32
    %1244 = vector.broadcast %cst_336 : f32 to vector<2x16xf32>
    %1245 = arith.mulf %1244, %1243 : vector<2x16xf32>
    %cst_337 = arith.constant 5.000000e-01 : f32
    %1246 = vector.broadcast %cst_337 : f32 to vector<2x16xf32>
    %1247 = arith.addf %1245, %1246 : vector<2x16xf32>
    %1248 = arith.mulf %1241, %1242 : vector<2x16xf32>
    %1249 = math.tanh %1248 : vector<2x16xf32>
    %1250 = arith.mulf %1247, %1249 : vector<2x16xf32>
    %1251 = math.tanh %1235 : vector<2x64xf32>
    %1252 = vector.extract_strided_slice %1251 {offsets = [0, 0], sizes = [2, 16], strides = [1, 1]} : vector<2x64xf32> to vector<2x16xf32>
    %cst_338 = arith.constant 5.000000e-01 : f32
    %1253 = vector.broadcast %cst_338 : f32 to vector<2x16xf32>
    %1254 = arith.mulf %1253, %1252 : vector<2x16xf32>
    %cst_339 = arith.constant 5.000000e-01 : f32
    %1255 = vector.broadcast %cst_339 : f32 to vector<2x16xf32>
    %1256 = arith.addf %1254, %1255 : vector<2x16xf32>
    %1257 = vector.extract_strided_slice %1251 {offsets = [0, 32], sizes = [2, 16], strides = [1, 1]} : vector<2x64xf32> to vector<2x16xf32>
    %1258 = vector.extract_strided_slice %1251 {offsets = [0, 48], sizes = [2, 16], strides = [1, 1]} : vector<2x64xf32> to vector<2x16xf32>
    %cst_340 = arith.constant 5.000000e-01 : f32
    %1259 = vector.broadcast %cst_340 : f32 to vector<2x16xf32>
    %1260 = arith.mulf %1259, %1258 : vector<2x16xf32>
    %cst_341 = arith.constant 5.000000e-01 : f32
    %1261 = vector.broadcast %cst_341 : f32 to vector<2x16xf32>
    %1262 = arith.addf %1260, %1261 : vector<2x16xf32>
    %1263 = arith.mulf %1256, %1257 : vector<2x16xf32>
    %1264 = math.tanh %1263 : vector<2x16xf32>
    %1265 = arith.mulf %1262, %1264 : vector<2x16xf32>
    %1266 = tpu.concatenate %1250, %1265 in 1 : vector<2x16xf32>, vector<2x16xf32> -> vector<2x32xf32>
    %cst_342 = arith.constant dense<0.000000e+00> : vector<2x128xf32>
    %1267 = tpu.matmul %1266, %1233, %cst_342 {dimension_numbers = #tpu.dot_dimension_numbers<[1], [0], [0], [1], [0, 0, 1, 1], [], []>} : vector<2x32xf32>, vector<32x128xf32>, vector<2x128xf32> -> vector<2x128xf32>
    %1268 = vector.extract_strided_slice %1231 {offsets = [2, 0], sizes = [2, 64], strides = [1, 1]} : vector<16x128xf32> to vector<2x64xf32>
    %1269 = vector.extract_strided_slice %1267 {offsets = [0, 0], sizes = [2, 64], strides = [1, 1]} : vector<2x128xf32> to vector<2x64xf32>
    %1270 = arith.addf %1268, %1269 : vector<2x64xf32>
    %1271 = vector.extract_strided_slice %1231 {offsets = [12, 64], sizes = [2, 64], strides = [1, 1]} : vector<16x128xf32> to vector<2x64xf32>
    %1272 = vector.extract_strided_slice %1267 {offsets = [0, 64], sizes = [2, 64], strides = [1, 1]} : vector<2x128xf32> to vector<2x64xf32>
    %1273 = arith.addf %1271, %1272 : vector<2x64xf32>
    %1274 = math.tanh %1270 : vector<2x64xf32>
    %1275 = vector.extract_strided_slice %1274 {offsets = [0, 0], sizes = [2, 16], strides = [1, 1]} : vector<2x64xf32> to vector<2x16xf32>
    %cst_343 = arith.constant 5.000000e-01 : f32
    %1276 = vector.broadcast %cst_343 : f32 to vector<2x16xf32>
    %1277 = arith.mulf %1276, %1275 : vector<2x16xf32>
    %cst_344 = arith.constant 5.000000e-01 : f32
    %1278 = vector.broadcast %cst_344 : f32 to vector<2x16xf32>
    %1279 = arith.addf %1277, %1278 : vector<2x16xf32>
    %1280 = vector.extract_strided_slice %1274 {offsets = [0, 16], sizes = [2, 16], strides = [1, 1]} : vector<2x64xf32> to vector<2x16xf32>
    %cst_345 = arith.constant 5.000000e-01 : f32
    %1281 = vector.broadcast %cst_345 : f32 to vector<2x16xf32>
    %1282 = arith.mulf %1281, %1280 : vector<2x16xf32>
    %cst_346 = arith.constant 5.000000e-01 : f32
    %1283 = vector.broadcast %cst_346 : f32 to vector<2x16xf32>
    %1284 = arith.addf %1282, %1283 : vector<2x16xf32>
    %1285 = vector.extract_strided_slice %1274 {offsets = [0, 32], sizes = [2, 16], strides = [1, 1]} : vector<2x64xf32> to vector<2x16xf32>
    %1286 = vector.extract_strided_slice %1274 {offsets = [0, 48], sizes = [2, 16], strides = [1, 1]} : vector<2x64xf32> to vector<2x16xf32>
    %cst_347 = arith.constant 5.000000e-01 : f32
    %1287 = vector.broadcast %cst_347 : f32 to vector<2x16xf32>
    %1288 = arith.mulf %1287, %1286 : vector<2x16xf32>
    %cst_348 = arith.constant 5.000000e-01 : f32
    %1289 = vector.broadcast %cst_348 : f32 to vector<2x16xf32>
    %1290 = arith.addf %1288, %1289 : vector<2x16xf32>
    %1291 = arith.mulf %1284, %1248 : vector<2x16xf32>
    %1292 = arith.mulf %1279, %1285 : vector<2x16xf32>
    %1293 = arith.addf %1291, %1292 : vector<2x16xf32>
    %1294 = math.tanh %1293 : vector<2x16xf32>
    %1295 = arith.mulf %1290, %1294 : vector<2x16xf32>
    %1296 = math.tanh %1273 : vector<2x64xf32>
    %1297 = vector.extract_strided_slice %1296 {offsets = [0, 0], sizes = [2, 16], strides = [1, 1]} : vector<2x64xf32> to vector<2x16xf32>
    %cst_349 = arith.constant 5.000000e-01 : f32
    %1298 = vector.broadcast %cst_349 : f32 to vector<2x16xf32>
    %1299 = arith.mulf %1298, %1297 : vector<2x16xf32>
    %cst_350 = arith.constant 5.000000e-01 : f32
    %1300 = vector.broadcast %cst_350 : f32 to vector<2x16xf32>
    %1301 = arith.addf %1299, %1300 : vector<2x16xf32>
    %1302 = vector.extract_strided_slice %1296 {offsets = [0, 16], sizes = [2, 16], strides = [1, 1]} : vector<2x64xf32> to vector<2x16xf32>
    %cst_351 = arith.constant 5.000000e-01 : f32
    %1303 = vector.broadcast %cst_351 : f32 to vector<2x16xf32>
    %1304 = arith.mulf %1303, %1302 : vector<2x16xf32>
    %cst_352 = arith.constant 5.000000e-01 : f32
    %1305 = vector.broadcast %cst_352 : f32 to vector<2x16xf32>
    %1306 = arith.addf %1304, %1305 : vector<2x16xf32>
    %1307 = vector.extract_strided_slice %1296 {offsets = [0, 32], sizes = [2, 16], strides = [1, 1]} : vector<2x64xf32> to vector<2x16xf32>
    %1308 = vector.extract_strided_slice %1296 {offsets = [0, 48], sizes = [2, 16], strides = [1, 1]} : vector<2x64xf32> to vector<2x16xf32>
    %cst_353 = arith.constant 5.000000e-01 : f32
    %1309 = vector.broadcast %cst_353 : f32 to vector<2x16xf32>
    %1310 = arith.mulf %1309, %1308 : vector<2x16xf32>
    %cst_354 = arith.constant 5.000000e-01 : f32
    %1311 = vector.broadcast %cst_354 : f32 to vector<2x16xf32>
    %1312 = arith.addf %1310, %1311 : vector<2x16xf32>
    %1313 = arith.mulf %1306, %1263 : vector<2x16xf32>
    %1314 = arith.mulf %1301, %1307 : vector<2x16xf32>
    %1315 = arith.addf %1313, %1314 : vector<2x16xf32>
    %1316 = math.tanh %1315 : vector<2x16xf32>
    %1317 = arith.mulf %1312, %1316 : vector<2x16xf32>
    %1318 = tpu.concatenate %1295, %1317 in 1 : vector<2x16xf32>, vector<2x16xf32> -> vector<2x32xf32>
    %cst_355 = arith.constant dense<0.000000e+00> : vector<2x128xf32>
    %1319 = tpu.matmul %1318, %1233, %cst_355 {dimension_numbers = #tpu.dot_dimension_numbers<[1], [0], [0], [1], [0, 0, 1, 1], [], []>} : vector<2x32xf32>, vector<32x128xf32>, vector<2x128xf32> -> vector<2x128xf32>
    %1320 = vector.extract_strided_slice %1231 {offsets = [4, 0], sizes = [2, 64], strides = [1, 1]} : vector<16x128xf32> to vector<2x64xf32>
    %1321 = vector.extract_strided_slice %1319 {offsets = [0, 0], sizes = [2, 64], strides = [1, 1]} : vector<2x128xf32> to vector<2x64xf32>
    %1322 = arith.addf %1320, %1321 : vector<2x64xf32>
    %1323 = vector.extract_strided_slice %1231 {offsets = [10, 64], sizes = [2, 64], strides = [1, 1]} : vector<16x128xf32> to vector<2x64xf32>
    %1324 = vector.extract_strided_slice %1319 {offsets = [0, 64], sizes = [2, 64], strides = [1, 1]} : vector<2x128xf32> to vector<2x64xf32>
    %1325 = arith.addf %1323, %1324 : vector<2x64xf32>
    %1326 = math.tanh %1322 : vector<2x64xf32>
    %1327 = vector.extract_strided_slice %1326 {offsets = [0, 0], sizes = [2, 16], strides = [1, 1]} : vector<2x64xf32> to vector<2x16xf32>
    %cst_356 = arith.constant 5.000000e-01 : f32
    %1328 = vector.broadcast %cst_356 : f32 to vector<2x16xf32>
    %1329 = arith.mulf %1328, %1327 : vector<2x16xf32>
    %cst_357 = arith.constant 5.000000e-01 : f32
    %1330 = vector.broadcast %cst_357 : f32 to vector<2x16xf32>
    %1331 = arith.addf %1329, %1330 : vector<2x16xf32>
    %1332 = vector.extract_strided_slice %1326 {offsets = [0, 16], sizes = [2, 16], strides = [1, 1]} : vector<2x64xf32> to vector<2x16xf32>
    %cst_358 = arith.constant 5.000000e-01 : f32
    %1333 = vector.broadcast %cst_358 : f32 to vector<2x16xf32>
    %1334 = arith.mulf %1333, %1332 : vector<2x16xf32>
    %cst_359 = arith.constant 5.000000e-01 : f32
    %1335 = vector.broadcast %cst_359 : f32 to vector<2x16xf32>
    %1336 = arith.addf %1334, %1335 : vector<2x16xf32>
    %1337 = vector.extract_strided_slice %1326 {offsets = [0, 32], sizes = [2, 16], strides = [1, 1]} : vector<2x64xf32> to vector<2x16xf32>
    %1338 = vector.extract_strided_slice %1326 {offsets = [0, 48], sizes = [2, 16], strides = [1, 1]} : vector<2x64xf32> to vector<2x16xf32>
    %cst_360 = arith.constant 5.000000e-01 : f32
    %1339 = vector.broadcast %cst_360 : f32 to vector<2x16xf32>
    %1340 = arith.mulf %1339, %1338 : vector<2x16xf32>
    %cst_361 = arith.constant 5.000000e-01 : f32
    %1341 = vector.broadcast %cst_361 : f32 to vector<2x16xf32>
    %1342 = arith.addf %1340, %1341 : vector<2x16xf32>
    %1343 = arith.mulf %1336, %1293 : vector<2x16xf32>
    %1344 = arith.mulf %1331, %1337 : vector<2x16xf32>
    %1345 = arith.addf %1343, %1344 : vector<2x16xf32>
    %1346 = math.tanh %1345 : vector<2x16xf32>
    %1347 = arith.mulf %1342, %1346 : vector<2x16xf32>
    %1348 = math.tanh %1325 : vector<2x64xf32>
    %1349 = vector.extract_strided_slice %1348 {offsets = [0, 0], sizes = [2, 16], strides = [1, 1]} : vector<2x64xf32> to vector<2x16xf32>
    %cst_362 = arith.constant 5.000000e-01 : f32
    %1350 = vector.broadcast %cst_362 : f32 to vector<2x16xf32>
    %1351 = arith.mulf %1350, %1349 : vector<2x16xf32>
    %cst_363 = arith.constant 5.000000e-01 : f32
    %1352 = vector.broadcast %cst_363 : f32 to vector<2x16xf32>
    %1353 = arith.addf %1351, %1352 : vector<2x16xf32>
    %1354 = vector.extract_strided_slice %1348 {offsets = [0, 16], sizes = [2, 16], strides = [1, 1]} : vector<2x64xf32> to vector<2x16xf32>
    %cst_364 = arith.constant 5.000000e-01 : f32
    %1355 = vector.broadcast %cst_364 : f32 to vector<2x16xf32>
    %1356 = arith.mulf %1355, %1354 : vector<2x16xf32>
    %cst_365 = arith.constant 5.000000e-01 : f32
    %1357 = vector.broadcast %cst_365 : f32 to vector<2x16xf32>
    %1358 = arith.addf %1356, %1357 : vector<2x16xf32>
    %1359 = vector.extract_strided_slice %1348 {offsets = [0, 32], sizes = [2, 16], strides = [1, 1]} : vector<2x64xf32> to vector<2x16xf32>
    %1360 = vector.extract_strided_slice %1348 {offsets = [0, 48], sizes = [2, 16], strides = [1, 1]} : vector<2x64xf32> to vector<2x16xf32>
    %cst_366 = arith.constant 5.000000e-01 : f32
    %1361 = vector.broadcast %cst_366 : f32 to vector<2x16xf32>
    %1362 = arith.mulf %1361, %1360 : vector<2x16xf32>
    %cst_367 = arith.constant 5.000000e-01 : f32
    %1363 = vector.broadcast %cst_367 : f32 to vector<2x16xf32>
    %1364 = arith.addf %1362, %1363 : vector<2x16xf32>
    %1365 = arith.mulf %1358, %1315 : vector<2x16xf32>
    %1366 = arith.mulf %1353, %1359 : vector<2x16xf32>
    %1367 = arith.addf %1365, %1366 : vector<2x16xf32>
    %1368 = math.tanh %1367 : vector<2x16xf32>
    %1369 = arith.mulf %1364, %1368 : vector<2x16xf32>
    %1370 = tpu.concatenate %1347, %1369 in 1 : vector<2x16xf32>, vector<2x16xf32> -> vector<2x32xf32>
    %cst_368 = arith.constant dense<0.000000e+00> : vector<2x128xf32>
    %1371 = tpu.matmul %1370, %1233, %cst_368 {dimension_numbers = #tpu.dot_dimension_numbers<[1], [0], [0], [1], [0, 0, 1, 1], [], []>} : vector<2x32xf32>, vector<32x128xf32>, vector<2x128xf32> -> vector<2x128xf32>
    %1372 = vector.extract_strided_slice %1231 {offsets = [6, 0], sizes = [2, 64], strides = [1, 1]} : vector<16x128xf32> to vector<2x64xf32>
    %1373 = vector.extract_strided_slice %1371 {offsets = [0, 0], sizes = [2, 64], strides = [1, 1]} : vector<2x128xf32> to vector<2x64xf32>
    %1374 = arith.addf %1372, %1373 : vector<2x64xf32>
    %1375 = vector.extract_strided_slice %1231 {offsets = [8, 64], sizes = [2, 64], strides = [1, 1]} : vector<16x128xf32> to vector<2x64xf32>
    %1376 = vector.extract_strided_slice %1371 {offsets = [0, 64], sizes = [2, 64], strides = [1, 1]} : vector<2x128xf32> to vector<2x64xf32>
    %1377 = arith.addf %1375, %1376 : vector<2x64xf32>
    %1378 = math.tanh %1374 : vector<2x64xf32>
    %1379 = vector.extract_strided_slice %1378 {offsets = [0, 0], sizes = [2, 16], strides = [1, 1]} : vector<2x64xf32> to vector<2x16xf32>
    %cst_369 = arith.constant 5.000000e-01 : f32
    %1380 = vector.broadcast %cst_369 : f32 to vector<2x16xf32>
    %1381 = arith.mulf %1380, %1379 : vector<2x16xf32>
    %cst_370 = arith.constant 5.000000e-01 : f32
    %1382 = vector.broadcast %cst_370 : f32 to vector<2x16xf32>
    %1383 = arith.addf %1381, %1382 : vector<2x16xf32>
    %1384 = vector.extract_strided_slice %1378 {offsets = [0, 16], sizes = [2, 16], strides = [1, 1]} : vector<2x64xf32> to vector<2x16xf32>
    %cst_371 = arith.constant 5.000000e-01 : f32
    %1385 = vector.broadcast %cst_371 : f32 to vector<2x16xf32>
    %1386 = arith.mulf %1385, %1384 : vector<2x16xf32>
    %cst_372 = arith.constant 5.000000e-01 : f32
    %1387 = vector.broadcast %cst_372 : f32 to vector<2x16xf32>
    %1388 = arith.addf %1386, %1387 : vector<2x16xf32>
    %1389 = vector.extract_strided_slice %1378 {offsets = [0, 32], sizes = [2, 16], strides = [1, 1]} : vector<2x64xf32> to vector<2x16xf32>
    %1390 = vector.extract_strided_slice %1378 {offsets = [0, 48], sizes = [2, 16], strides = [1, 1]} : vector<2x64xf32> to vector<2x16xf32>
    %cst_373 = arith.constant 5.000000e-01 : f32
    %1391 = vector.broadcast %cst_373 : f32 to vector<2x16xf32>
    %1392 = arith.mulf %1391, %1390 : vector<2x16xf32>
    %cst_374 = arith.constant 5.000000e-01 : f32
    %1393 = vector.broadcast %cst_374 : f32 to vector<2x16xf32>
    %1394 = arith.addf %1392, %1393 : vector<2x16xf32>
    %1395 = arith.mulf %1388, %1345 : vector<2x16xf32>
    %1396 = arith.mulf %1383, %1389 : vector<2x16xf32>
    %1397 = arith.addf %1395, %1396 : vector<2x16xf32>
    %1398 = math.tanh %1397 : vector<2x16xf32>
    %1399 = arith.mulf %1394, %1398 : vector<2x16xf32>
    %1400 = math.tanh %1377 : vector<2x64xf32>
    %1401 = vector.extract_strided_slice %1400 {offsets = [0, 0], sizes = [2, 16], strides = [1, 1]} : vector<2x64xf32> to vector<2x16xf32>
    %cst_375 = arith.constant 5.000000e-01 : f32
    %1402 = vector.broadcast %cst_375 : f32 to vector<2x16xf32>
    %1403 = arith.mulf %1402, %1401 : vector<2x16xf32>
    %cst_376 = arith.constant 5.000000e-01 : f32
    %1404 = vector.broadcast %cst_376 : f32 to vector<2x16xf32>
    %1405 = arith.addf %1403, %1404 : vector<2x16xf32>
    %1406 = vector.extract_strided_slice %1400 {offsets = [0, 16], sizes = [2, 16], strides = [1, 1]} : vector<2x64xf32> to vector<2x16xf32>
    %cst_377 = arith.constant 5.000000e-01 : f32
    %1407 = vector.broadcast %cst_377 : f32 to vector<2x16xf32>
    %1408 = arith.mulf %1407, %1406 : vector<2x16xf32>
    %cst_378 = arith.constant 5.000000e-01 : f32
    %1409 = vector.broadcast %cst_378 : f32 to vector<2x16xf32>
    %1410 = arith.addf %1408, %1409 : vector<2x16xf32>
    %1411 = vector.extract_strided_slice %1400 {offsets = [0, 32], sizes = [2, 16], strides = [1, 1]} : vector<2x64xf32> to vector<2x16xf32>
    %1412 = vector.extract_strided_slice %1400 {offsets = [0, 48], sizes = [2, 16], strides = [1, 1]} : vector<2x64xf32> to vector<2x16xf32>
    %cst_379 = arith.constant 5.000000e-01 : f32
    %1413 = vector.broadcast %cst_379 : f32 to vector<2x16xf32>
    %1414 = arith.mulf %1413, %1412 : vector<2x16xf32>
    %cst_380 = arith.constant 5.000000e-01 : f32
    %1415 = vector.broadcast %cst_380 : f32 to vector<2x16xf32>
    %1416 = arith.addf %1414, %1415 : vector<2x16xf32>
    %1417 = arith.mulf %1410, %1367 : vector<2x16xf32>
    %1418 = arith.mulf %1405, %1411 : vector<2x16xf32>
    %1419 = arith.addf %1417, %1418 : vector<2x16xf32>
    %1420 = math.tanh %1419 : vector<2x16xf32>
    %1421 = arith.mulf %1416, %1420 : vector<2x16xf32>
    %1422 = tpu.concatenate %1399, %1421 in 1 : vector<2x16xf32>, vector<2x16xf32> -> vector<2x32xf32>
    %cst_381 = arith.constant dense<0.000000e+00> : vector<2x128xf32>
    %1423 = tpu.matmul %1422, %1233, %cst_381 {dimension_numbers = #tpu.dot_dimension_numbers<[1], [0], [0], [1], [0, 0, 1, 1], [], []>} : vector<2x32xf32>, vector<32x128xf32>, vector<2x128xf32> -> vector<2x128xf32>
    %1424 = vector.extract_strided_slice %1231 {offsets = [8, 0], sizes = [2, 64], strides = [1, 1]} : vector<16x128xf32> to vector<2x64xf32>
    %1425 = vector.extract_strided_slice %1423 {offsets = [0, 0], sizes = [2, 64], strides = [1, 1]} : vector<2x128xf32> to vector<2x64xf32>
    %1426 = arith.addf %1424, %1425 : vector<2x64xf32>
    %1427 = vector.extract_strided_slice %1231 {offsets = [6, 64], sizes = [2, 64], strides = [1, 1]} : vector<16x128xf32> to vector<2x64xf32>
    %1428 = vector.extract_strided_slice %1423 {offsets = [0, 64], sizes = [2, 64], strides = [1, 1]} : vector<2x128xf32> to vector<2x64xf32>
    %1429 = arith.addf %1427, %1428 : vector<2x64xf32>
    %1430 = math.tanh %1426 : vector<2x64xf32>
    %1431 = vector.extract_strided_slice %1430 {offsets = [0, 0], sizes = [2, 16], strides = [1, 1]} : vector<2x64xf32> to vector<2x16xf32>
    %cst_382 = arith.constant 5.000000e-01 : f32
    %1432 = vector.broadcast %cst_382 : f32 to vector<2x16xf32>
    %1433 = arith.mulf %1432, %1431 : vector<2x16xf32>
    %cst_383 = arith.constant 5.000000e-01 : f32
    %1434 = vector.broadcast %cst_383 : f32 to vector<2x16xf32>
    %1435 = arith.addf %1433, %1434 : vector<2x16xf32>
    %1436 = vector.extract_strided_slice %1430 {offsets = [0, 16], sizes = [2, 16], strides = [1, 1]} : vector<2x64xf32> to vector<2x16xf32>
    %cst_384 = arith.constant 5.000000e-01 : f32
    %1437 = vector.broadcast %cst_384 : f32 to vector<2x16xf32>
    %1438 = arith.mulf %1437, %1436 : vector<2x16xf32>
    %cst_385 = arith.constant 5.000000e-01 : f32
    %1439 = vector.broadcast %cst_385 : f32 to vector<2x16xf32>
    %1440 = arith.addf %1438, %1439 : vector<2x16xf32>
    %1441 = vector.extract_strided_slice %1430 {offsets = [0, 32], sizes = [2, 16], strides = [1, 1]} : vector<2x64xf32> to vector<2x16xf32>
    %1442 = vector.extract_strided_slice %1430 {offsets = [0, 48], sizes = [2, 16], strides = [1, 1]} : vector<2x64xf32> to vector<2x16xf32>
    %cst_386 = arith.constant 5.000000e-01 : f32
    %1443 = vector.broadcast %cst_386 : f32 to vector<2x16xf32>
    %1444 = arith.mulf %1443, %1442 : vector<2x16xf32>
    %cst_387 = arith.constant 5.000000e-01 : f32
    %1445 = vector.broadcast %cst_387 : f32 to vector<2x16xf32>
    %1446 = arith.addf %1444, %1445 : vector<2x16xf32>
    %1447 = arith.mulf %1440, %1397 : vector<2x16xf32>
    %1448 = arith.mulf %1435, %1441 : vector<2x16xf32>
    %1449 = arith.addf %1447, %1448 : vector<2x16xf32>
    %1450 = math.tanh %1449 : vector<2x16xf32>
    %1451 = arith.mulf %1446, %1450 : vector<2x16xf32>
    %1452 = math.tanh %1429 : vector<2x64xf32>
    %1453 = vector.extract_strided_slice %1452 {offsets = [0, 0], sizes = [2, 16], strides = [1, 1]} : vector<2x64xf32> to vector<2x16xf32>
    %cst_388 = arith.constant 5.000000e-01 : f32
    %1454 = vector.broadcast %cst_388 : f32 to vector<2x16xf32>
    %1455 = arith.mulf %1454, %1453 : vector<2x16xf32>
    %cst_389 = arith.constant 5.000000e-01 : f32
    %1456 = vector.broadcast %cst_389 : f32 to vector<2x16xf32>
    %1457 = arith.addf %1455, %1456 : vector<2x16xf32>
    %1458 = vector.extract_strided_slice %1452 {offsets = [0, 16], sizes = [2, 16], strides = [1, 1]} : vector<2x64xf32> to vector<2x16xf32>
    %cst_390 = arith.constant 5.000000e-01 : f32
    %1459 = vector.broadcast %cst_390 : f32 to vector<2x16xf32>
    %1460 = arith.mulf %1459, %1458 : vector<2x16xf32>
    %cst_391 = arith.constant 5.000000e-01 : f32
    %1461 = vector.broadcast %cst_391 : f32 to vector<2x16xf32>
    %1462 = arith.addf %1460, %1461 : vector<2x16xf32>
    %1463 = vector.extract_strided_slice %1452 {offsets = [0, 32], sizes = [2, 16], strides = [1, 1]} : vector<2x64xf32> to vector<2x16xf32>
    %1464 = vector.extract_strided_slice %1452 {offsets = [0, 48], sizes = [2, 16], strides = [1, 1]} : vector<2x64xf32> to vector<2x16xf32>
    %cst_392 = arith.constant 5.000000e-01 : f32
    %1465 = vector.broadcast %cst_392 : f32 to vector<2x16xf32>
    %1466 = arith.mulf %1465, %1464 : vector<2x16xf32>
    %cst_393 = arith.constant 5.000000e-01 : f32
    %1467 = vector.broadcast %cst_393 : f32 to vector<2x16xf32>
    %1468 = arith.addf %1466, %1467 : vector<2x16xf32>
    %1469 = arith.mulf %1462, %1419 : vector<2x16xf32>
    %1470 = arith.mulf %1457, %1463 : vector<2x16xf32>
    %1471 = arith.addf %1469, %1470 : vector<2x16xf32>
    %1472 = math.tanh %1471 : vector<2x16xf32>
    %1473 = arith.mulf %1468, %1472 : vector<2x16xf32>
    %1474 = tpu.concatenate %1451, %1473 in 1 : vector<2x16xf32>, vector<2x16xf32> -> vector<2x32xf32>
    %cst_394 = arith.constant dense<0.000000e+00> : vector<2x128xf32>
    %1475 = tpu.matmul %1474, %1233, %cst_394 {dimension_numbers = #tpu.dot_dimension_numbers<[1], [0], [0], [1], [0, 0, 1, 1], [], []>} : vector<2x32xf32>, vector<32x128xf32>, vector<2x128xf32> -> vector<2x128xf32>
    %1476 = vector.extract_strided_slice %1231 {offsets = [10, 0], sizes = [2, 64], strides = [1, 1]} : vector<16x128xf32> to vector<2x64xf32>
    %1477 = vector.extract_strided_slice %1475 {offsets = [0, 0], sizes = [2, 64], strides = [1, 1]} : vector<2x128xf32> to vector<2x64xf32>
    %1478 = arith.addf %1476, %1477 : vector<2x64xf32>
    %1479 = vector.extract_strided_slice %1231 {offsets = [4, 64], sizes = [2, 64], strides = [1, 1]} : vector<16x128xf32> to vector<2x64xf32>
    %1480 = vector.extract_strided_slice %1475 {offsets = [0, 64], sizes = [2, 64], strides = [1, 1]} : vector<2x128xf32> to vector<2x64xf32>
    %1481 = arith.addf %1479, %1480 : vector<2x64xf32>
    %1482 = math.tanh %1478 : vector<2x64xf32>
    %1483 = vector.extract_strided_slice %1482 {offsets = [0, 0], sizes = [2, 16], strides = [1, 1]} : vector<2x64xf32> to vector<2x16xf32>
    %cst_395 = arith.constant 5.000000e-01 : f32
    %1484 = vector.broadcast %cst_395 : f32 to vector<2x16xf32>
    %1485 = arith.mulf %1484, %1483 : vector<2x16xf32>
    %cst_396 = arith.constant 5.000000e-01 : f32
    %1486 = vector.broadcast %cst_396 : f32 to vector<2x16xf32>
    %1487 = arith.addf %1485, %1486 : vector<2x16xf32>
    %1488 = vector.extract_strided_slice %1482 {offsets = [0, 16], sizes = [2, 16], strides = [1, 1]} : vector<2x64xf32> to vector<2x16xf32>
    %cst_397 = arith.constant 5.000000e-01 : f32
    %1489 = vector.broadcast %cst_397 : f32 to vector<2x16xf32>
    %1490 = arith.mulf %1489, %1488 : vector<2x16xf32>
    %cst_398 = arith.constant 5.000000e-01 : f32
    %1491 = vector.broadcast %cst_398 : f32 to vector<2x16xf32>
    %1492 = arith.addf %1490, %1491 : vector<2x16xf32>
    %1493 = vector.extract_strided_slice %1482 {offsets = [0, 32], sizes = [2, 16], strides = [1, 1]} : vector<2x64xf32> to vector<2x16xf32>
    %1494 = vector.extract_strided_slice %1482 {offsets = [0, 48], sizes = [2, 16], strides = [1, 1]} : vector<2x64xf32> to vector<2x16xf32>
    %cst_399 = arith.constant 5.000000e-01 : f32
    %1495 = vector.broadcast %cst_399 : f32 to vector<2x16xf32>
    %1496 = arith.mulf %1495, %1494 : vector<2x16xf32>
    %cst_400 = arith.constant 5.000000e-01 : f32
    %1497 = vector.broadcast %cst_400 : f32 to vector<2x16xf32>
    %1498 = arith.addf %1496, %1497 : vector<2x16xf32>
    %1499 = arith.mulf %1492, %1449 : vector<2x16xf32>
    %1500 = arith.mulf %1487, %1493 : vector<2x16xf32>
    %1501 = arith.addf %1499, %1500 : vector<2x16xf32>
    %1502 = math.tanh %1501 : vector<2x16xf32>
    %1503 = arith.mulf %1498, %1502 : vector<2x16xf32>
    %1504 = math.tanh %1481 : vector<2x64xf32>
    %1505 = vector.extract_strided_slice %1504 {offsets = [0, 0], sizes = [2, 16], strides = [1, 1]} : vector<2x64xf32> to vector<2x16xf32>
    %cst_401 = arith.constant 5.000000e-01 : f32
    %1506 = vector.broadcast %cst_401 : f32 to vector<2x16xf32>
    %1507 = arith.mulf %1506, %1505 : vector<2x16xf32>
    %cst_402 = arith.constant 5.000000e-01 : f32
    %1508 = vector.broadcast %cst_402 : f32 to vector<2x16xf32>
    %1509 = arith.addf %1507, %1508 : vector<2x16xf32>
    %1510 = vector.extract_strided_slice %1504 {offsets = [0, 16], sizes = [2, 16], strides = [1, 1]} : vector<2x64xf32> to vector<2x16xf32>
    %cst_403 = arith.constant 5.000000e-01 : f32
    %1511 = vector.broadcast %cst_403 : f32 to vector<2x16xf32>
    %1512 = arith.mulf %1511, %1510 : vector<2x16xf32>
    %cst_404 = arith.constant 5.000000e-01 : f32
    %1513 = vector.broadcast %cst_404 : f32 to vector<2x16xf32>
    %1514 = arith.addf %1512, %1513 : vector<2x16xf32>
    %1515 = vector.extract_strided_slice %1504 {offsets = [0, 32], sizes = [2, 16], strides = [1, 1]} : vector<2x64xf32> to vector<2x16xf32>
    %1516 = vector.extract_strided_slice %1504 {offsets = [0, 48], sizes = [2, 16], strides = [1, 1]} : vector<2x64xf32> to vector<2x16xf32>
    %cst_405 = arith.constant 5.000000e-01 : f32
    %1517 = vector.broadcast %cst_405 : f32 to vector<2x16xf32>
    %1518 = arith.mulf %1517, %1516 : vector<2x16xf32>
    %cst_406 = arith.constant 5.000000e-01 : f32
    %1519 = vector.broadcast %cst_406 : f32 to vector<2x16xf32>
    %1520 = arith.addf %1518, %1519 : vector<2x16xf32>
    %1521 = arith.mulf %1514, %1471 : vector<2x16xf32>
    %1522 = arith.mulf %1509, %1515 : vector<2x16xf32>
    %1523 = arith.addf %1521, %1522 : vector<2x16xf32>
    %1524 = math.tanh %1523 : vector<2x16xf32>
    %1525 = arith.mulf %1520, %1524 : vector<2x16xf32>
    %1526 = tpu.concatenate %1503, %1525 in 1 : vector<2x16xf32>, vector<2x16xf32> -> vector<2x32xf32>
    %cst_407 = arith.constant dense<0.000000e+00> : vector<2x128xf32>
    %1527 = tpu.matmul %1526, %1233, %cst_407 {dimension_numbers = #tpu.dot_dimension_numbers<[1], [0], [0], [1], [0, 0, 1, 1], [], []>} : vector<2x32xf32>, vector<32x128xf32>, vector<2x128xf32> -> vector<2x128xf32>
    %1528 = vector.extract_strided_slice %1231 {offsets = [12, 0], sizes = [2, 64], strides = [1, 1]} : vector<16x128xf32> to vector<2x64xf32>
    %1529 = vector.extract_strided_slice %1527 {offsets = [0, 0], sizes = [2, 64], strides = [1, 1]} : vector<2x128xf32> to vector<2x64xf32>
    %1530 = arith.addf %1528, %1529 : vector<2x64xf32>
    %1531 = vector.extract_strided_slice %1231 {offsets = [2, 64], sizes = [2, 64], strides = [1, 1]} : vector<16x128xf32> to vector<2x64xf32>
    %1532 = vector.extract_strided_slice %1527 {offsets = [0, 64], sizes = [2, 64], strides = [1, 1]} : vector<2x128xf32> to vector<2x64xf32>
    %1533 = arith.addf %1531, %1532 : vector<2x64xf32>
    %1534 = math.tanh %1530 : vector<2x64xf32>
    %1535 = vector.extract_strided_slice %1534 {offsets = [0, 0], sizes = [2, 16], strides = [1, 1]} : vector<2x64xf32> to vector<2x16xf32>
    %cst_408 = arith.constant 5.000000e-01 : f32
    %1536 = vector.broadcast %cst_408 : f32 to vector<2x16xf32>
    %1537 = arith.mulf %1536, %1535 : vector<2x16xf32>
    %cst_409 = arith.constant 5.000000e-01 : f32
    %1538 = vector.broadcast %cst_409 : f32 to vector<2x16xf32>
    %1539 = arith.addf %1537, %1538 : vector<2x16xf32>
    %1540 = vector.extract_strided_slice %1534 {offsets = [0, 16], sizes = [2, 16], strides = [1, 1]} : vector<2x64xf32> to vector<2x16xf32>
    %cst_410 = arith.constant 5.000000e-01 : f32
    %1541 = vector.broadcast %cst_410 : f32 to vector<2x16xf32>
    %1542 = arith.mulf %1541, %1540 : vector<2x16xf32>
    %cst_411 = arith.constant 5.000000e-01 : f32
    %1543 = vector.broadcast %cst_411 : f32 to vector<2x16xf32>
    %1544 = arith.addf %1542, %1543 : vector<2x16xf32>
    %1545 = vector.extract_strided_slice %1534 {offsets = [0, 32], sizes = [2, 16], strides = [1, 1]} : vector<2x64xf32> to vector<2x16xf32>
    %1546 = vector.extract_strided_slice %1534 {offsets = [0, 48], sizes = [2, 16], strides = [1, 1]} : vector<2x64xf32> to vector<2x16xf32>
    %cst_412 = arith.constant 5.000000e-01 : f32
    %1547 = vector.broadcast %cst_412 : f32 to vector<2x16xf32>
    %1548 = arith.mulf %1547, %1546 : vector<2x16xf32>
    %cst_413 = arith.constant 5.000000e-01 : f32
    %1549 = vector.broadcast %cst_413 : f32 to vector<2x16xf32>
    %1550 = arith.addf %1548, %1549 : vector<2x16xf32>
    %1551 = arith.mulf %1544, %1501 : vector<2x16xf32>
    %1552 = arith.mulf %1539, %1545 : vector<2x16xf32>
    %1553 = arith.addf %1551, %1552 : vector<2x16xf32>
    %1554 = math.tanh %1553 : vector<2x16xf32>
    %1555 = arith.mulf %1550, %1554 : vector<2x16xf32>
    %1556 = math.tanh %1533 : vector<2x64xf32>
    %1557 = vector.extract_strided_slice %1556 {offsets = [0, 0], sizes = [2, 16], strides = [1, 1]} : vector<2x64xf32> to vector<2x16xf32>
    %cst_414 = arith.constant 5.000000e-01 : f32
    %1558 = vector.broadcast %cst_414 : f32 to vector<2x16xf32>
    %1559 = arith.mulf %1558, %1557 : vector<2x16xf32>
    %cst_415 = arith.constant 5.000000e-01 : f32
    %1560 = vector.broadcast %cst_415 : f32 to vector<2x16xf32>
    %1561 = arith.addf %1559, %1560 : vector<2x16xf32>
    %1562 = vector.extract_strided_slice %1556 {offsets = [0, 16], sizes = [2, 16], strides = [1, 1]} : vector<2x64xf32> to vector<2x16xf32>
    %cst_416 = arith.constant 5.000000e-01 : f32
    %1563 = vector.broadcast %cst_416 : f32 to vector<2x16xf32>
    %1564 = arith.mulf %1563, %1562 : vector<2x16xf32>
    %cst_417 = arith.constant 5.000000e-01 : f32
    %1565 = vector.broadcast %cst_417 : f32 to vector<2x16xf32>
    %1566 = arith.addf %1564, %1565 : vector<2x16xf32>
    %1567 = vector.extract_strided_slice %1556 {offsets = [0, 32], sizes = [2, 16], strides = [1, 1]} : vector<2x64xf32> to vector<2x16xf32>
    %1568 = vector.extract_strided_slice %1556 {offsets = [0, 48], sizes = [2, 16], strides = [1, 1]} : vector<2x64xf32> to vector<2x16xf32>
    %cst_418 = arith.constant 5.000000e-01 : f32
    %1569 = vector.broadcast %cst_418 : f32 to vector<2x16xf32>
    %1570 = arith.mulf %1569, %1568 : vector<2x16xf32>
    %cst_419 = arith.constant 5.000000e-01 : f32
    %1571 = vector.broadcast %cst_419 : f32 to vector<2x16xf32>
    %1572 = arith.addf %1570, %1571 : vector<2x16xf32>
    %1573 = arith.mulf %1566, %1523 : vector<2x16xf32>
    %1574 = arith.mulf %1561, %1567 : vector<2x16xf32>
    %1575 = arith.addf %1573, %1574 : vector<2x16xf32>
    %1576 = math.tanh %1575 : vector<2x16xf32>
    %1577 = arith.mulf %1572, %1576 : vector<2x16xf32>
    %1578 = tpu.concatenate %1555, %1577 in 1 : vector<2x16xf32>, vector<2x16xf32> -> vector<2x32xf32>
    %cst_420 = arith.constant dense<0.000000e+00> : vector<2x128xf32>
    %1579 = tpu.matmul %1578, %1233, %cst_420 {dimension_numbers = #tpu.dot_dimension_numbers<[1], [0], [0], [1], [0, 0, 1, 1], [], []>} : vector<2x32xf32>, vector<32x128xf32>, vector<2x128xf32> -> vector<2x128xf32>
    %1580 = vector.extract_strided_slice %1231 {offsets = [14, 0], sizes = [2, 64], strides = [1, 1]} : vector<16x128xf32> to vector<2x64xf32>
    %1581 = vector.extract_strided_slice %1579 {offsets = [0, 0], sizes = [2, 64], strides = [1, 1]} : vector<2x128xf32> to vector<2x64xf32>
    %1582 = arith.addf %1580, %1581 : vector<2x64xf32>
    %1583 = vector.extract_strided_slice %1231 {offsets = [0, 64], sizes = [2, 64], strides = [1, 1]} : vector<16x128xf32> to vector<2x64xf32>
    %1584 = vector.extract_strided_slice %1579 {offsets = [0, 64], sizes = [2, 64], strides = [1, 1]} : vector<2x128xf32> to vector<2x64xf32>
    %1585 = arith.addf %1583, %1584 : vector<2x64xf32>
    %1586 = math.tanh %1582 : vector<2x64xf32>
    %1587 = vector.extract_strided_slice %1586 {offsets = [0, 0], sizes = [2, 16], strides = [1, 1]} : vector<2x64xf32> to vector<2x16xf32>
    %cst_421 = arith.constant 5.000000e-01 : f32
    %1588 = vector.broadcast %cst_421 : f32 to vector<2x16xf32>
    %1589 = arith.mulf %1588, %1587 : vector<2x16xf32>
    %cst_422 = arith.constant 5.000000e-01 : f32
    %1590 = vector.broadcast %cst_422 : f32 to vector<2x16xf32>
    %1591 = arith.addf %1589, %1590 : vector<2x16xf32>
    %1592 = vector.extract_strided_slice %1586 {offsets = [0, 16], sizes = [2, 16], strides = [1, 1]} : vector<2x64xf32> to vector<2x16xf32>
    %cst_423 = arith.constant 5.000000e-01 : f32
    %1593 = vector.broadcast %cst_423 : f32 to vector<2x16xf32>
    %1594 = arith.mulf %1593, %1592 : vector<2x16xf32>
    %cst_424 = arith.constant 5.000000e-01 : f32
    %1595 = vector.broadcast %cst_424 : f32 to vector<2x16xf32>
    %1596 = arith.addf %1594, %1595 : vector<2x16xf32>
    %1597 = vector.extract_strided_slice %1586 {offsets = [0, 32], sizes = [2, 16], strides = [1, 1]} : vector<2x64xf32> to vector<2x16xf32>
    %1598 = vector.extract_strided_slice %1586 {offsets = [0, 48], sizes = [2, 16], strides = [1, 1]} : vector<2x64xf32> to vector<2x16xf32>
    %cst_425 = arith.constant 5.000000e-01 : f32
    %1599 = vector.broadcast %cst_425 : f32 to vector<2x16xf32>
    %1600 = arith.mulf %1599, %1598 : vector<2x16xf32>
    %cst_426 = arith.constant 5.000000e-01 : f32
    %1601 = vector.broadcast %cst_426 : f32 to vector<2x16xf32>
    %1602 = arith.addf %1600, %1601 : vector<2x16xf32>
    %1603 = arith.mulf %1596, %1553 : vector<2x16xf32>
    %1604 = arith.mulf %1591, %1597 : vector<2x16xf32>
    %1605 = arith.addf %1603, %1604 : vector<2x16xf32>
    %1606 = math.tanh %1605 : vector<2x16xf32>
    %1607 = arith.mulf %1602, %1606 : vector<2x16xf32>
    %1608 = math.tanh %1585 : vector<2x64xf32>
    %1609 = vector.extract_strided_slice %1608 {offsets = [0, 0], sizes = [2, 16], strides = [1, 1]} : vector<2x64xf32> to vector<2x16xf32>
    %cst_427 = arith.constant 5.000000e-01 : f32
    %1610 = vector.broadcast %cst_427 : f32 to vector<2x16xf32>
    %1611 = arith.mulf %1610, %1609 : vector<2x16xf32>
    %cst_428 = arith.constant 5.000000e-01 : f32
    %1612 = vector.broadcast %cst_428 : f32 to vector<2x16xf32>
    %1613 = arith.addf %1611, %1612 : vector<2x16xf32>
    %1614 = vector.extract_strided_slice %1608 {offsets = [0, 16], sizes = [2, 16], strides = [1, 1]} : vector<2x64xf32> to vector<2x16xf32>
    %cst_429 = arith.constant 5.000000e-01 : f32
    %1615 = vector.broadcast %cst_429 : f32 to vector<2x16xf32>
    %1616 = arith.mulf %1615, %1614 : vector<2x16xf32>
    %cst_430 = arith.constant 5.000000e-01 : f32
    %1617 = vector.broadcast %cst_430 : f32 to vector<2x16xf32>
    %1618 = arith.addf %1616, %1617 : vector<2x16xf32>
    %1619 = vector.extract_strided_slice %1608 {offsets = [0, 32], sizes = [2, 16], strides = [1, 1]} : vector<2x64xf32> to vector<2x16xf32>
    %1620 = vector.extract_strided_slice %1608 {offsets = [0, 48], sizes = [2, 16], strides = [1, 1]} : vector<2x64xf32> to vector<2x16xf32>
    %cst_431 = arith.constant 5.000000e-01 : f32
    %1621 = vector.broadcast %cst_431 : f32 to vector<2x16xf32>
    %1622 = arith.mulf %1621, %1620 : vector<2x16xf32>
    %cst_432 = arith.constant 5.000000e-01 : f32
    %1623 = vector.broadcast %cst_432 : f32 to vector<2x16xf32>
    %1624 = arith.addf %1622, %1623 : vector<2x16xf32>
    %1625 = arith.mulf %1618, %1575 : vector<2x16xf32>
    %1626 = arith.mulf %1613, %1619 : vector<2x16xf32>
    %1627 = arith.addf %1625, %1626 : vector<2x16xf32>
    %1628 = math.tanh %1627 : vector<2x16xf32>
    %1629 = arith.mulf %1624, %1628 : vector<2x16xf32>
    %1630 = tpu.concatenate %1250, %1295, %1347, %1399, %1451, %1503, %1555, %1607 in 0 : vector<2x16xf32>, vector<2x16xf32>, vector<2x16xf32>, vector<2x16xf32>, vector<2x16xf32>, vector<2x16xf32>, vector<2x16xf32>, vector<2x16xf32> -> vector<16x16xf32>
    %1631 = tpu.concatenate %1629, %1577, %1525, %1473, %1421, %1369, %1317, %1265 in 0 : vector<2x16xf32>, vector<2x16xf32>, vector<2x16xf32>, vector<2x16xf32>, vector<2x16xf32>, vector<2x16xf32>, vector<2x16xf32>, vector<2x16xf32> -> vector<16x16xf32>
    %1632 = tpu.concatenate %1630, %1631 in 1 : vector<16x16xf32>, vector<16x16xf32> -> vector<16x32xf32>
    %c0_433 = arith.constant 0 : index
    %c0_434 = arith.constant 0 : index
    %1633 = vector.load %arg4[%c0_433, %c0_434] : memref<32x128xf32, #tpu.memory_space<vmem>>, vector<32x128xf32>
    %cst_435 = arith.constant dense<0.000000e+00> : vector<16x128xf32>
    %1634 = tpu.matmul %1632, %1633, %cst_435 {dimension_numbers = #tpu.dot_dimension_numbers<[1], [0], [0], [1], [0, 0, 1, 1], [], []>} : vector<16x32xf32>, vector<32x128xf32>, vector<16x128xf32> -> vector<16x128xf32>
    %c0_436 = arith.constant 0 : index
    %c0_437 = arith.constant 0 : index
    %1635 = vector.load %arg5[%c0_436, %c0_437] : memref<1x128xf32, #tpu.memory_space<vmem>>, vector<1x128xf32>
    %1636 = vector.broadcast %1635 : vector<1x128xf32> to vector<16x128xf32>
    %1637 = arith.addf %1634, %1636 : vector<16x128xf32>
    %c0_438 = arith.constant 0 : index
    %c0_439 = arith.constant 0 : index
    %1638 = vector.load %arg6[%c0_438, %c0_439] : memref<16x128xf32, #tpu.memory_space<vmem>>, vector<16x128xf32>
    tpu.vector_store %arg6[%c0_438, %c0_439], %1637 {strides = array<i32>} : memref<16x128xf32, #tpu.memory_space<vmem>>, vector<16x128xf32>,
    return
  }
}

</mosaic_0001>

<bundles_post_ra>
// kernel: bilstm_forward.1
= control target key start
LH: loop header
LB: loop body
LE: loop exit
PB: predicated region body
PF: predicated region fallthrough
CT: control target
= control target key end

     0   :  { %11 = vsyncpa [#allocation3], 0  ;;  %s4074_s0 = inlined_call_operand.vmem [shape: f32[16,32], index: 0, kind: input, shape index: {}]   ;;  %s4075_s1 = inlined_call_operand.vmem [shape: f32[4,32,128], index: 1, kind: input, shape index: {}]   ;;  %s4076_s2 = inlined_call_operand.hbm [shape: f32[4,32,128], index: 2, kind: input, shape index: {}]   ;;  %s4077_s3 = inlined_call_operand.vmem [shape: f32[4,1,128], index: 3, kind: input, shape index: {}]   ;;  %s4078_s4 = inlined_call_operand.hbm [shape: f32[32,128], index: 4, kind: input, shape index: {}]   ;;  %s4079_s5 = inlined_call_operand.vmem [shape: f32[1,128], index: 5, kind: input, shape index: {}]   ;;  %s4080_s6 = inlined_call_operand.vmem [shape: f32[16,128], index: 6, kind: output, shape index: {}]  }
   0x1   :  { %s21_s23 = sshll.u32 %s4076_s2, 4  ;;  %s22_s23 = int_to_ptr.hbm [resolvable:$true] %s21_s23 }
   0x2   :  { %12 = vsyncpa [#allocation5], 0  ;;  %s3311_s24 = smov [#allocation2]   ;;  %s36_s28 = sshll.u32 %s4078_s4, 4  ;;  %s37_s28 = int_to_ptr.hbm [resolvable:$true] %s36_s28 }
   0x3   :  { %s23_s25 = sshll.u32 %s3311_s24, 4  ;;  %s3312_s29 = smov 128   ;;  %s24_s25 = int_to_ptr.vmem [resolvable:$true] %s23_s25 }
   0x4   :  { %s3313_s30 = smov 8   ;;  %s3314_s7 = smov [#allocation4]  }
   0x5   :  { %29 = dma.hbm_to_vmem [thread:$0]  %s22_s23, 2048, %s24_s25, [#allocation3], %s3312_s29, %s3312_s29, %s3313_s30  }
   0x6   :  { %s38_s8 = sshll.u32 %s3314_s7, 4  ;;  %s39_s8 = int_to_ptr.vmem [resolvable:$true] %s38_s8 }
   0x7   :  { %44 = dma.hbm_to_vmem [thread:$0]  %s37_s28, 512, %s39_s8, [#allocation5], %s3312_s29, %s3312_s29, %s3313_s30  }
   0x8   :  { %3307 = dma.done.wait [#allocation3], 2048  }
   0x9   :  { %3308 = vsyncadd [#allocation3], 4294965248 }
   0xa   :  { %3309 = dma.done.wait [#allocation5], 512  }
   0xb   :  { %3310 = vsyncadd [#allocation5], 4294966784  ;;  %v60_v0 = vld [vmem:[%s4075_s1 + $0x18] sm:$0xff]  ;;  %v59_v1 = vld [vmem:[%s4075_s1 + $0x10] sm:$0xff]  ;;  %vm65_vm0 = vcmask 261120   ;;  %s3316_s21 = smov 48  }
   0xc   :  { %2985 = vmatpush.msra.mxu1 %v60_v0  ;;  %84 = vmatpush.msra.mxu0 %v60_v0  ;;  %v58_v2 = vld [vmem:[%s4075_s1 + $0x8] sm:$0xff]  ;;  %v57_v3 = vld [vmem:[%s4075_s1] sm:$0xff]  ;;  %s3317_s22 = smov 80   ;;  %s3318_s23 = smov 32   ;;  %v98_v29 = vld [vmem:[#allocation2 + $0x18] sm:$0xff]  ;;  %vm136_vm1 = vcmask 130048  }
   0xd   :  { %v56_v4 = vld [vmem:[%s4074_s0 + $0x8] sm:$0xff]  ;;  %v55_v5 = vld [vmem:[%s4074_s0] sm:$0xff]  ;;  %s3315_s0 = smov 96   ;;  %s3319_s24 = smov 16   ;;  %v97_v30 = vld [vmem:[#allocation2 + $0x10] sm:$0xff]  ;;  %244 = vmatpush.msra.mxu2 %v98_v29  ;;  %331 = vmatpush.msra.mxu3 %v98_v29  ;;  %vm733_vm2 = vcmask 1041408  }
   0xe   :  { %2986 = vmatpush.msra.mxu1 %v59_v1  ;;  %85 = vmatpush.msra.mxu0 %v59_v1  ;;  %v2998_v6 = vld [vmem:[%s4077_s3] ss:$0 sm:$0xff]  ;;  %v96_v31 = vld [vmem:[#allocation2 + $0x8] sm:$0xff]  ;;  %vm735_vm3 = vcmask 1043456   ;;  %vm737_vm4 = vcmask 1045504  }
   0xf   :  { %245 = vmatpush.msra.mxu2 %v97_v30  ;;  %v95_v32 = vld [vmem:[#allocation2] sm:$0xff]  ;;  %332 = vmatpush.msra.mxu3 %v97_v30 }
  0x10   :  { %2987 = vmatpush.msra.mxu1 %v58_v2  ;;  %86 = vmatpush.msra.mxu0 %v58_v2 }
  0x11   :  { %246 = vmatpush.msra.mxu2 %v96_v31  ;;  %333 = vmatpush.msra.mxu3 %v96_v31 }
  0x12   :  { %2988 = vmatpush.msra.mxu1 %v57_v3  ;;  %87 = vmatpush.msra.mxu0 %v57_v3 }
  0x13   :  { %2933 = vmatmul.msk.f32.vlgmr.msra.gmra.mxu1 %vm65_vm0, %v56_v4  ;;  %2932 = vmatmul.msk.f32.vlgmr.msra.gmra.mxu0 %vm65_vm0, %v55_v5 }
  0x14   :  { %153 = vmatpush.msrb.mxu1 %v98_v29  ;;  %674 = vmatpush.msrb.mxu0 %v98_v29 }
  0x15   :  { %247 = vmatpush.msra.mxu2 %v95_v32  ;;  %334 = vmatpush.msra.mxu3 %v95_v32 }
  0x16   :  { %154 = vmatpush.msrb.mxu1 %v97_v30  ;;  %675 = vmatpush.msrb.mxu0 %v97_v30 }
  0x17   :  { %500 = vmatpush.msrb.mxu2 %v98_v29  ;;  %587 = vmatpush.msrb.mxu3 %v98_v29 }
  0x18   :  { %155 = vmatpush.msrb.mxu1 %v96_v31  ;;  %676 = vmatpush.msrb.mxu0 %v96_v31 }
  0x19   :  { %501 = vmatpush.msrb.mxu2 %v97_v30  ;;  %588 = vmatpush.msrb.mxu3 %v97_v30 }
  0x1a   :  { %156 = vmatpush.msrb.mxu1 %v95_v32  ;;  %677 = vmatpush.msrb.mxu0 %v95_v32 }
  0x1b   :  { %502 = vmatpush.msrb.mxu2 %v96_v31  ;;  %589 = vmatpush.msrb.mxu3 %v96_v31 }
  0x1c   :  { %416 = vmatpush.msra.mxu1 %v98_v29 }
  0x1d   :  { %503 = vmatpush.msrb.mxu2 %v95_v32  ;;  %590 = vmatpush.msrb.mxu3 %v95_v32 }
  0x1e   :  { %417 = vmatpush.msra.mxu1 %v97_v30 }
  0x20   :  { %418 = vmatpush.msra.mxu1 %v96_v31 }
  0x22   :  { %419 = vmatpush.msra.mxu1 %v95_v32 }
  0x90   :  { %v92_v7 = vpop.f32.mrf.mxu1  ;;  %v89_v9 = vpop.f32.mrf.mxu0 }
  0x91   :  { %v3384_v8 = vadd.f32 %v2998_v6, %v92_v7  ;;  %v3387_v10 = vadd.f32 %v2998_v6, %v89_v9 }
  0x93   :  { %3003 = vtanh.f32 %v3384_v8 }
  0x94   :  { %3005 = vtanh.f32 %v3387_v10 }
  0x99   :  { %v3004_v11 = vpop.eup %3003 }
  0x9a   :  { %117 = vrot.lane.b32.xlu0 %v3004_v11, %s3315_s0  ;;  %v3006_v12 = vpop.eup %3005  ;;  %v114_v13 = vmul.f32 0.5, %v3004_v11 }
  0x9b   :  { %v100_v17 = vmul.f32 0.5, %v3006_v12 }
  0x9c   :  { %v115_v14 = vadd.f32 0.5, %v114_v13 }
  0x9d   :  { %v101_v18 = vadd.f32 0.5, %v100_v17 }
  0xa2   :  { %103 = vrot.lane.b32.xlu0 %v3006_v12, %s3315_s0 }
 0x10c   :  { %v118_v15 = vpop.permute.xlu0 %117 }
 0x10d   :  { %v120_v16 = vmul.f32 %v118_v15, %v115_v14 }
 0x10f   :  { %3007 = vtanh.f32 %v120_v16  ;;  %v197_v28 = vrot.slane %v120_v16, 2 }
 0x114   :  { %v104_v19 = vpop.permute.xlu0 %103 }
 0x115   :  { %v3008_v20 = vpop.eup %3007  ;;  %v3392_v21 = vmul.f32 %v104_v19, %v101_v18 }
 0x116   :  { %123 = vrot.lane.b32.xlu1 %v3008_v20, %s3316_s21 }
 0x117   :  { %3009 = vtanh.f32 %v3392_v21  ;;  %v172_v43 = vrot.slane %v3392_v21, 6 }
 0x11d   :  { %v3010_v22 = vpop.eup %3009 }
 0x11e   :  { %109 = vrot.lane.b32.xlu1 %v3010_v22, %s3316_s21 }
 0x188   :  { %v124_v23 = vpop.permute.xlu1 %123 }
 0x189   :  { %v3401_v26 = vmul.f32 %v124_v23, %v115_v14 }
 0x18b   :  { %v132_v27 = vrot.slane %v3401_v26, 6 }
 0x190   :  { %v110_v24 = vpop.permute.xlu1 %109 }
 0x191   :  { %v3397_v25 = vmul.f32 %v110_v24, %v101_v18 }
 0x193   :  { %128 = vrot.lane.b32.xlu2 %v3397_v25, %s3317_s22 }
 0x19b   :  { %133 = vrot.lane.b32.xlu2 %v132_v27, %s3318_s23 }
 0x1a3   :  { %198 = vrot.lane.b32.xlu2 %v197_v28, %s3319_s24 }
 0x1ed   :  { %v129_v33 = vpop.permute.xlu2 %128 }
 0x1f5   :  { %v134_v34 = vpop.permute.xlu2 %133 }
 0x1f6   :  { %v137_v35 = vsel %vm136_vm1, %v129_v33, %v134_v34 }
 0x1f7   :  { %2934 = vmatmul.msk.f32.vlgmr.msrb.gmra.mxu1 %vm65_vm0, %v137_v35 }
 0x1fd   :  { %v199_v52 = vpop.permute.xlu2 %198 }
 0x274   :  { %v158_v36 = vpop.f32.mrf.mxu1 }
 0x275   :  { %v162_v37 = vrot.slane %v158_v36, 6  ;;  %v165_v38 = vrot.slane %v158_v36, 4 }
 0x277   :  { %v164_v39 = vadd.f32 %v162_v37, %v3387_v10  ;;  %v167_v40 = vadd.f32 %v165_v38, %v3384_v8 }
 0x279   :  { %3011 = vtanh.f32 %v164_v39 }
 0x27a   :  { %3013 = vtanh.f32 %v167_v40 }
 0x27f   :  { %v3012_v41 = vpop.eup %3011 }
 0x280   :  { %v3014_v42 = vpop.eup %3013  ;;  %178 = vrot.lane.b32.xlu1 %v3012_v41, %s3315_s0  ;;  %v169_v44 = vmul.f32 0.5, %v3012_v41 }
 0x281   :  { %203 = vrot.lane.b32.xlu0 %v3014_v42, %s3315_s0  ;;  %v194_v45 = vmul.f32 0.5, %v3014_v42 }
 0x282   :  { %v170_v46 = vadd.f32 0.5, %v169_v44 }
 0x283   :  { %v195_v47 = vadd.f32 0.5, %v194_v45 }
 0x285   :  { %v201_v58 = vmul.f32 %v199_v52, %v195_v47 }
 0x289   :  { %173 = vrot.lane.b32.xlu0 %v172_v43, %s3319_s24 }
 0x2f2   :  { %v179_v48 = vpop.permute.xlu1 %178 }
 0x2f3   :  { %v204_v49 = vpop.permute.xlu0 %203  ;;  %v181_v50 = vmul.f32 %v179_v48, %v170_v46 }
 0x2f4   :  { %v206_v51 = vmul.f32 %v204_v49, %v195_v47 }
 0x2f5   :  { %183 = vrot.lane.b32.xlu2 %v181_v50, %s3319_s24 }
 0x2f6   :  { %208 = vrot.lane.b32.xlu1 %v206_v51, %s3319_s24 }
 0x2fb   :  { %v174_v53 = vpop.permute.xlu0 %173 }
 0x2fc   :  { %v176_v54 = vmul.f32 %v174_v53, %v170_v46 }
 0x34f   :  { %v184_v55 = vpop.permute.xlu2 %183 }
 0x350   :  { %v186_v56 = vadd.f32 %v184_v55, %v176_v54 }
 0x352   :  { %3015 = vtanh.f32 %v186_v56  ;;  %v263_v24 = vrot.slane %v186_v56, 6 }
 0x358   :  { %v3016_v57 = vpop.eup %3015 }
 0x359   :  { %189 = vrot.lane.b32.xlu1 %v3016_v57, %s3318_s23 }
 0x368   :  { %v209_v59 = vpop.permute.xlu1 %208 }
 0x369   :  { %v211_v60 = vadd.f32 %v209_v59, %v201_v58 }
 0x36b   :  { %3017 = vtanh.f32 %v211_v60  ;;  %v286_v31 = vrot.slane %v211_v60, 2 }
 0x371   :  { %v3018_v61 = vpop.eup %3017 }
 0x372   :  { %214 = vrot.lane.b32.xlu0 %v3018_v61, %s3318_s23 }
 0x3cb   :  { %v190_v62 = vpop.permute.xlu1 %189 }
 0x3cc   :  { %v192_v63 = vmul.f32 %v190_v62, %v170_v46 }
 0x3ce   :  { %219 = vrot.lane.b32.xlu2 %v192_v63, %s3317_s22  ;;  %v734_v40 = vsel %vm733_vm2, %v3397_v25, %v192_v63 }
 0x3e4   :  { %v215_v0 = vpop.permute.xlu0 %214 }
 0x3e5   :  { %v3419_v1 = vmul.f32 %v215_v0, %v195_v47 }
 0x3e7   :  { %v223_v2 = vrot.slane %v3419_v1, 2 }
 0x3e9   :  { %224 = vrot.lane.b32.xlu0 %v223_v2, %s3318_s23 }
 0x428   :  { %v220_v3 = vpop.permute.xlu2 %219 }
 0x45b   :  { %v225_v4 = vpop.permute.xlu0 %224 }
 0x45c   :  { %v227_v5 = vsel %vm136_vm1, %v220_v3, %v225_v4 }
 0x45d   :  { %v229_v6 = vrot.slane %v227_v5, 2 }
 0x45f   :  { %2935 = vmatmul.msk.f32.vlgmr.msra.gmra.mxu2 %vm65_vm0, %v229_v6 }
 0x4e2   :  { %v249_v7 = vpop.f32.mrf.mxu2 }
 0x4e3   :  { %v253_v9 = vrot.slane %v249_v7, 4  ;;  %v256_v11 = vrot.slane %v249_v7, 6 }
 0x4e5   :  { %v255_v12 = vadd.f32 %v253_v9, %v3387_v10  ;;  %v258_v13 = vadd.f32 %v256_v11, %v3384_v8 }
 0x4e7   :  { %3019 = vtanh.f32 %v255_v12 }
 0x4e8   :  { %3021 = vtanh.f32 %v258_v13 }
 0x4ed   :  { %v3020_v14 = vpop.eup %3019 }
 0x4ee   :  { %v3022_v15 = vpop.eup %3021  ;;  %267 = vrot.lane.b32.xlu2 %v3020_v14, %s3315_s0  ;;  %v260_v16 = vmul.f32 0.5, %v3020_v14 }
 0x4ef   :  { %290 = vrot.lane.b32.xlu1 %v3022_v15, %s3315_s0  ;;  %v283_v20 = vmul.f32 0.5, %v3022_v15 }
 0x4f0   :  { %v261_v17 = vadd.f32 0.5, %v260_v16 }
 0x4f1   :  { %v284_v21 = vadd.f32 0.5, %v283_v20 }
 0x4f2   :  { %v265_v27 = vmul.f32 %v263_v24, %v261_v17 }
 0x4f3   :  { %v288_v32 = vmul.f32 %v286_v31, %v284_v21 }
 0x548   :  { %v268_v18 = vpop.permute.xlu2 %267 }
 0x549   :  { %v270_v19 = vmul.f32 %v268_v18, %v261_v17 }
 0x54b   :  { %272 = vrot.lane.b32.xlu1 %v270_v19, %s3319_s24 }
 0x561   :  { %v291_v22 = vpop.permute.xlu1 %290 }
 0x562   :  { %v293_v23 = vmul.f32 %v291_v22, %v284_v21 }
 0x564   :  { %295 = vrot.lane.b32.xlu0 %v293_v23, %s3319_s24 }
 0x5bd   :  { %v273_v28 = vpop.permute.xlu1 %272 }
 0x5be   :  { %v275_v29 = vadd.f32 %v273_v28, %v265_v27 }
 0x5c0   :  { %3023 = vtanh.f32 %v275_v29  ;;  %v348_v2 = vrot.slane %v275_v29, 6 }
 0x5c6   :  { %v3024_v30 = vpop.eup %3023 }
 0x5c7   :  { %278 = vrot.lane.b32.xlu0 %v3024_v30, %s3318_s23 }
 0x5d6   :  { %v296_v33 = vpop.permute.xlu0 %295 }
 0x5d7   :  { %v298_v34 = vadd.f32 %v296_v33, %v288_v32 }
 0x5d9   :  { %3025 = vtanh.f32 %v298_v34  ;;  %v371_v60 = vrot.slane %v298_v34, 2 }
 0x5df   :  { %v3026_v35 = vpop.eup %3025 }
 0x5e0   :  { %301 = vrot.lane.b32.xlu2 %v3026_v35, %s3318_s23 }
 0x639   :  { %v279_v36 = vpop.permute.xlu0 %278 }
 0x63a   :  { %v302_v37 = vpop.permute.xlu2 %301  ;;  %v281_v38 = vmul.f32 %v279_v36, %v261_v17 }
 0x63b   :  { %v3433_v39 = vmul.f32 %v302_v37, %v284_v21 }
 0x63c   :  { %306 = vrot.lane.b32.xlu1 %v281_v38, %s3317_s22  ;;  %v736_v41 = vsel %vm735_vm3, %v734_v40, %v281_v38 }
 0x63d   :  { %v310_v42 = vrot.slane %v3433_v39, 6 }
 0x63f   :  { %311 = vrot.lane.b32.xlu2 %v310_v42, %s3318_s23 }
 0x699   :  { %v312_v43 = vpop.permute.xlu2 %311 }
 0x6ae   :  { %v307_v44 = vpop.permute.xlu1 %306 }
 0x6af   :  { %v314_v45 = vsel %vm136_vm1, %v307_v44, %v312_v43 }
 0x6b0   :  { %v316_v46 = vrot.slane %v314_v45, 4 }
 0x6b2   :  { %2936 = vmatmul.msk.f32.vlgmr.msra.gmra.mxu3 %vm65_vm0, %v316_v46 }
 0x735   :  { %v336_v47 = vpop.f32.mrf.mxu3 }
 0x736   :  { %v340_v48 = vrot.slane %v336_v47, 2  ;;  %v343_v49 = vadd.f32 %v336_v47, %v3384_v8 }
 0x738   :  { %v342_v25 = vadd.f32 %v340_v48, %v3387_v10  ;;  %3027 = vtanh.f32 %v343_v49 }
 0x73a   :  { %3029 = vtanh.f32 %v342_v25 }
 0x73e   :  { %v3028_v50 = vpop.eup %3027 }
 0x73f   :  { %375 = vrot.lane.b32.xlu0 %v3028_v50, %s3315_s0  ;;  %v368_v52 = vmul.f32 0.5, %v3028_v50 }
 0x740   :  { %v3030_v51 = vpop.eup %3029 }
 0x741   :  { %352 = vrot.lane.b32.xlu1 %v3030_v51, %s3315_s0  ;;  %v345_v53 = vmul.f32 0.5, %v3030_v51  ;;  %v369_v54 = vadd.f32 0.5, %v368_v52 }
 0x743   :  { %v346_v57 = vadd.f32 0.5, %v345_v53  ;;  %v373_v61 = vmul.f32 %v371_v60, %v369_v54 }
 0x745   :  { %v350_v3 = vmul.f32 %v348_v2, %v346_v57 }
 0x7b1   :  { %v376_v55 = vpop.permute.xlu0 %375 }
 0x7b2   :  { %v378_v56 = vmul.f32 %v376_v55, %v369_v54 }
 0x7b3   :  { %v353_v58 = vpop.permute.xlu1 %352 }
 0x7b4   :  { %v355_v59 = vmul.f32 %v353_v58, %v346_v57  ;;  %380 = vrot.lane.b32.xlu2 %v378_v56, %s3319_s24 }
 0x7b6   :  { %357 = vrot.lane.b32.xlu0 %v355_v59, %s3319_s24 }
 0x80e   :  { %v381_v62 = vpop.permute.xlu2 %380 }
 0x80f   :  { %v383_v63 = vadd.f32 %v381_v62, %v373_v61 }
 0x811   :  { %3031 = vtanh.f32 %v383_v63  ;;  %v456_v36 = vrot.slane %v383_v63, 2 }
 0x817   :  { %v3032_v0 = vpop.eup %3031 }
 0x818   :  { %386 = vrot.lane.b32.xlu1 %v3032_v0, %s3318_s23 }
 0x828   :  { %v358_v4 = vpop.permute.xlu0 %357 }
 0x829   :  { %v360_v5 = vadd.f32 %v358_v4, %v350_v3 }
 0x82b   :  { %3033 = vtanh.f32 %v360_v5  ;;  %v433_v35 = vrot.slane %v360_v5, 6 }
 0x831   :  { %v3034_v6 = vpop.eup %3033 }
 0x832   :  { %363 = vrot.lane.b32.xlu2 %v3034_v6, %s3318_s23 }
 0x88a   :  { %v387_v7 = vpop.permute.xlu1 %386 }
 0x88b   :  { %v3451_v9 = vmul.f32 %v387_v7, %v369_v54 }
 0x88c   :  { %v364_v11 = vpop.permute.xlu2 %363 }
 0x88d   :  { %v395_v12 = vrot.slane %v3451_v9, 2  ;;  %v366_v13 = vmul.f32 %v364_v11, %v346_v57 }
 0x88f   :  { %396 = vrot.lane.b32.xlu1 %v395_v12, %s3318_s23  ;;  %391 = vrot.lane.b32.xlu0 %v366_v13, %s3317_s22  ;;  %v3457_v14 = vsel %vm737_vm4, %v736_v41, %v366_v13 }
 0x901   :  { %v397_v15 = vpop.permute.xlu1 %396  ;;  %v392_v16 = vpop.permute.xlu0 %391 }
 0x902   :  { %v399_v17 = vsel %vm136_vm1, %v392_v16, %v397_v15 }
 0x903   :  { %v401_v18 = vrot.slane %v399_v17, 6 }
 0x905   :  { %2937 = vmatmul.msk.f32.vlgmr.msra.gmra.mxu1 %vm65_vm0, %v401_v18 }
 0x982   :  { %v421_v19 = vpop.f32.mrf.mxu1 }
 0x983   :  { %v424_v20 = vadd.f32 %v421_v19, %v3384_v8  ;;  %v426_v21 = vrot.slane %v421_v19, 2 }
 0x985   :  { %v428_v22 = vadd.f32 %v426_v21, %v3387_v10  ;;  %3035 = vtanh.f32 %v424_v20 }
 0x987   :  { %3037 = vtanh.f32 %v428_v22 }
 0x98b   :  { %v3036_v23 = vpop.eup %3035 }
 0x98c   :  { %437 = vrot.lane.b32.xlu0 %v3036_v23, %s3315_s0  ;;  %v430_v31 = vmul.f32 0.5, %v3036_v23 }
 0x98d   :  { %v3038_v24 = vpop.eup %3037 }
 0x98e   :  { %460 = vrot.lane.b32.xlu2 %v3038_v24, %s3315_s0  ;;  %v453_v27 = vmul.f32 0.5, %v3038_v24  ;;  %v431_v32 = vadd.f32 0.5, %v430_v31 }
 0x990   :  { %v454_v28 = vadd.f32 0.5, %v453_v27  ;;  %v435_v37 = vmul.f32 %v433_v35, %v431_v32 }
 0x992   :  { %v458_v41 = vmul.f32 %v456_v36, %v454_v28 }
 0x9e8   :  { %v461_v29 = vpop.permute.xlu2 %460 }
 0x9e9   :  { %v463_v30 = vmul.f32 %v461_v29, %v454_v28 }
 0x9eb   :  { %465 = vrot.lane.b32.xlu1 %v463_v30, %s3319_s24 }
 0x9fe   :  { %v438_v33 = vpop.permute.xlu0 %437 }
 0x9ff   :  { %v440_v34 = vmul.f32 %v438_v33, %v431_v32 }
 0xa01   :  { %442 = vrot.lane.b32.xlu2 %v440_v34, %s3319_s24 }
 0xa5b   :  { %v443_v38 = vpop.permute.xlu2 %442 }
 0xa5c   :  { %v445_v40 = vadd.f32 %v443_v38, %v435_v37 }
 0xa5d   :  { %v466_v42 = vpop.permute.xlu1 %465 }
 0xa5e   :  { %3039 = vtanh.f32 %v445_v40  ;;  %v468_v43 = vadd.f32 %v466_v42, %v458_v41  ;;  %v519_v5 = vrot.slane %v445_v40, 6 }
 0xa60   :  { %3041 = vtanh.f32 %v468_v43  ;;  %v542_v13 = vrot.slane %v468_v43, 2 }
 0xa64   :  { %v3040_v44 = vpop.eup %3039 }
 0xa65   :  { %448 = vrot.lane.b32.xlu1 %v3040_v44, %s3318_s23 }
 0xa66   :  { %v3042_v45 = vpop.eup %3041 }
 0xa67   :  { %471 = vrot.lane.b32.xlu0 %v3042_v45, %s3318_s23 }
 0xad7   :  { %v449_v46 = vpop.permute.xlu1 %448 }
 0xad8   :  { %v3469_v47 = vmul.f32 %v449_v46, %v431_v32 }
 0xad9   :  { %v472_v48 = vpop.permute.xlu0 %471 }
 0xada   :  { %v3471_v49 = vmul.f32 %v472_v48, %v454_v28  ;;  %476 = vrot.lane.b32.xlu2 %v3469_v47, %s3317_s22 }
 0xadc   :  { %v480_v25 = vrot.slane %v3471_v49, 6 }
 0xade   :  { %481 = vrot.lane.b32.xlu0 %v480_v25, %s3318_s23 }
 0xb34   :  { %v477_v50 = vpop.permute.xlu2 %476 }
 0xb50   :  { %v482_v51 = vpop.permute.xlu0 %481 }
 0xb51   :  { %v484_v52 = vsel %vm136_vm1, %v477_v50, %v482_v51 }
 0xb52   :  { %2938 = vmatmul.msk.f32.vlgmr.msrb.gmra.mxu2 %vm65_vm0, %v484_v52 }
 0xbd5   :  { %v505_v53 = vpop.f32.mrf.mxu2 }
 0xbd6   :  { %v509_v54 = vrot.slane %v505_v53, 6  ;;  %v512_v55 = vrot.slane %v505_v53, 4 }
 0xbd8   :  { %v511_v56 = vadd.f32 %v509_v54, %v3384_v8  ;;  %v514_v57 = vadd.f32 %v512_v55, %v3387_v10 }
 0xbda   :  { %3043 = vtanh.f32 %v511_v56 }
 0xbdb   :  { %3045 = vtanh.f32 %v514_v57 }
 0xbe0   :  { %v3044_v58 = vpop.eup %3043 }
 0xbe1   :  { %v3046_v59 = vpop.eup %3045  ;;  %523 = vrot.lane.b32.xlu2 %v3044_v58, %s3315_s0  ;;  %v516_v60 = vmul.f32 0.5, %v3044_v58 }
 0xbe2   :  { %546 = vrot.lane.b32.xlu1 %v3046_v59, %s3315_s0  ;;  %v539_v0 = vmul.f32 0.5, %v3046_v59 }
 0xbe3   :  { %v517_v61 = vadd.f32 0.5, %v516_v60 }
 0xbe4   :  { %v540_v2 = vadd.f32 0.5, %v539_v0 }
 0xbe5   :  { %v521_v6 = vmul.f32 %v519_v5, %v517_v61 }
 0xbe6   :  { %v544_v15 = vmul.f32 %v542_v13, %v540_v2 }
 0xc3b   :  { %v524_v62 = vpop.permute.xlu2 %523 }
 0xc3c   :  { %v526_v63 = vmul.f32 %v524_v62, %v517_v61 }
 0xc3e   :  { %528 = vrot.lane.b32.xlu1 %v526_v63, %s3319_s24 }
 0xc54   :  { %v547_v3 = vpop.permute.xlu1 %546 }
 0xc55   :  { %v549_v4 = vmul.f32 %v547_v3, %v540_v2 }
 0xc57   :  { %551 = vrot.lane.b32.xlu0 %v549_v4, %s3319_s24 }
 0xcb0   :  { %v529_v7 = vpop.permute.xlu1 %528 }
 0xcb1   :  { %v531_v11 = vadd.f32 %v529_v7, %v521_v6 }
 0xcb3   :  { %3047 = vtanh.f32 %v531_v11  ;;  %v606_v52 = vrot.slane %v531_v11, 6 }
 0xcb9   :  { %v3048_v12 = vpop.eup %3047 }
 0xcba   :  { %534 = vrot.lane.b32.xlu0 %v3048_v12, %s3318_s23 }
 0xcc9   :  { %v552_v16 = vpop.permute.xlu0 %551 }
 0xcca   :  { %v554_v17 = vadd.f32 %v552_v16, %v544_v15 }
 0xccc   :  { %3049 = vtanh.f32 %v554_v17  ;;  %v629_v46 = vrot.slane %v554_v17, 2 }
 0xcd2   :  { %v3050_v18 = vpop.eup %3049 }
 0xcd3   :  { %557 = vrot.lane.b32.xlu2 %v3050_v18, %s3318_s23 }
 0xd2c   :  { %v535_v19 = vpop.permute.xlu0 %534 }
 0xd2d   :  { %v558_v20 = vpop.permute.xlu2 %557  ;;  %v537_v21 = vmul.f32 %v535_v19, %v517_v61 }
 0xd2e   :  { %v3487_v22 = vmul.f32 %v558_v20, %v540_v2 }
 0xd2f   :  { %562 = vrot.lane.b32.xlu1 %v537_v21, %s3317_s22  ;;  %v739_v61 = vsel %vm733_vm2, %v3469_v47, %v537_v21 }
 0xd30   :  { %v566_v23 = vrot.slane %v3487_v22, 2 }
 0xd32   :  { %567 = vrot.lane.b32.xlu2 %v566_v23, %s3318_s23 }
 0xd8c   :  { %v568_v24 = vpop.permute.xlu2 %567 }
 0xda1   :  { %v563_v27 = vpop.permute.xlu1 %562 }
 0xda2   :  { %v570_v28 = vsel %vm136_vm1, %v563_v27, %v568_v24 }
 0xda3   :  { %v572_v29 = vrot.slane %v570_v28, 2 }
 0xda5   :  { %2939 = vmatmul.msk.f32.vlgmr.msrb.gmra.mxu3 %vm65_vm0, %v572_v29 }
 0xe28   :  { %v592_v30 = vpop.f32.mrf.mxu3 }
 0xe29   :  { %v596_v31 = vrot.slane %v592_v30, 4  ;;  %v599_v32 = vrot.slane %v592_v30, 6 }
 0xe2b   :  { %v598_v33 = vadd.f32 %v596_v31, %v3384_v8  ;;  %v601_v34 = vadd.f32 %v599_v32, %v3387_v10 }
 0xe2d   :  { %3051 = vtanh.f32 %v598_v33 }
 0xe2e   :  { %3053 = vtanh.f32 %v601_v34  ;;  %v2941_v34 = vld [vmem:[%s4075_s1 + $0x20] sm:$0xff] }
 0xe33   :  { %v3052_v35 = vpop.eup %3051 }
 0xe34   :  { %v3054_v36 = vpop.eup %3053  ;;  %610 = vrot.lane.b32.xlu1 %v3052_v35, %s3315_s0  ;;  %v603_v37 = vmul.f32 0.5, %v3052_v35 }
 0xe35   :  { %633 = vrot.lane.b32.xlu0 %v3054_v36, %s3315_s0  ;;  %v626_v38 = vmul.f32 0.5, %v3054_v36 }
 0xe36   :  { %v604_v40 = vadd.f32 0.5, %v603_v37 }
 0xe37   :  { %v627_v41 = vadd.f32 0.5, %v626_v38 }
 0xe38   :  { %v608_v53 = vmul.f32 %v606_v52, %v604_v40 }
 0xe39   :  { %v631_v48 = vmul.f32 %v629_v46, %v627_v41 }
 0xea6   :  { %v611_v42 = vpop.permute.xlu1 %610 }
 0xea7   :  { %v634_v43 = vpop.permute.xlu0 %633  ;;  %v613_v44 = vmul.f32 %v611_v42, %v604_v40 }
 0xea8   :  { %v636_v45 = vmul.f32 %v634_v43, %v627_v41 }
 0xea9   :  { %615 = vrot.lane.b32.xlu0 %v613_v44, %s3319_s24 }
 0xeaa   :  { %638 = vrot.lane.b32.xlu2 %v636_v45, %s3319_s24 }
 0xf04   :  { %v639_v25 = vpop.permute.xlu2 %638 }
 0xf05   :  { %v641_v50 = vadd.f32 %v639_v25, %v631_v48 }
 0xf07   :  { %3055 = vtanh.f32 %v641_v50  ;;  %v714_v24 = vrot.slane %v641_v50, 2 }
 0xf0d   :  { %v3056_v51 = vpop.eup %3055 }
 0xf0e   :  { %644 = vrot.lane.b32.xlu1 %v3056_v51, %s3318_s23 }
 0xf1b   :  { %v616_v54 = vpop.permute.xlu0 %615 }
 0xf1c   :  { %v618_v55 = vadd.f32 %v616_v54, %v608_v53 }
 0xf1e   :  { %3057 = vtanh.f32 %v618_v55  ;;  %v691_v27 = vrot.slane %v618_v55, 6 }
 0xf24   :  { %v3058_v56 = vpop.eup %3057 }
 0xf25   :  { %621 = vrot.lane.b32.xlu2 %v3058_v56, %s3318_s23 }
 0xf7f   :  { %v622_v57 = vpop.permute.xlu2 %621 }
 0xf80   :  { %v645_v58 = vpop.permute.xlu1 %644  ;;  %v624_v59 = vmul.f32 %v622_v57, %v604_v40 }
 0xf81   :  { %v3502_v60 = vmul.f32 %v645_v58, %v627_v41 }
 0xf82   :  { %649 = vrot.lane.b32.xlu0 %v624_v59, %s3317_s22  ;;  %v3508_v62 = vsel %vm735_vm3, %v739_v61, %v624_v59 }
 0xf83   :  { %v653_v63 = vrot.slane %v3502_v60, 6 }
 0xf85   :  { %654 = vrot.lane.b32.xlu1 %v653_v63, %s3318_s23 }
 0xff4   :  { %v650_v0 = vpop.permute.xlu0 %649 }
 0xff7   :  { %v655_v2 = vpop.permute.xlu1 %654 }
 0xff8   :  { %v657_v3 = vsel %vm136_vm1, %v650_v0, %v655_v2 }
 0xff9   :  { %v659_v4 = vrot.slane %v657_v3, 4 }
 0xffb   :  { %2940 = vmatmul.msk.f32.vlgmr.msrb.gmra.mxu0 %vm65_vm0, %v659_v4 }
0x1078   :  { %v679_v5 = vpop.f32.mrf.mxu0 }
0x1079   :  { %v683_v6 = vrot.slane %v679_v5, 2  ;;  %v686_v47 = vadd.f32 %v679_v5, %v3387_v10 }
0x107b   :  { %v685_v7 = vadd.f32 %v683_v6, %v3384_v8  ;;  %3059 = vtanh.f32 %v686_v47  ;;  %v745_v8 = vsel %vm733_vm2, %v3451_v9, %v3433_v39  ;;  %v2942_v9 = vld [vmem:[%s4075_s1 + $0x28] sm:$0xff] }
0x107c   :  { %v746_v21 = vsel %vm735_vm3, %v745_v8, %v3419_v1  ;;  %v2943_v1 = vld [vmem:[%s4075_s1 + $0x30] sm:$0xff] }
0x107d   :  { %3061 = vtanh.f32 %v685_v7  ;;  %v747_v23 = vsel %vm737_vm4, %v746_v21, %v3401_v26  ;;  %v2944_v26 = vld [vmem:[%s4075_s1 + $0x38] sm:$0xff] }
0x107e   :  { %794 = vmatpush.msrb.mxu1 %v2944_v26 }
0x1080   :  { %795 = vmatpush.msrb.mxu1 %v2943_v1 }
0x1081   :  { %v3060_v11 = vpop.eup %3059 }
0x1082   :  { %718 = vrot.lane.b32.xlu2 %v3060_v11, %s3315_s0  ;;  %v711_v13 = vmul.f32 0.5, %v3060_v11  ;;  %796 = vmatpush.msrb.mxu1 %v2942_v9  ;;  %v809_v11 = vld [vmem:[#allocation2 + $0x38] sm:$0xff] }
0x1083   :  { %v3062_v12 = vpop.eup %3061  ;;  %863 = vmatpush.msra.mxu2 %v809_v11  ;;  %954 = vmatpush.msra.mxu3 %v809_v11 }
0x1084   :  { %695 = vrot.lane.b32.xlu0 %v3062_v12, %s3315_s0  ;;  %v712_v15 = vadd.f32 0.5, %v711_v13  ;;  %v688_v18 = vmul.f32 0.5, %v3062_v12  ;;  %797 = vmatpush.msrb.mxu1 %v2941_v34  ;;  %v808_v12 = vld [vmem:[#allocation2 + $0x30] sm:$0xff]  ;;  %v807_v13 = vld [vmem:[#allocation2 + $0x28] sm:$0xff] }
0x1085   :  { %1041 = vmatpush.msra.mxu0 %v809_v11  ;;  %864 = vmatpush.msra.mxu2 %v808_v12 }
0x1086   :  { %v689_v19 = vadd.f32 0.5, %v688_v18  ;;  %v716_v28 = vmul.f32 %v714_v24, %v712_v15  ;;  %1384 = vmatpush.msra.mxu1 %v809_v11  ;;  %955 = vmatpush.msra.mxu3 %v808_v12 }
0x1087   :  { %1042 = vmatpush.msra.mxu0 %v808_v12  ;;  %865 = vmatpush.msra.mxu2 %v807_v13 }
0x1088   :  { %v693_v31 = vmul.f32 %v691_v27, %v689_v19  ;;  %1385 = vmatpush.msra.mxu1 %v808_v12  ;;  %956 = vmatpush.msra.mxu3 %v807_v13 }
0x1089   :  { %1043 = vmatpush.msra.mxu0 %v807_v13 }
0x108a   :  { %1386 = vmatpush.msra.mxu1 %v807_v13 }
0x10dc   :  { %v719_v16 = vpop.permute.xlu2 %718 }
0x10dd   :  { %v721_v17 = vmul.f32 %v719_v16, %v712_v15 }
0x10df   :  { %723 = vrot.lane.b32.xlu1 %v721_v17, %s3319_s24 }
0x10f6   :  { %v696_v20 = vpop.permute.xlu0 %695 }
0x10f7   :  { %v698_v10 = vmul.f32 %v696_v20, %v689_v19 }
0x10f9   :  { %700 = vrot.lane.b32.xlu2 %v698_v10, %s3319_s24 }
0x1101   :  { %750 = vrot.lane.b32.xlu2 %v3457_v14, %s3317_s22 }
0x1109   :  { %760 = vrot.lane.b32.xlu2 %v747_v23, %s3318_s23 }
0x1151   :  { %v724_v29 = vpop.permute.xlu1 %723 }
0x1152   :  { %v726_v30 = vadd.f32 %v724_v29, %v716_v28 }
0x1153   :  { %v701_v32 = vpop.permute.xlu2 %700 }
0x1154   :  { %3063 = vtanh.f32 %v726_v30  ;;  %v703_v14 = vadd.f32 %v701_v32, %v693_v31 }
0x1156   :  { %3065 = vtanh.f32 %v703_v14 }
0x115a   :  { %v3064_v33 = vpop.eup %3063 }
0x115b   :  { %729 = vrot.lane.b32.xlu0 %v3064_v33, %s3318_s23  ;;  %v751_v44 = vpop.permute.xlu2 %750 }
0x115c   :  { %v3066_v39 = vpop.eup %3065 }
0x115d   :  { %706 = vrot.lane.b32.xlu1 %v3066_v39, %s3318_s23 }
0x1163   :  { %v761_v25 = vpop.permute.xlu2 %760 }
0x11cd   :  { %v730_v35 = vpop.permute.xlu0 %729 }
0x11ce   :  { %v732_v36 = vmul.f32 %v730_v35, %v712_v15  ;;  %v806_v15 = vld [vmem:[#allocation2 + $0x20] sm:$0xff] }
0x11cf   :  { %v707_v37 = vpop.permute.xlu1 %706  ;;  %866 = vmatpush.msra.mxu2 %v806_v15  ;;  %957 = vmatpush.msra.mxu3 %v806_v15 }
0x11d0   :  { %v709_v38 = vmul.f32 %v707_v37, %v689_v19  ;;  %v742_v40 = vsel %vm733_vm2, %v732_v36, %v3502_v60  ;;  %1044 = vmatpush.msra.mxu0 %v806_v15  ;;  %1387 = vmatpush.msra.mxu1 %v806_v15 }
0x11d1   :  { %v743_v41 = vsel %vm735_vm3, %v742_v40, %v3487_v22  ;;  %1126 = vmatpush.msrb.mxu2 %v809_v11  ;;  %1210 = vmatpush.msrb.mxu3 %v809_v11 }
0x11d2   :  { %v744_v42 = vsel %vm737_vm4, %v743_v41, %v3471_v49  ;;  %v741_v43 = vsel %vm737_vm4, %v3508_v62, %v709_v38  ;;  %v2999_v49 = vld [vmem:[%s4077_s3 + $0x1] ss:$0 sm:$0xff]  ;;  %1297 = vmatpush.msrb.mxu0 %v809_v11 }
0x11d3   :  { %758 = vrot.lane.b32.xlu0 %v744_v42, %s3318_s23  ;;  %752 = vrot.lane.b32.xlu1 %v741_v43, %s3317_s22 }
0x11d4   :  { %1127 = vmatpush.msrb.mxu2 %v808_v12  ;;  %1211 = vmatpush.msrb.mxu3 %v808_v12 }
0x11d5   :  { %1298 = vmatpush.msrb.mxu0 %v808_v12 }
0x11d6   :  { %1128 = vmatpush.msrb.mxu2 %v807_v13  ;;  %1212 = vmatpush.msrb.mxu3 %v807_v13 }
0x11d7   :  { %1299 = vmatpush.msrb.mxu0 %v807_v13 }
0x11d8   :  { %1129 = vmatpush.msrb.mxu2 %v806_v15  ;;  %1213 = vmatpush.msrb.mxu3 %v806_v15 }
0x11d9   :  { %1300 = vmatpush.msrb.mxu0 %v806_v15 }
0x1245   :  { %v759_v45 = vpop.permute.xlu0 %758  ;;  %v753_v48 = vpop.permute.xlu1 %752 }
0x1246   :  { %v764_v46 = vsel %vm136_vm1, %v751_v44, %v759_v45  ;;  %v765_v22 = vsel %vm136_vm1, %v753_v48, %v761_v25 }
0x1247   :  { %2946 = vmatmul.msk.f32.vlgmr.msrb.gmra.mxu1 %vm65_vm0, %v764_v46 }
0x124f   :  { %2947 = vmatmul.msk.f32.gmra.mxu1 %vm65_vm0, %v765_v22 }
0x12c4   :  { %v799_v50 = vpop.f32.mrf.mxu1 }
0x12c5   :  { %v3561_v51 = vadd.f32 %v2999_v49, %v799_v50 }
0x12c7   :  { %3067 = vtanh.f32 %v3561_v51 }
0x12cc   :  { %v802_v52 = vpop.f32.mrf.mxu1 }
0x12cd   :  { %v3068_v53 = vpop.eup %3067  ;;  %v3564_v54 = vadd.f32 %v2999_v49, %v802_v52 }
0x12ce   :  { %814 = vrot.lane.b32.xlu1 %v3068_v53, %s3315_s0  ;;  %v811_v56 = vmul.f32 0.5, %v3068_v53 }
0x12cf   :  { %3069 = vtanh.f32 %v3564_v54 }
0x12d0   :  { %v812_v57 = vadd.f32 0.5, %v811_v56 }
0x12d5   :  { %v3070_v55 = vpop.eup %3069 }
0x12d6   :  { %828 = vrot.lane.b32.xlu0 %v3070_v55, %s3315_s0  ;;  %v825_v60 = vmul.f32 0.5, %v3070_v55 }
0x12d8   :  { %v826_v61 = vadd.f32 0.5, %v825_v60 }
0x1340   :  { %v815_v58 = vpop.permute.xlu1 %814 }
0x1341   :  { %v3569_v59 = vmul.f32 %v815_v58, %v812_v57 }
0x1343   :  { %3071 = vtanh.f32 %v3569_v59  ;;  %v882_v27 = vrot.slane %v3569_v59, 6 }
0x1348   :  { %v829_v62 = vpop.permute.xlu0 %828 }
0x1349   :  { %v3072_v63 = vpop.eup %3071  ;;  %v831_v0 = vmul.f32 %v829_v62, %v826_v61 }
0x134a   :  { %820 = vrot.lane.b32.xlu0 %v3072_v63, %s3316_s21 }
0x134b   :  { %3073 = vtanh.f32 %v831_v0  ;;  %v907_v6 = vrot.slane %v831_v0, 2 }
0x1351   :  { %v3074_v2 = vpop.eup %3073 }
0x1352   :  { %834 = vrot.lane.b32.xlu2 %v3074_v2, %s3316_s21 }
0x13ac   :  { %v835_v3 = vpop.permute.xlu2 %834 }
0x13ad   :  { %v3574_v4 = vmul.f32 %v835_v3, %v826_v61 }
0x13af   :  { %v843_v5 = vrot.slane %v3574_v4, 6 }
0x13b1   :  { %844 = vrot.lane.b32.xlu2 %v843_v5, %s3318_s23 }
0x13b9   :  { %908 = vrot.lane.b32.xlu2 %v907_v6, %s3319_s24 }
0x13bc   :  { %v821_v47 = vpop.permute.xlu0 %820 }
0x13bd   :  { %v3579_v7 = vmul.f32 %v821_v47, %v812_v57 }
0x13bf   :  { %839 = vrot.lane.b32.xlu1 %v3579_v7, %s3317_s22 }
0x140b   :  { %v845_v16 = vpop.permute.xlu2 %844 }
0x1413   :  { %v909_v26 = vpop.permute.xlu2 %908 }
0x1431   :  { %v840_v17 = vpop.permute.xlu1 %839 }
0x1432   :  { %v847_v18 = vsel %vm136_vm1, %v840_v17, %v845_v16 }
0x1433   :  { %2948 = vmatmul.msk.f32.vlgmr.msra.gmra.mxu2 %vm65_vm0, %v847_v18 }
0x14b6   :  { %v868_v19 = vpop.f32.mrf.mxu2 }
0x14b7   :  { %v872_v20 = vrot.slane %v868_v19, 6  ;;  %v875_v10 = vrot.slane %v868_v19, 4 }
0x14b9   :  { %v874_v8 = vadd.f32 %v872_v20, %v3561_v51  ;;  %v877_v21 = vadd.f32 %v875_v10, %v3564_v54 }
0x14bb   :  { %3075 = vtanh.f32 %v874_v8 }
0x14bc   :  { %3077 = vtanh.f32 %v877_v21 }
0x14c1   :  { %v3076_v23 = vpop.eup %3075 }
0x14c2   :  { %v3078_v24 = vpop.eup %3077  ;;  %888 = vrot.lane.b32.xlu1 %v3076_v23, %s3315_s0  ;;  %v879_v28 = vmul.f32 0.5, %v3076_v23 }
0x14c3   :  { %913 = vrot.lane.b32.xlu0 %v3078_v24, %s3315_s0  ;;  %v904_v29 = vmul.f32 0.5, %v3078_v24 }
0x14c4   :  { %v880_v30 = vadd.f32 0.5, %v879_v28 }
0x14c5   :  { %v905_v31 = vadd.f32 0.5, %v904_v29 }
0x14c7   :  { %v911_v37 = vmul.f32 %v909_v26, %v905_v31 }
0x14cb   :  { %883 = vrot.lane.b32.xlu0 %v882_v27, %s3319_s24 }
0x1534   :  { %v889_v32 = vpop.permute.xlu1 %888 }
0x1535   :  { %v914_v14 = vpop.permute.xlu0 %913  ;;  %v891_v33 = vmul.f32 %v889_v32, %v880_v30 }
0x1536   :  { %v916_v39 = vmul.f32 %v914_v14, %v905_v31 }
0x1537   :  { %893 = vrot.lane.b32.xlu2 %v891_v33, %s3319_s24 }
0x1538   :  { %918 = vrot.lane.b32.xlu1 %v916_v39, %s3319_s24 }
0x153d   :  { %v884_v1 = vpop.permute.xlu0 %883 }
0x153e   :  { %v886_v9 = vmul.f32 %v884_v1, %v880_v30 }
0x1591   :  { %v894_v34 = vpop.permute.xlu2 %893 }
0x1592   :  { %v896_v35 = vadd.f32 %v894_v34, %v886_v9 }
0x1594   :  { %3079 = vtanh.f32 %v896_v35  ;;  %v973_v5 = vrot.slane %v896_v35, 6 }
0x159a   :  { %v3080_v36 = vpop.eup %3079 }
0x159b   :  { %899 = vrot.lane.b32.xlu1 %v3080_v36, %s3318_s23 }
0x15aa   :  { %v919_v38 = vpop.permute.xlu1 %918 }
0x15ab   :  { %v921_v40 = vadd.f32 %v919_v38, %v911_v37 }
0x15ad   :  { %3081 = vtanh.f32 %v921_v40  ;;  %v996_v13 = vrot.slane %v921_v40, 2 }
0x15b3   :  { %v3082_v41 = vpop.eup %3081 }
0x15b4   :  { %924 = vrot.lane.b32.xlu0 %v3082_v41, %s3318_s23 }
0x160d   :  { %v900_v42 = vpop.permute.xlu1 %899 }
0x160e   :  { %v902_v43 = vmul.f32 %v900_v42, %v880_v30 }
0x1610   :  { %929 = vrot.lane.b32.xlu2 %v902_v43, %s3317_s22  ;;  %v1443_v21 = vsel %vm733_vm2, %v3579_v7, %v902_v43 }
0x1626   :  { %v925_v44 = vpop.permute.xlu0 %924 }
0x1627   :  { %v3596_v45 = vmul.f32 %v925_v44, %v905_v31 }
0x1629   :  { %v933_v46 = vrot.slane %v3596_v45, 2 }
0x162b   :  { %934 = vrot.lane.b32.xlu0 %v933_v46, %s3318_s23 }
0x166a   :  { %v930_v48 = vpop.permute.xlu2 %929 }
0x169d   :  { %v935_v25 = vpop.permute.xlu0 %934 }
0x169e   :  { %v937_v22 = vsel %vm136_vm1, %v930_v48, %v935_v25 }
0x169f   :  { %v939_v49 = vrot.slane %v937_v22, 2 }
0x16a1   :  { %2949 = vmatmul.msk.f32.vlgmr.msra.gmra.mxu3 %vm65_vm0, %v939_v49 }
0x1724   :  { %v959_v50 = vpop.f32.mrf.mxu3 }
0x1725   :  { %v963_v52 = vrot.slane %v959_v50, 4  ;;  %v966_v53 = vrot.slane %v959_v50, 6 }
0x1727   :  { %v965_v55 = vadd.f32 %v963_v52, %v3561_v51  ;;  %v968_v56 = vadd.f32 %v966_v53, %v3564_v54 }
0x1729   :  { %3083 = vtanh.f32 %v965_v55 }
0x172a   :  { %3085 = vtanh.f32 %v968_v56 }
0x172f   :  { %v3084_v57 = vpop.eup %3083 }
0x1730   :  { %v3086_v58 = vpop.eup %3085  ;;  %977 = vrot.lane.b32.xlu2 %v3084_v57, %s3315_s0  ;;  %v970_v59 = vmul.f32 0.5, %v3084_v57 }
0x1731   :  { %1000 = vrot.lane.b32.xlu1 %v3086_v58, %s3315_s0  ;;  %v993_v63 = vmul.f32 0.5, %v3086_v58 }
0x1732   :  { %v971_v60 = vadd.f32 0.5, %v970_v59 }
0x1733   :  { %v994_v0 = vadd.f32 0.5, %v993_v63 }
0x1734   :  { %v975_v6 = vmul.f32 %v973_v5, %v971_v60 }
0x1735   :  { %v998_v15 = vmul.f32 %v996_v13, %v994_v0 }
0x178a   :  { %v978_v61 = vpop.permute.xlu2 %977 }
0x178b   :  { %v980_v62 = vmul.f32 %v978_v61, %v971_v60 }
0x178d   :  { %982 = vrot.lane.b32.xlu1 %v980_v62, %s3319_s24 }
0x17a3   :  { %v1001_v2 = vpop.permute.xlu1 %1000 }
0x17a4   :  { %v1003_v3 = vmul.f32 %v1001_v2, %v994_v0 }
0x17a6   :  { %1005 = vrot.lane.b32.xlu0 %v1003_v3, %s3319_s24 }
0x17ff   :  { %v983_v47 = vpop.permute.xlu1 %982 }
0x1800   :  { %v985_v11 = vadd.f32 %v983_v47, %v975_v6 }
0x1802   :  { %3087 = vtanh.f32 %v985_v11  ;;  %v1058_v46 = vrot.slane %v985_v11, 6 }
0x1808   :  { %v3088_v12 = vpop.eup %3087 }
0x1809   :  { %988 = vrot.lane.b32.xlu0 %v3088_v12, %s3318_s23 }
0x1818   :  { %v1006_v16 = vpop.permute.xlu0 %1005 }
0x1819   :  { %v1008_v17 = vadd.f32 %v1006_v16, %v998_v15 }
0x181b   :  { %3089 = vtanh.f32 %v1008_v17  ;;  %v1081_v40 = vrot.slane %v1008_v17, 2 }
0x1821   :  { %v3090_v18 = vpop.eup %3089 }
0x1822   :  { %1011 = vrot.lane.b32.xlu2 %v3090_v18, %s3318_s23 }
0x187b   :  { %v989_v19 = vpop.permute.xlu0 %988 }
0x187c   :  { %v1012_v20 = vpop.permute.xlu2 %1011  ;;  %v991_v10 = vmul.f32 %v989_v19, %v971_v60 }
0x187d   :  { %v3610_v8 = vmul.f32 %v1012_v20, %v994_v0 }
0x187e   :  { %1016 = vrot.lane.b32.xlu1 %v991_v10, %s3317_s22  ;;  %v1444_v23 = vsel %vm735_vm3, %v1443_v21, %v991_v10 }
0x187f   :  { %v1020_v24 = vrot.slane %v3610_v8, 6 }
0x1881   :  { %1021 = vrot.lane.b32.xlu2 %v1020_v24, %s3318_s23 }
0x18db   :  { %v1022_v27 = vpop.permute.xlu2 %1021 }
0x18f0   :  { %v1017_v28 = vpop.permute.xlu1 %1016 }
0x18f1   :  { %v1024_v29 = vsel %vm136_vm1, %v1017_v28, %v1022_v27 }
0x18f2   :  { %v1026_v30 = vrot.slane %v1024_v29, 4 }
0x18f4   :  { %2950 = vmatmul.msk.f32.vlgmr.msra.gmra.mxu0 %vm65_vm0, %v1026_v30 }
0x1971   :  { %v1046_v31 = vpop.f32.mrf.mxu0 }
0x1972   :  { %v1050_v32 = vrot.slane %v1046_v31, 2  ;;  %v1053_v14 = vadd.f32 %v1046_v31, %v3564_v54 }
0x1974   :  { %v1052_v7 = vadd.f32 %v1050_v32, %v3561_v51  ;;  %3091 = vtanh.f32 %v1053_v14 }
0x1976   :  { %3093 = vtanh.f32 %v1052_v7 }
0x197a   :  { %v3092_v33 = vpop.eup %3091 }
0x197b   :  { %1085 = vrot.lane.b32.xlu0 %v3092_v33, %s3315_s0  ;;  %v1078_v26 = vmul.f32 0.5, %v3092_v33 }
0x197c   :  { %v3094_v39 = vpop.eup %3093 }
0x197d   :  { %1062 = vrot.lane.b32.xlu1 %v3094_v39, %s3315_s0  ;;  %v1055_v1 = vmul.f32 0.5, %v3094_v39  ;;  %v1079_v9 = vadd.f32 0.5, %v1078_v26 }
0x197f   :  { %v1056_v36 = vadd.f32 0.5, %v1055_v1  ;;  %v1083_v41 = vmul.f32 %v1081_v40, %v1079_v9 }
0x1981   :  { %v1060_v48 = vmul.f32 %v1058_v46, %v1056_v36 }
0x19ed   :  { %v1086_v34 = vpop.permute.xlu0 %1085 }
0x19ee   :  { %v1088_v35 = vmul.f32 %v1086_v34, %v1079_v9 }
0x19ef   :  { %v1063_v37 = vpop.permute.xlu1 %1062 }
0x19f0   :  { %v1065_v38 = vmul.f32 %v1063_v37, %v1056_v36  ;;  %1090 = vrot.lane.b32.xlu2 %v1088_v35, %s3319_s24 }
0x19f2   :  { %1067 = vrot.lane.b32.xlu0 %v1065_v38, %s3319_s24 }
0x1a4a   :  { %v1091_v42 = vpop.permute.xlu2 %1090 }
0x1a4b   :  { %v1093_v43 = vadd.f32 %v1091_v42, %v1083_v41 }
0x1a4d   :  { %3095 = vtanh.f32 %v1093_v43  ;;  %v1166_v19 = vrot.slane %v1093_v43, 2 }
0x1a53   :  { %v3096_v44 = vpop.eup %3095 }
0x1a54   :  { %1096 = vrot.lane.b32.xlu1 %v3096_v44, %s3318_s23 }
0x1a64   :  { %v1068_v25 = vpop.permute.xlu0 %1067 }
0x1a65   :  { %v1070_v22 = vadd.f32 %v1068_v25, %v1060_v48 }
0x1a67   :  { %3097 = vtanh.f32 %v1070_v22  ;;  %v1143_v18 = vrot.slane %v1070_v22, 6 }
0x1a6d   :  { %v3098_v49 = vpop.eup %3097 }
0x1a6e   :  { %1073 = vrot.lane.b32.xlu2 %v3098_v49, %s3318_s23 }
0x1ac6   :  { %v1097_v50 = vpop.permute.xlu1 %1096 }
0x1ac7   :  { %v3628_v52 = vmul.f32 %v1097_v50, %v1079_v9 }
0x1ac8   :  { %v1074_v53 = vpop.permute.xlu2 %1073 }
0x1ac9   :  { %v1105_v55 = vrot.slane %v3628_v52, 2  ;;  %v1076_v56 = vmul.f32 %v1074_v53, %v1056_v36 }
0x1acb   :  { %1106 = vrot.lane.b32.xlu1 %v1105_v55, %s3318_s23  ;;  %1101 = vrot.lane.b32.xlu0 %v1076_v56, %s3317_s22  ;;  %v3634_v57 = vsel %vm737_vm4, %v1444_v23, %v1076_v56 }
0x1b3d   :  { %v1107_v58 = vpop.permute.xlu1 %1106  ;;  %v1102_v59 = vpop.permute.xlu0 %1101 }
0x1b3e   :  { %v1109_v60 = vsel %vm136_vm1, %v1102_v59, %v1107_v58 }
0x1b3f   :  { %v1111_v61 = vrot.slane %v1109_v60, 6 }
0x1b41   :  { %2951 = vmatmul.msk.f32.vlgmr.msrb.gmra.mxu2 %vm65_vm0, %v1111_v61 }
0x1bc4   :  { %v1131_v62 = vpop.f32.mrf.mxu2 }
0x1bc5   :  { %v1134_v63 = vadd.f32 %v1131_v62, %v3564_v54  ;;  %v1136_v0 = vrot.slane %v1131_v62, 2 }
0x1bc7   :  { %v1138_v2 = vadd.f32 %v1136_v0, %v3561_v51  ;;  %3099 = vtanh.f32 %v1134_v63 }
0x1bc9   :  { %3101 = vtanh.f32 %v1138_v2 }
0x1bcd   :  { %v3100_v3 = vpop.eup %3099 }
0x1bce   :  { %1147 = vrot.lane.b32.xlu0 %v3100_v3, %s3315_s0  ;;  %v1140_v13 = vmul.f32 0.5, %v3100_v3 }
0x1bcf   :  { %v3102_v5 = vpop.eup %3101 }
0x1bd0   :  { %1170 = vrot.lane.b32.xlu2 %v3102_v5, %s3315_s0  ;;  %v1163_v6 = vmul.f32 0.5, %v3102_v5  ;;  %v1141_v15 = vadd.f32 0.5, %v1140_v13 }
0x1bd2   :  { %v1164_v47 = vadd.f32 0.5, %v1163_v6  ;;  %v1145_v20 = vmul.f32 %v1143_v18, %v1141_v15 }
0x1bd4   :  { %v1168_v23 = vmul.f32 %v1166_v19, %v1164_v47 }
0x1c2a   :  { %v1171_v11 = vpop.permute.xlu2 %1170 }
0x1c2b   :  { %v1173_v12 = vmul.f32 %v1171_v11, %v1164_v47 }
0x1c2d   :  { %1175 = vrot.lane.b32.xlu1 %v1173_v12, %s3319_s24 }
0x1c40   :  { %v1148_v16 = vpop.permute.xlu0 %1147 }
0x1c41   :  { %v1150_v17 = vmul.f32 %v1148_v16, %v1141_v15 }
0x1c43   :  { %1152 = vrot.lane.b32.xlu2 %v1150_v17, %s3319_s24 }
0x1c9d   :  { %v1153_v10 = vpop.permute.xlu2 %1152 }
0x1c9e   :  { %v1155_v21 = vadd.f32 %v1153_v10, %v1145_v20 }
0x1c9f   :  { %v1176_v24 = vpop.permute.xlu1 %1175 }
0x1ca0   :  { %3103 = vtanh.f32 %v1155_v21  ;;  %v1178_v27 = vadd.f32 %v1176_v24, %v1168_v23  ;;  %v1229_v22 = vrot.slane %v1155_v21, 6 }
0x1ca2   :  { %3105 = vtanh.f32 %v1178_v27  ;;  %v1252_v56 = vrot.slane %v1178_v27, 2 }
0x1ca6   :  { %v3104_v28 = vpop.eup %3103 }
0x1ca7   :  { %1158 = vrot.lane.b32.xlu1 %v3104_v28, %s3318_s23 }
0x1ca8   :  { %v3106_v29 = vpop.eup %3105 }
0x1ca9   :  { %1181 = vrot.lane.b32.xlu0 %v3106_v29, %s3318_s23 }
0x1d19   :  { %v1159_v30 = vpop.permute.xlu1 %1158 }
0x1d1a   :  { %v3646_v31 = vmul.f32 %v1159_v30, %v1141_v15 }
0x1d1b   :  { %v1182_v32 = vpop.permute.xlu0 %1181 }
0x1d1c   :  { %v3648_v14 = vmul.f32 %v1182_v32, %v1164_v47  ;;  %1186 = vrot.lane.b32.xlu2 %v3646_v31, %s3317_s22 }
0x1d1e   :  { %v1190_v7 = vrot.slane %v3648_v14, 6 }
0x1d20   :  { %1191 = vrot.lane.b32.xlu0 %v1190_v7, %s3318_s23 }
0x1d76   :  { %v1187_v33 = vpop.permute.xlu2 %1186 }
0x1d92   :  { %v1192_v39 = vpop.permute.xlu0 %1191 }
0x1d93   :  { %v1194_v26 = vsel %vm136_vm1, %v1187_v33, %v1192_v39 }
0x1d94   :  { %2952 = vmatmul.msk.f32.vlgmr.msrb.gmra.mxu3 %vm65_vm0, %v1194_v26 }
0x1e17   :  { %v1215_v1 = vpop.f32.mrf.mxu3 }
0x1e18   :  { %v1219_v9 = vrot.slane %v1215_v1, 6  ;;  %v1222_v34 = vrot.slane %v1215_v1, 4 }
0x1e1a   :  { %v1221_v35 = vadd.f32 %v1219_v9, %v3564_v54  ;;  %v1224_v36 = vadd.f32 %v1222_v34, %v3561_v51 }
0x1e1c   :  { %3107 = vtanh.f32 %v1221_v35 }
0x1e1d   :  { %3109 = vtanh.f32 %v1224_v36 }
0x1e22   :  { %v3108_v37 = vpop.eup %3107 }
0x1e23   :  { %v3110_v38 = vpop.eup %3109  ;;  %1233 = vrot.lane.b32.xlu2 %v3108_v37, %s3315_s0  ;;  %v1226_v40 = vmul.f32 0.5, %v3108_v37 }
0x1e24   :  { %1256 = vrot.lane.b32.xlu1 %v3110_v38, %s3315_s0  ;;  %v1249_v44 = vmul.f32 0.5, %v3110_v38 }
0x1e25   :  { %v1227_v41 = vadd.f32 0.5, %v1226_v40 }
0x1e26   :  { %v1250_v46 = vadd.f32 0.5, %v1249_v44 }
0x1e27   :  { %v1231_v49 = vmul.f32 %v1229_v22, %v1227_v41 }
0x1e28   :  { %v1254_v58 = vmul.f32 %v1252_v56, %v1250_v46 }
0x1e7d   :  { %v1234_v42 = vpop.permute.xlu2 %1233 }
0x1e7e   :  { %v1236_v43 = vmul.f32 %v1234_v42, %v1227_v41 }
0x1e80   :  { %1238 = vrot.lane.b32.xlu1 %v1236_v43, %s3319_s24 }
0x1e96   :  { %v1257_v48 = vpop.permute.xlu1 %1256 }
0x1e97   :  { %v1259_v25 = vmul.f32 %v1257_v48, %v1250_v46 }
0x1e99   :  { %1261 = vrot.lane.b32.xlu0 %v1259_v25, %s3319_s24 }
0x1ef2   :  { %v1239_v50 = vpop.permute.xlu1 %1238 }
0x1ef3   :  { %v1241_v53 = vadd.f32 %v1239_v50, %v1231_v49 }
0x1ef5   :  { %3111 = vtanh.f32 %v1241_v53  ;;  %v1316_v26 = vrot.slane %v1241_v53, 6 }
0x1efb   :  { %v3112_v55 = vpop.eup %3111 }
0x1efc   :  { %1244 = vrot.lane.b32.xlu0 %v3112_v55, %s3318_s23 }
0x1f0b   :  { %v1262_v59 = vpop.permute.xlu0 %1261 }
0x1f0c   :  { %v1264_v60 = vadd.f32 %v1262_v59, %v1254_v58 }
0x1f0e   :  { %3113 = vtanh.f32 %v1264_v60  ;;  %v1339_v30 = vrot.slane %v1264_v60, 2 }
0x1f14   :  { %v3114_v61 = vpop.eup %3113 }
0x1f15   :  { %1267 = vrot.lane.b32.xlu2 %v3114_v61, %s3318_s23 }
0x1f6e   :  { %v1245_v62 = vpop.permute.xlu0 %1244 }
0x1f6f   :  { %v1268_v63 = vpop.permute.xlu2 %1267  ;;  %v1247_v0 = vmul.f32 %v1245_v62, %v1227_v41 }
0x1f70   :  { %v3664_v2 = vmul.f32 %v1268_v63, %v1250_v46 }
0x1f71   :  { %1272 = vrot.lane.b32.xlu1 %v1247_v0, %s3317_s22  ;;  %v1446_v41 = vsel %vm733_vm2, %v3646_v31, %v1247_v0 }
0x1f72   :  { %v1276_v3 = vrot.slane %v3664_v2, 2 }
0x1f74   :  { %1277 = vrot.lane.b32.xlu2 %v1276_v3, %s3318_s23 }
0x1fce   :  { %v1278_v5 = vpop.permute.xlu2 %1277 }
0x1fe3   :  { %v1273_v6 = vpop.permute.xlu1 %1272 }
0x1fe4   :  { %v1280_v47 = vsel %vm136_vm1, %v1273_v6, %v1278_v5 }
0x1fe5   :  { %v1282_v11 = vrot.slane %v1280_v47, 2 }
0x1fe7   :  { %2953 = vmatmul.msk.f32.vlgmr.msrb.gmra.mxu0 %vm65_vm0, %v1282_v11 }
0x2064   :  { %v1302_v12 = vpop.f32.mrf.mxu0 }
0x2065   :  { %v1306_v13 = vrot.slane %v1302_v12, 4  ;;  %v1309_v15 = vrot.slane %v1302_v12, 6 }
0x2067   :  { %v1308_v16 = vadd.f32 %v1306_v13, %v3564_v54  ;;  %v1311_v17 = vadd.f32 %v1309_v15, %v3561_v51 }
0x2069   :  { %3115 = vtanh.f32 %v1308_v16 }
0x206a   :  { %3117 = vtanh.f32 %v1311_v17  ;;  %v2955_v17 = vld [vmem:[%s4075_s1 + $0x40] sm:$0xff] }
0x206f   :  { %v3116_v18 = vpop.eup %3115 }
0x2070   :  { %v3118_v19 = vpop.eup %3117  ;;  %1320 = vrot.lane.b32.xlu1 %v3116_v18, %s3315_s0  ;;  %v1313_v20 = vmul.f32 0.5, %v3116_v18 }
0x2071   :  { %1343 = vrot.lane.b32.xlu0 %v3118_v19, %s3315_s0  ;;  %v1336_v10 = vmul.f32 0.5, %v3118_v19 }
0x2072   :  { %v1314_v21 = vadd.f32 0.5, %v1313_v20 }
0x2073   :  { %v1337_v23 = vadd.f32 0.5, %v1336_v10 }
0x2074   :  { %v1318_v1 = vmul.f32 %v1316_v26, %v1314_v21 }
0x2075   :  { %v1341_v32 = vmul.f32 %v1339_v30, %v1337_v23 }
0x20e2   :  { %v1321_v24 = vpop.permute.xlu1 %1320 }
0x20e3   :  { %v1344_v27 = vpop.permute.xlu0 %1343  ;;  %v1323_v28 = vmul.f32 %v1321_v24, %v1314_v21 }
0x20e4   :  { %v1346_v29 = vmul.f32 %v1344_v27, %v1337_v23 }
0x20e5   :  { %1325 = vrot.lane.b32.xlu0 %v1323_v28, %s3319_s24 }
0x20e6   :  { %1348 = vrot.lane.b32.xlu2 %v1346_v29, %s3319_s24 }
0x2140   :  { %v1349_v7 = vpop.permute.xlu2 %1348 }
0x2141   :  { %v1351_v33 = vadd.f32 %v1349_v7, %v1341_v32 }
0x2143   :  { %3119 = vtanh.f32 %v1351_v33  ;;  %v1424_v5 = vrot.slane %v1351_v33, 2 }
0x2149   :  { %v3120_v39 = vpop.eup %3119 }
0x214a   :  { %1354 = vrot.lane.b32.xlu1 %v3120_v39, %s3318_s23 }
0x2157   :  { %v1326_v9 = vpop.permute.xlu0 %1325 }
0x2158   :  { %v1328_v34 = vadd.f32 %v1326_v9, %v1318_v1 }
0x215a   :  { %3121 = vtanh.f32 %v1328_v34  ;;  %v1401_v6 = vrot.slane %v1328_v34, 6 }
0x2160   :  { %v3122_v35 = vpop.eup %3121 }
0x2161   :  { %1331 = vrot.lane.b32.xlu2 %v3122_v35, %s3318_s23 }
0x21bb   :  { %v1332_v36 = vpop.permute.xlu2 %1331 }
0x21bc   :  { %v1355_v37 = vpop.permute.xlu1 %1354  ;;  %v1334_v38 = vmul.f32 %v1332_v36, %v1314_v21 }
0x21bd   :  { %v1357_v40 = vmul.f32 %v1355_v37, %v1337_v23 }
0x21be   :  { %1359 = vrot.lane.b32.xlu0 %v1334_v38, %s3317_s22  ;;  %v3683_v42 = vsel %vm735_vm3, %v1446_v41, %v1334_v38 }
0x21bf   :  { %v1363_v43 = vrot.slane %v1357_v40, 6 }
0x21c1   :  { %1364 = vrot.lane.b32.xlu1 %v1363_v43, %s3318_s23 }
0x2230   :  { %v1360_v44 = vpop.permute.xlu0 %1359 }
0x2233   :  { %v1365_v46 = vpop.permute.xlu1 %1364 }
0x2234   :  { %v1367_v48 = vsel %vm136_vm1, %v1360_v44, %v1365_v46 }
0x2235   :  { %v1369_v25 = vrot.slane %v1367_v48, 4 }
0x2237   :  { %2954 = vmatmul.msk.f32.vlgmr.msra.gmra.mxu1 %vm65_vm0, %v1369_v25 }
0x22b4   :  { %v1389_v22 = vpop.f32.mrf.mxu1 }
0x22b5   :  { %v1393_v49 = vrot.slane %v1389_v22, 2  ;;  %v1396_v50 = vadd.f32 %v1389_v22, %v3561_v51 }
0x22b7   :  { %v1395_v31 = vadd.f32 %v1393_v49, %v3564_v54  ;;  %3123 = vtanh.f32 %v1396_v50  ;;  %v1452_v54 = vsel %vm733_vm2, %v3628_v52, %v3610_v8  ;;  %v2956_v52 = vld [vmem:[%s4075_s1 + $0x48] sm:$0xff] }
0x22b8   :  { %v1453_v0 = vsel %vm735_vm3, %v1452_v54, %v3596_v45  ;;  %v2957_v45 = vld [vmem:[%s4075_s1 + $0x50] sm:$0xff] }
0x22b9   :  { %3125 = vtanh.f32 %v1395_v31  ;;  %v1454_v3 = vsel %vm737_vm4, %v1453_v0, %v3574_v4  ;;  %v2958_v4 = vld [vmem:[%s4075_s1 + $0x58] sm:$0xff] }
0x22ba   :  { %1501 = vmatpush.msra.mxu2 %v2958_v4 }
0x22bc   :  { %1502 = vmatpush.msra.mxu2 %v2957_v45 }
0x22bd   :  { %v3124_v53 = vpop.eup %3123 }
0x22be   :  { %1428 = vrot.lane.b32.xlu2 %v3124_v53, %s3315_s0  ;;  %v1421_v56 = vmul.f32 0.5, %v3124_v53  ;;  %1503 = vmatpush.msra.mxu2 %v2956_v52  ;;  %v1516_v53 = vld [vmem:[#allocation2 + $0x58] sm:$0xff] }
0x22bf   :  { %v3126_v55 = vpop.eup %3125  ;;  %1570 = vmatpush.msra.mxu3 %v1516_v53  ;;  %1661 = vmatpush.msra.mxu0 %v1516_v53 }
0x22c0   :  { %1405 = vrot.lane.b32.xlu0 %v3126_v55, %s3315_s0  ;;  %v1422_v58 = vadd.f32 0.5, %v1421_v56  ;;  %v1398_v61 = vmul.f32 0.5, %v3126_v55  ;;  %1504 = vmatpush.msra.mxu2 %v2955_v17  ;;  %v1515_v55 = vld [vmem:[#allocation2 + $0x50] sm:$0xff]  ;;  %v1514_v56 = vld [vmem:[#allocation2 + $0x48] sm:$0xff] }
0x22c1   :  { %1748 = vmatpush.msrb.mxu1 %v1516_v53  ;;  %1571 = vmatpush.msra.mxu3 %v1515_v55 }
0x22c2   :  { %v1399_v62 = vadd.f32 0.5, %v1398_v61  ;;  %v1426_v47 = vmul.f32 %v1424_v5, %v1422_v58  ;;  %2091 = vmatpush.msrb.mxu2 %v1516_v53  ;;  %1662 = vmatpush.msra.mxu0 %v1515_v55 }
0x22c3   :  { %1749 = vmatpush.msrb.mxu1 %v1515_v55  ;;  %1572 = vmatpush.msra.mxu3 %v1514_v56 }
0x22c4   :  { %v1403_v13 = vmul.f32 %v1401_v6, %v1399_v62  ;;  %2092 = vmatpush.msrb.mxu2 %v1515_v55  ;;  %1663 = vmatpush.msra.mxu0 %v1514_v56 }
0x22c5   :  { %1750 = vmatpush.msrb.mxu1 %v1514_v56 }
0x22c6   :  { %2093 = vmatpush.msrb.mxu2 %v1514_v56 }
0x2318   :  { %v1429_v59 = vpop.permute.xlu2 %1428 }
0x2319   :  { %v1431_v60 = vmul.f32 %v1429_v59, %v1422_v58 }
0x231b   :  { %1433 = vrot.lane.b32.xlu1 %v1431_v60, %s3319_s24 }
0x2332   :  { %v1406_v63 = vpop.permute.xlu0 %1405 }
0x2333   :  { %v1408_v51 = vmul.f32 %v1406_v63, %v1399_v62 }
0x2335   :  { %1410 = vrot.lane.b32.xlu2 %v1408_v51, %s3319_s24 }
0x233d   :  { %1457 = vrot.lane.b32.xlu2 %v3634_v57, %s3317_s22 }
0x2345   :  { %1467 = vrot.lane.b32.xlu2 %v1454_v3, %s3318_s23 }
0x238d   :  { %v1434_v11 = vpop.permute.xlu1 %1433 }
0x238e   :  { %v1436_v12 = vadd.f32 %v1434_v11, %v1426_v47 }
0x238f   :  { %v1411_v15 = vpop.permute.xlu2 %1410 }
0x2390   :  { %3127 = vtanh.f32 %v1436_v12  ;;  %v1413_v57 = vadd.f32 %v1411_v15, %v1403_v13 }
0x2392   :  { %3129 = vtanh.f32 %v1413_v57 }
0x2396   :  { %v3128_v16 = vpop.eup %3127 }
0x2397   :  { %1439 = vrot.lane.b32.xlu0 %v3128_v16, %s3318_s23  ;;  %v1458_v28 = vpop.permute.xlu2 %1457 }
0x2398   :  { %v3130_v8 = vpop.eup %3129 }
0x2399   :  { %1416 = vrot.lane.b32.xlu1 %v3130_v8, %s3318_s23 }
0x239f   :  { %v1468_v7 = vpop.permute.xlu2 %1467 }
0x2409   :  { %v1440_v18 = vpop.permute.xlu0 %1439 }
0x240a   :  { %v1442_v19 = vmul.f32 %v1440_v18, %v1422_v58  ;;  %v1513_v58 = vld [vmem:[#allocation2 + $0x40] sm:$0xff] }
0x240b   :  { %v1417_v20 = vpop.permute.xlu1 %1416  ;;  %1573 = vmatpush.msra.mxu3 %v1513_v58  ;;  %1664 = vmatpush.msra.mxu0 %v1513_v58 }
0x240c   :  { %v1449_v10 = vsel %vm733_vm2, %v1442_v19, %v1357_v40  ;;  %v1419_v21 = vmul.f32 %v1417_v20, %v1399_v62  ;;  %1751 = vmatpush.msrb.mxu1 %v1513_v58  ;;  %2094 = vmatpush.msrb.mxu2 %v1513_v58 }
0x240d   :  { %v1450_v23 = vsel %vm735_vm3, %v1449_v10, %v3664_v2  ;;  %1833 = vmatpush.msrb.mxu3 %v1516_v53  ;;  %1917 = vmatpush.msrb.mxu0 %v1516_v53 }
0x240e   :  { %v1451_v24 = vsel %vm737_vm4, %v1450_v23, %v3648_v14  ;;  %v1448_v27 = vsel %vm737_vm4, %v3683_v42, %v1419_v21  ;;  %v3000_v14 = vld [vmem:[%s4077_s3 + $0x2] ss:$0 sm:$0xff]  ;;  %2004 = vmatpush.msra.mxu1 %v1516_v53 }
0x240f   :  { %1465 = vrot.lane.b32.xlu0 %v1451_v24, %s3318_s23  ;;  %1459 = vrot.lane.b32.xlu1 %v1448_v27, %s3317_s22 }
0x2410   :  { %1834 = vmatpush.msrb.mxu3 %v1515_v55  ;;  %1918 = vmatpush.msrb.mxu0 %v1515_v55 }
0x2411   :  { %2005 = vmatpush.msra.mxu1 %v1515_v55 }
0x2412   :  { %1835 = vmatpush.msrb.mxu3 %v1514_v56  ;;  %1919 = vmatpush.msrb.mxu0 %v1514_v56 }
0x2413   :  { %2006 = vmatpush.msra.mxu1 %v1514_v56 }
0x2414   :  { %1836 = vmatpush.msrb.mxu3 %v1513_v58  ;;  %1920 = vmatpush.msrb.mxu0 %v1513_v58 }
0x2415   :  { %2007 = vmatpush.msra.mxu1 %v1513_v58 }
0x2481   :  { %v1466_v29 = vpop.permute.xlu0 %1465  ;;  %v1460_v32 = vpop.permute.xlu1 %1459 }
0x2482   :  { %v1471_v30 = vsel %vm136_vm1, %v1458_v28, %v1466_v29  ;;  %v1472_v2 = vsel %vm136_vm1, %v1460_v32, %v1468_v7 }
0x2483   :  { %2960 = vmatmul.msk.f32.vlgmr.msra.gmra.mxu2 %vm65_vm0, %v1471_v30 }
0x248b   :  { %2961 = vmatmul.msk.f32.gmra.mxu2 %vm65_vm0, %v1472_v2 }
0x2506   :  { %v1506_v33 = vpop.f32.mrf.mxu2 }
0x2507   :  { %v3734_v39 = vadd.f32 %v3000_v14, %v1506_v33 }
0x2509   :  { %3131 = vtanh.f32 %v3734_v39 }
0x250e   :  { %v1509_v26 = vpop.f32.mrf.mxu2 }
0x250f   :  { %v3132_v1 = vpop.eup %3131  ;;  %v3737_v9 = vadd.f32 %v3000_v14, %v1509_v26 }
0x2510   :  { %1521 = vrot.lane.b32.xlu1 %v3132_v1, %s3315_s0  ;;  %v1518_v35 = vmul.f32 0.5, %v3132_v1 }
0x2511   :  { %3133 = vtanh.f32 %v3737_v9 }
0x2512   :  { %v1519_v36 = vadd.f32 0.5, %v1518_v35 }
0x2517   :  { %v3134_v34 = vpop.eup %3133 }
0x2518   :  { %1535 = vrot.lane.b32.xlu0 %v3134_v34, %s3315_s0  ;;  %v1532_v40 = vmul.f32 0.5, %v3134_v34 }
0x251a   :  { %v1533_v41 = vadd.f32 0.5, %v1532_v40 }
0x2582   :  { %v1522_v37 = vpop.permute.xlu1 %1521 }
0x2583   :  { %v3742_v38 = vmul.f32 %v1522_v37, %v1519_v36 }
0x2585   :  { %3135 = vtanh.f32 %v3742_v38  ;;  %v1589_v6 = vrot.slane %v3742_v38, 6 }
0x258a   :  { %v1536_v42 = vpop.permute.xlu0 %1535 }
0x258b   :  { %v3136_v43 = vpop.eup %3135  ;;  %v1538_v44 = vmul.f32 %v1536_v42, %v1533_v41 }
0x258c   :  { %1527 = vrot.lane.b32.xlu0 %v3136_v43, %s3316_s21 }
0x258d   :  { %3137 = vtanh.f32 %v1538_v44  ;;  %v1614_v49 = vrot.slane %v1538_v44, 2 }
0x2593   :  { %v3138_v46 = vpop.eup %3137 }
0x2594   :  { %1541 = vrot.lane.b32.xlu2 %v3138_v46, %s3316_s21 }
0x25ee   :  { %v1542_v48 = vpop.permute.xlu2 %1541 }
0x25ef   :  { %v3747_v25 = vmul.f32 %v1542_v48, %v1533_v41 }
0x25f1   :  { %v1550_v22 = vrot.slane %v3747_v25, 6 }
0x25f3   :  { %1551 = vrot.lane.b32.xlu2 %v1550_v22, %s3318_s23 }
0x25fb   :  { %1615 = vrot.lane.b32.xlu2 %v1614_v49, %s3319_s24 }
0x25fe   :  { %v1528_v50 = vpop.permute.xlu0 %1527 }
0x25ff   :  { %v3752_v31 = vmul.f32 %v1528_v50, %v1519_v36 }
0x2601   :  { %1546 = vrot.lane.b32.xlu1 %v3752_v31, %s3317_s22 }
0x264d   :  { %v1552_v59 = vpop.permute.xlu2 %1551 }
0x2655   :  { %v1616_v4 = vpop.permute.xlu2 %1615 }
0x2673   :  { %v1547_v60 = vpop.permute.xlu1 %1546 }
0x2674   :  { %v1554_v61 = vsel %vm136_vm1, %v1547_v60, %v1552_v59 }
0x2675   :  { %2962 = vmatmul.msk.f32.vlgmr.msra.gmra.mxu3 %vm65_vm0, %v1554_v61 }
0x26f8   :  { %v1575_v62 = vpop.f32.mrf.mxu3 }
0x26f9   :  { %v1579_v63 = vrot.slane %v1575_v62, 6  ;;  %v1582_v51 = vrot.slane %v1575_v62, 4 }
0x26fb   :  { %v1581_v54 = vadd.f32 %v1579_v63, %v3734_v39  ;;  %v1584_v0 = vadd.f32 %v1582_v51, %v3737_v9 }
0x26fd   :  { %3139 = vtanh.f32 %v1581_v54 }
0x26fe   :  { %3141 = vtanh.f32 %v1584_v0 }
0x2703   :  { %v3140_v3 = vpop.eup %3139 }
0x2704   :  { %v3142_v5 = vpop.eup %3141  ;;  %1595 = vrot.lane.b32.xlu1 %v3140_v3, %s3315_s0  ;;  %v1586_v47 = vmul.f32 0.5, %v3140_v3 }
0x2705   :  { %1620 = vrot.lane.b32.xlu0 %v3142_v5, %s3315_s0  ;;  %v1611_v11 = vmul.f32 0.5, %v3142_v5 }
0x2706   :  { %v1587_v12 = vadd.f32 0.5, %v1586_v47 }
0x2707   :  { %v1612_v13 = vadd.f32 0.5, %v1611_v11 }
0x2709   :  { %v1618_v20 = vmul.f32 %v1616_v4, %v1612_v13 }
0x270d   :  { %1590 = vrot.lane.b32.xlu0 %v1589_v6, %s3319_s24 }
0x2776   :  { %v1596_v15 = vpop.permute.xlu1 %1595 }
0x2777   :  { %v1621_v57 = vpop.permute.xlu0 %1620  ;;  %v1598_v16 = vmul.f32 %v1596_v15, %v1587_v12 }
0x2778   :  { %v1623_v8 = vmul.f32 %v1621_v57, %v1612_v13 }
0x2779   :  { %1600 = vrot.lane.b32.xlu2 %v1598_v16, %s3319_s24 }
0x277a   :  { %1625 = vrot.lane.b32.xlu1 %v1623_v8, %s3319_s24 }
0x277f   :  { %v1591_v45 = vpop.permute.xlu0 %1590 }
0x2780   :  { %v1593_v52 = vmul.f32 %v1591_v45, %v1587_v12 }
0x27d3   :  { %v1601_v17 = vpop.permute.xlu2 %1600 }
0x27d4   :  { %v1603_v18 = vadd.f32 %v1601_v17, %v1593_v52 }
0x27d6   :  { %3143 = vtanh.f32 %v1603_v18  ;;  %v1680_v22 = vrot.slane %v1603_v18, 6 }
0x27dc   :  { %v3144_v19 = vpop.eup %3143 }
0x27dd   :  { %1606 = vrot.lane.b32.xlu1 %v3144_v19, %s3318_s23 }
0x27ec   :  { %v1626_v10 = vpop.permute.xlu1 %1625 }
0x27ed   :  { %v1628_v21 = vadd.f32 %v1626_v10, %v1618_v20 }
0x27ef   :  { %3145 = vtanh.f32 %v1628_v21  ;;  %v1703_v56 = vrot.slane %v1628_v21, 2 }
0x27f5   :  { %v3146_v23 = vpop.eup %3145 }
0x27f6   :  { %1631 = vrot.lane.b32.xlu0 %v3146_v23, %s3318_s23 }
0x284f   :  { %v1607_v24 = vpop.permute.xlu1 %1606 }
0x2850   :  { %v1609_v27 = vmul.f32 %v1607_v24, %v1587_v12 }
0x2852   :  { %1636 = vrot.lane.b32.xlu2 %v1609_v27, %s3317_s22  ;;  %v2150_v54 = vsel %vm733_vm2, %v3752_v31, %v1609_v27 }
0x2868   :  { %v1632_v28 = vpop.permute.xlu0 %1631 }
0x2869   :  { %v3769_v29 = vmul.f32 %v1632_v28, %v1612_v13 }
0x286b   :  { %v1640_v30 = vrot.slane %v3769_v29, 2 }
0x286d   :  { %1641 = vrot.lane.b32.xlu0 %v1640_v30, %s3318_s23 }
0x28ac   :  { %v1637_v32 = vpop.permute.xlu2 %1636 }
0x28df   :  { %v1642_v7 = vpop.permute.xlu0 %1641 }
0x28e0   :  { %v1644_v2 = vsel %vm136_vm1, %v1637_v32, %v1642_v7 }
0x28e1   :  { %v1646_v14 = vrot.slane %v1644_v2, 2 }
0x28e3   :  { %2963 = vmatmul.msk.f32.vlgmr.msra.gmra.mxu0 %vm65_vm0, %v1646_v14 }
0x2960   :  { %v1666_v33 = vpop.f32.mrf.mxu0 }
0x2961   :  { %v1670_v26 = vrot.slane %v1666_v33, 4  ;;  %v1673_v1 = vrot.slane %v1666_v33, 6 }
0x2963   :  { %v1672_v34 = vadd.f32 %v1670_v26, %v3734_v39  ;;  %v1675_v35 = vadd.f32 %v1673_v1, %v3737_v9 }
0x2965   :  { %3147 = vtanh.f32 %v1672_v34 }
0x2966   :  { %3149 = vtanh.f32 %v1675_v35 }
0x296b   :  { %v3148_v36 = vpop.eup %3147 }
0x296c   :  { %v3150_v37 = vpop.eup %3149  ;;  %1684 = vrot.lane.b32.xlu2 %v3148_v36, %s3315_s0  ;;  %v1677_v38 = vmul.f32 0.5, %v3148_v36 }
0x296d   :  { %1707 = vrot.lane.b32.xlu1 %v3150_v37, %s3315_s0  ;;  %v1700_v43 = vmul.f32 0.5, %v3150_v37 }
0x296e   :  { %v1678_v40 = vadd.f32 0.5, %v1677_v38 }
0x296f   :  { %v1701_v44 = vadd.f32 0.5, %v1700_v43 }
0x2970   :  { %v1682_v49 = vmul.f32 %v1680_v22, %v1678_v40 }
0x2971   :  { %v1705_v58 = vmul.f32 %v1703_v56, %v1701_v44 }
0x29c6   :  { %v1685_v41 = vpop.permute.xlu2 %1684 }
0x29c7   :  { %v1687_v42 = vmul.f32 %v1685_v41, %v1678_v40 }
0x29c9   :  { %1689 = vrot.lane.b32.xlu1 %v1687_v42, %s3319_s24 }
0x29df   :  { %v1708_v46 = vpop.permute.xlu1 %1707 }
0x29e0   :  { %v1710_v48 = vmul.f32 %v1708_v46, %v1701_v44 }
0x29e2   :  { %1712 = vrot.lane.b32.xlu0 %v1710_v48, %s3319_s24 }
0x2a3b   :  { %v1690_v50 = vpop.permute.xlu1 %1689 }
0x2a3c   :  { %v1692_v53 = vadd.f32 %v1690_v50, %v1682_v49 }
0x2a3e   :  { %3151 = vtanh.f32 %v1692_v53  ;;  %v1765_v30 = vrot.slane %v1692_v53, 6 }
0x2a44   :  { %v3152_v55 = vpop.eup %3151 }
0x2a45   :  { %1695 = vrot.lane.b32.xlu0 %v3152_v55, %s3318_s23 }
0x2a54   :  { %v1713_v59 = vpop.permute.xlu0 %1712 }
0x2a55   :  { %v1715_v60 = vadd.f32 %v1713_v59, %v1705_v58 }
0x2a57   :  { %3153 = vtanh.f32 %v1715_v60  ;;  %v1788_v21 = vrot.slane %v1715_v60, 2 }
0x2a5d   :  { %v3154_v61 = vpop.eup %3153 }
0x2a5e   :  { %1718 = vrot.lane.b32.xlu2 %v3154_v61, %s3318_s23 }
0x2ab7   :  { %v1696_v62 = vpop.permute.xlu0 %1695 }
0x2ab8   :  { %v1719_v63 = vpop.permute.xlu2 %1718  ;;  %v1698_v51 = vmul.f32 %v1696_v62, %v1678_v40 }
0x2ab9   :  { %v3785_v0 = vmul.f32 %v1719_v63, %v1701_v44 }
0x2aba   :  { %v2151_v3 = vsel %vm735_vm3, %v2150_v54, %v1698_v51  ;;  %1723 = vrot.lane.b32.xlu1 %v1698_v51, %s3317_s22 }
0x2abb   :  { %v1727_v5 = vrot.slane %v3785_v0, 6 }
0x2abd   :  { %1728 = vrot.lane.b32.xlu2 %v1727_v5, %s3318_s23 }
0x2b17   :  { %v1729_v6 = vpop.permute.xlu2 %1728 }
0x2b2c   :  { %v1724_v47 = vpop.permute.xlu1 %1723 }
0x2b2d   :  { %v1731_v11 = vsel %vm136_vm1, %v1724_v47, %v1729_v6 }
0x2b2e   :  { %v1733_v12 = vrot.slane %v1731_v11, 4 }
0x2b30   :  { %2964 = vmatmul.msk.f32.vlgmr.msrb.gmra.mxu1 %vm65_vm0, %v1733_v12 }
0x2bad   :  { %v1753_v13 = vpop.f32.mrf.mxu1 }
0x2bae   :  { %v1757_v15 = vrot.slane %v1753_v13, 2  ;;  %v1760_v31 = vadd.f32 %v1753_v13, %v3737_v9 }
0x2bb0   :  { %v1759_v57 = vadd.f32 %v1757_v15, %v3734_v39  ;;  %3155 = vtanh.f32 %v1760_v31 }
0x2bb2   :  { %3157 = vtanh.f32 %v1759_v57 }
0x2bb6   :  { %v3156_v16 = vpop.eup %3155 }
0x2bb7   :  { %1792 = vrot.lane.b32.xlu0 %v3156_v16, %s3315_s0  ;;  %v1785_v4 = vmul.f32 0.5, %v3156_v16 }
0x2bb8   :  { %v3158_v8 = vpop.eup %3157 }
0x2bb9   :  { %1769 = vrot.lane.b32.xlu1 %v3158_v8, %s3315_s0  ;;  %v1762_v45 = vmul.f32 0.5, %v3158_v8  ;;  %v1786_v52 = vadd.f32 0.5, %v1785_v4 }
0x2bbb   :  { %v1763_v19 = vadd.f32 0.5, %v1762_v45  ;;  %v1790_v23 = vmul.f32 %v1788_v21, %v1786_v52 }
0x2bbd   :  { %v1767_v32 = vmul.f32 %v1765_v30, %v1763_v19 }
0x2c29   :  { %v1793_v17 = vpop.permute.xlu0 %1792 }
0x2c2a   :  { %v1795_v18 = vmul.f32 %v1793_v17, %v1786_v52 }
0x2c2b   :  { %v1770_v20 = vpop.permute.xlu1 %1769 }
0x2c2c   :  { %v1772_v10 = vmul.f32 %v1770_v20, %v1763_v19  ;;  %1797 = vrot.lane.b32.xlu2 %v1795_v18, %s3319_s24 }
0x2c2e   :  { %1774 = vrot.lane.b32.xlu0 %v1772_v10, %s3319_s24 }
0x2c86   :  { %v1798_v24 = vpop.permute.xlu2 %1797 }
0x2c87   :  { %v1800_v27 = vadd.f32 %v1798_v24, %v1790_v23 }
0x2c89   :  { %3159 = vtanh.f32 %v1800_v27  ;;  %v1873_v62 = vrot.slane %v1800_v27, 2 }
0x2c8f   :  { %v3160_v28 = vpop.eup %3159 }
0x2c90   :  { %1803 = vrot.lane.b32.xlu1 %v3160_v28, %s3318_s23 }
0x2ca0   :  { %v1775_v7 = vpop.permute.xlu0 %1774 }
0x2ca1   :  { %v1777_v2 = vadd.f32 %v1775_v7, %v1767_v32 }
0x2ca3   :  { %3161 = vtanh.f32 %v1777_v2  ;;  %v1850_v61 = vrot.slane %v1777_v2, 6 }
0x2ca9   :  { %v3162_v14 = vpop.eup %3161 }
0x2caa   :  { %1780 = vrot.lane.b32.xlu2 %v3162_v14, %s3318_s23 }
0x2d02   :  { %v1804_v33 = vpop.permute.xlu1 %1803 }
0x2d03   :  { %v3801_v26 = vmul.f32 %v1804_v33, %v1786_v52 }
0x2d04   :  { %v1781_v1 = vpop.permute.xlu2 %1780 }
0x2d05   :  { %v1812_v34 = vrot.slane %v3801_v26, 2  ;;  %v1783_v35 = vmul.f32 %v1781_v1, %v1763_v19 }
0x2d07   :  { %1813 = vrot.lane.b32.xlu1 %v1812_v34, %s3318_s23  ;;  %1808 = vrot.lane.b32.xlu0 %v1783_v35, %s3317_s22  ;;  %v3807_v36 = vsel %vm737_vm4, %v2151_v3, %v1783_v35 }
0x2d79   :  { %v1814_v37 = vpop.permute.xlu1 %1813  ;;  %v1809_v38 = vpop.permute.xlu0 %1808 }
0x2d7a   :  { %v1816_v40 = vsel %vm136_vm1, %v1809_v38, %v1814_v37 }
0x2d7b   :  { %v1818_v41 = vrot.slane %v1816_v40, 6 }
0x2d7d   :  { %2965 = vmatmul.msk.f32.vlgmr.msrb.gmra.mxu3 %vm65_vm0, %v1818_v41 }
0x2e00   :  { %v1838_v42 = vpop.f32.mrf.mxu3 }
0x2e01   :  { %v1841_v43 = vadd.f32 %v1838_v42, %v3737_v9  ;;  %v1843_v44 = vrot.slane %v1838_v42, 2 }
0x2e03   :  { %v1845_v46 = vadd.f32 %v1843_v44, %v3734_v39  ;;  %3163 = vtanh.f32 %v1841_v43 }
0x2e05   :  { %3165 = vtanh.f32 %v1845_v46 }
0x2e09   :  { %v3164_v48 = vpop.eup %3163 }
0x2e0a   :  { %1854 = vrot.lane.b32.xlu0 %v3164_v48, %s3315_s0  ;;  %v1847_v56 = vmul.f32 0.5, %v3164_v48 }
0x2e0b   :  { %v3166_v22 = vpop.eup %3165 }
0x2e0c   :  { %1877 = vrot.lane.b32.xlu2 %v3166_v22, %s3315_s0  ;;  %v1870_v49 = vmul.f32 0.5, %v3166_v22  ;;  %v1848_v58 = vadd.f32 0.5, %v1847_v56 }
0x2e0e   :  { %v1871_v50 = vadd.f32 0.5, %v1870_v49  ;;  %v1852_v63 = vmul.f32 %v1850_v61, %v1848_v58 }
0x2e10   :  { %v1875_v3 = vmul.f32 %v1873_v62, %v1871_v50 }
0x2e66   :  { %v1878_v53 = vpop.permute.xlu2 %1877 }
0x2e67   :  { %v1880_v55 = vmul.f32 %v1878_v53, %v1871_v50 }
0x2e69   :  { %1882 = vrot.lane.b32.xlu1 %v1880_v55, %s3319_s24 }
0x2e7c   :  { %v1855_v59 = vpop.permute.xlu0 %1854 }
0x2e7d   :  { %v1857_v60 = vmul.f32 %v1855_v59, %v1848_v58 }
0x2e7f   :  { %1859 = vrot.lane.b32.xlu2 %v1857_v60, %s3319_s24 }
0x2ed9   :  { %v1860_v51 = vpop.permute.xlu2 %1859 }
0x2eda   :  { %v1862_v54 = vadd.f32 %v1860_v51, %v1852_v63 }
0x2edb   :  { %v1883_v5 = vpop.permute.xlu1 %1882 }
0x2edc   :  { %3167 = vtanh.f32 %v1862_v54  ;;  %v1885_v6 = vadd.f32 %v1883_v5, %v1875_v3  ;;  %v1936_v2 = vrot.slane %v1862_v54, 6 }
0x2ede   :  { %3169 = vtanh.f32 %v1885_v6  ;;  %v1959_v35 = vrot.slane %v1885_v6, 2 }
0x2ee2   :  { %v3168_v47 = vpop.eup %3167 }
0x2ee3   :  { %1865 = vrot.lane.b32.xlu1 %v3168_v47, %s3318_s23 }
0x2ee4   :  { %v3170_v11 = vpop.eup %3169 }
0x2ee5   :  { %1888 = vrot.lane.b32.xlu0 %v3170_v11, %s3318_s23 }
0x2f55   :  { %v1866_v12 = vpop.permute.xlu1 %1865 }
0x2f56   :  { %v3819_v13 = vmul.f32 %v1866_v12, %v1848_v58 }
0x2f57   :  { %v1889_v15 = vpop.permute.xlu0 %1888 }
0x2f58   :  { %v3821_v31 = vmul.f32 %v1889_v15, %v1871_v50  ;;  %1893 = vrot.lane.b32.xlu2 %v3819_v13, %s3317_s22 }
0x2f5a   :  { %v1897_v57 = vrot.slane %v3821_v31, 6 }
0x2f5c   :  { %1898 = vrot.lane.b32.xlu0 %v1897_v57, %s3318_s23 }
0x2fb2   :  { %v1894_v16 = vpop.permute.xlu2 %1893 }
0x2fce   :  { %v1899_v8 = vpop.permute.xlu0 %1898 }
0x2fcf   :  { %v1901_v4 = vsel %vm136_vm1, %v1894_v16, %v1899_v8 }
0x2fd0   :  { %2966 = vmatmul.msk.f32.vlgmr.msrb.gmra.mxu0 %vm65_vm0, %v1901_v4 }
0x304d   :  { %v1922_v45 = vpop.f32.mrf.mxu0 }
0x304e   :  { %v1926_v52 = vrot.slane %v1922_v45, 6  ;;  %v1929_v17 = vrot.slane %v1922_v45, 4 }
0x3050   :  { %v1928_v18 = vadd.f32 %v1926_v52, %v3737_v9  ;;  %v1931_v19 = vadd.f32 %v1929_v17, %v3734_v39 }
0x3052   :  { %3171 = vtanh.f32 %v1928_v18 }
0x3053   :  { %3173 = vtanh.f32 %v1931_v19 }
0x3058   :  { %v3172_v20 = vpop.eup %3171 }
0x3059   :  { %v3174_v10 = vpop.eup %3173  ;;  %1940 = vrot.lane.b32.xlu2 %v3172_v20, %s3315_s0  ;;  %v1933_v21 = vmul.f32 0.5, %v3172_v20 }
0x305a   :  { %1963 = vrot.lane.b32.xlu1 %v3174_v10, %s3315_s0  ;;  %v1956_v28 = vmul.f32 0.5, %v3174_v10 }
0x305b   :  { %v1934_v23 = vadd.f32 0.5, %v1933_v21 }
0x305c   :  { %v1957_v30 = vadd.f32 0.5, %v1956_v28 }
0x305d   :  { %v1938_v14 = vmul.f32 %v1936_v2, %v1934_v23 }
0x305e   :  { %v1961_v37 = vmul.f32 %v1959_v35, %v1957_v30 }
0x30b3   :  { %v1941_v24 = vpop.permute.xlu2 %1940 }
0x30b4   :  { %v1943_v27 = vmul.f32 %v1941_v24, %v1934_v23 }
0x30b6   :  { %1945 = vrot.lane.b32.xlu1 %v1943_v27, %s3319_s24 }
0x30cc   :  { %v1964_v32 = vpop.permute.xlu1 %1963 }
0x30cd   :  { %v1966_v7 = vmul.f32 %v1964_v32, %v1957_v30 }
0x30cf   :  { %1968 = vrot.lane.b32.xlu0 %v1966_v7, %s3319_s24 }
0x3128   :  { %v1946_v33 = vpop.permute.xlu1 %1945 }
0x3129   :  { %v1948_v1 = vadd.f32 %v1946_v33, %v1938_v14 }
0x312b   :  { %3175 = vtanh.f32 %v1948_v1  ;;  %v2023_v4 = vrot.slane %v1948_v1, 6 }
0x3131   :  { %v3176_v34 = vpop.eup %3175 }
0x3132   :  { %1951 = vrot.lane.b32.xlu0 %v3176_v34, %s3318_s23 }
0x3141   :  { %v1969_v38 = vpop.permute.xlu0 %1968 }
0x3142   :  { %v1971_v40 = vadd.f32 %v1969_v38, %v1961_v37 }
0x3144   :  { %3177 = vtanh.f32 %v1971_v40  ;;  %v2046_v12 = vrot.slane %v1971_v40, 2 }
0x314a   :  { %v3178_v41 = vpop.eup %3177 }
0x314b   :  { %1974 = vrot.lane.b32.xlu2 %v3178_v41, %s3318_s23 }
0x31a4   :  { %v1952_v42 = vpop.permute.xlu0 %1951 }
0x31a5   :  { %v1975_v43 = vpop.permute.xlu2 %1974  ;;  %v1954_v44 = vmul.f32 %v1952_v42, %v1934_v23 }
0x31a6   :  { %v3837_v46 = vmul.f32 %v1975_v43, %v1957_v30 }
0x31a7   :  { %1979 = vrot.lane.b32.xlu1 %v1954_v44, %s3317_s22  ;;  %v2153_v21 = vsel %vm733_vm2, %v3819_v13, %v1954_v44 }
0x31a8   :  { %v1983_v48 = vrot.slane %v3837_v46, 2 }
0x31aa   :  { %1984 = vrot.lane.b32.xlu2 %v1983_v48, %s3318_s23 }
0x3204   :  { %v1985_v22 = vpop.permute.xlu2 %1984 }
0x3219   :  { %v1980_v49 = vpop.permute.xlu1 %1979 }
0x321a   :  { %v1987_v50 = vsel %vm136_vm1, %v1980_v49, %v1985_v22 }
0x321b   :  { %v1989_v53 = vrot.slane %v1987_v50, 2 }
0x321d   :  { %2967 = vmatmul.msk.f32.vlgmr.msra.gmra.mxu1 %vm65_vm0, %v1989_v53 }
0x329a   :  { %v2009_v55 = vpop.f32.mrf.mxu1 }
0x329b   :  { %v2013_v56 = vrot.slane %v2009_v55, 4  ;;  %v2016_v58 = vrot.slane %v2009_v55, 6 }
0x329d   :  { %v2015_v59 = vadd.f32 %v2013_v56, %v3737_v9  ;;  %v2018_v60 = vadd.f32 %v2016_v58, %v3734_v39 }
0x329f   :  { %3179 = vtanh.f32 %v2015_v59 }
0x32a0   :  { %3181 = vtanh.f32 %v2018_v60  ;;  %v2969_v60 = vld [vmem:[%s4075_s1 + $0x60] sm:$0xff] }
0x32a5   :  { %v3180_v61 = vpop.eup %3179 }
0x32a6   :  { %v3182_v62 = vpop.eup %3181  ;;  %2027 = vrot.lane.b32.xlu1 %v3180_v61, %s3315_s0  ;;  %v2020_v63 = vmul.f32 0.5, %v3180_v61 }
0x32a7   :  { %2050 = vrot.lane.b32.xlu0 %v3182_v62, %s3315_s0  ;;  %v2043_v51 = vmul.f32 0.5, %v3182_v62 }
0x32a8   :  { %v2021_v54 = vadd.f32 0.5, %v2020_v63 }
0x32a9   :  { %v2044_v3 = vadd.f32 0.5, %v2043_v51 }
0x32aa   :  { %v2025_v45 = vmul.f32 %v2023_v4, %v2021_v54 }
0x32ab   :  { %v2048_v15 = vmul.f32 %v2046_v12, %v2044_v3 }
0x3318   :  { %v2028_v5 = vpop.permute.xlu1 %2027 }
0x3319   :  { %v2051_v6 = vpop.permute.xlu0 %2050  ;;  %v2030_v47 = vmul.f32 %v2028_v5, %v2021_v54 }
0x331a   :  { %v2053_v11 = vmul.f32 %v2051_v6, %v2044_v3 }
0x331b   :  { %2032 = vrot.lane.b32.xlu0 %v2030_v47, %s3319_s24 }
0x331c   :  { %2055 = vrot.lane.b32.xlu2 %v2053_v11, %s3319_s24 }
0x3376   :  { %v2056_v57 = vpop.permute.xlu2 %2055 }
0x3377   :  { %v2058_v16 = vadd.f32 %v2056_v57, %v2048_v15 }
0x3379   :  { %3183 = vtanh.f32 %v2058_v16  ;;  %v2131_v22 = vrot.slane %v2058_v16, 2 }
0x337f   :  { %v3184_v8 = vpop.eup %3183 }
0x3380   :  { %2061 = vrot.lane.b32.xlu1 %v3184_v8, %s3318_s23 }
0x338d   :  { %v2033_v52 = vpop.permute.xlu0 %2032 }
0x338e   :  { %v2035_v17 = vadd.f32 %v2033_v52, %v2025_v45 }
0x3390   :  { %3185 = vtanh.f32 %v2035_v17  ;;  %v2108_v49 = vrot.slane %v2035_v17, 6 }
0x3396   :  { %v3186_v18 = vpop.eup %3185 }
0x3397   :  { %2038 = vrot.lane.b32.xlu2 %v3186_v18, %s3318_s23 }
0x33f1   :  { %v2039_v19 = vpop.permute.xlu2 %2038 }
0x33f2   :  { %v2062_v20 = vpop.permute.xlu1 %2061  ;;  %v2041_v10 = vmul.f32 %v2039_v19, %v2021_v54 }
0x33f3   :  { %v2064_v23 = vmul.f32 %v2062_v20, %v2044_v3 }
0x33f4   :  { %v3855_v24 = vsel %vm735_vm3, %v2153_v21, %v2041_v10  ;;  %2066 = vrot.lane.b32.xlu0 %v2041_v10, %s3317_s22 }
0x33f5   :  { %v2070_v27 = vrot.slane %v2064_v23, 6 }
0x33f7   :  { %2071 = vrot.lane.b32.xlu1 %v2070_v27, %s3318_s23 }
0x3466   :  { %v2067_v28 = vpop.permute.xlu0 %2066 }
0x3469   :  { %v2072_v30 = vpop.permute.xlu1 %2071 }
0x346a   :  { %v2074_v32 = vsel %vm136_vm1, %v2067_v28, %v2072_v30 }
0x346b   :  { %v2076_v7 = vrot.slane %v2074_v32, 4 }
0x346d   :  { %2968 = vmatmul.msk.f32.vlgmr.msrb.gmra.mxu2 %vm65_vm0, %v2076_v7 }
0x34f0   :  { %v2096_v2 = vpop.f32.mrf.mxu2 }
0x34f1   :  { %v2100_v14 = vrot.slane %v2096_v2, 2  ;;  %v2103_v13 = vadd.f32 %v2096_v2, %v3734_v39 }
0x34f3   :  { %v2102_v33 = vadd.f32 %v2100_v14, %v3737_v9  ;;  %3187 = vtanh.f32 %v2103_v13  ;;  %v2159_v9 = vsel %vm733_vm2, %v3801_v26, %v3785_v0  ;;  %v2970_v26 = vld [vmem:[%s4075_s1 + $0x68] sm:$0xff] }
0x34f4   :  { %v2160_v44 = vsel %vm735_vm3, %v2159_v9, %v3769_v29  ;;  %v2971_v29 = vld [vmem:[%s4075_s1 + $0x70] sm:$0xff] }
0x34f5   :  { %3189 = vtanh.f32 %v2102_v33  ;;  %v2161_v48 = vsel %vm737_vm4, %v2160_v44, %v3747_v25  ;;  %v2972_v25 = vld [vmem:[%s4075_s1 + $0x78] sm:$0xff] }
0x34f6   :  { %2208 = vmatpush.msra.mxu3 %v2972_v25 }
0x34f8   :  { %2209 = vmatpush.msra.mxu3 %v2971_v29 }
0x34f9   :  { %v3188_v1 = vpop.eup %3187 }
0x34fa   :  { %2135 = vrot.lane.b32.xlu2 %v3188_v1, %s3315_s0  ;;  %v2128_v35 = vmul.f32 0.5, %v3188_v1  ;;  %2210 = vmatpush.msra.mxu3 %v2970_v26  ;;  %v2223_v1 = vld [vmem:[#allocation2 + $0x78] sm:$0xff] }
0x34fb   :  { %v3190_v34 = vpop.eup %3189  ;;  %2277 = vmatpush.msra.mxu0 %v2223_v1  ;;  %2368 = vmatpush.msrb.mxu1 %v2223_v1 }
0x34fc   :  { %2112 = vrot.lane.b32.xlu0 %v3190_v34, %s3315_s0  ;;  %v2129_v37 = vadd.f32 0.5, %v2128_v35  ;;  %v2105_v41 = vmul.f32 0.5, %v3190_v34  ;;  %2211 = vmatpush.msra.mxu3 %v2969_v60  ;;  %v2222_v34 = vld [vmem:[#allocation2 + $0x70] sm:$0xff]  ;;  %v2221_v35 = vld [vmem:[#allocation2 + $0x68] sm:$0xff] }
0x34fd   :  { %2455 = vmatpush.msra.mxu2 %v2223_v1  ;;  %2278 = vmatpush.msra.mxu0 %v2222_v34 }
0x34fe   :  { %v2106_v42 = vadd.f32 0.5, %v2105_v41  ;;  %v2133_v50 = vmul.f32 %v2131_v22, %v2129_v37  ;;  %2798 = vmatpush.msrb.mxu3 %v2223_v1  ;;  %2369 = vmatpush.msrb.mxu1 %v2222_v34 }
0x34ff   :  { %2456 = vmatpush.msra.mxu2 %v2222_v34  ;;  %2279 = vmatpush.msra.mxu0 %v2221_v35 }
0x3500   :  { %v2110_v56 = vmul.f32 %v2108_v49, %v2106_v42  ;;  %2799 = vmatpush.msrb.mxu3 %v2222_v34  ;;  %2370 = vmatpush.msrb.mxu1 %v2221_v35 }
0x3501   :  { %2457 = vmatpush.msra.mxu2 %v2221_v35 }
0x3502   :  { %2800 = vmatpush.msrb.mxu3 %v2221_v35 }
0x3554   :  { %v2136_v38 = vpop.permute.xlu2 %2135 }
0x3555   :  { %v2138_v40 = vmul.f32 %v2136_v38, %v2129_v37 }
0x3557   :  { %2140 = vrot.lane.b32.xlu1 %v2138_v40, %s3319_s24 }
0x356e   :  { %v2113_v43 = vpop.permute.xlu0 %2112 }
0x356f   :  { %v2115_v39 = vmul.f32 %v2113_v43, %v2106_v42 }
0x3571   :  { %2117 = vrot.lane.b32.xlu2 %v2115_v39, %s3319_s24 }
0x3579   :  { %2164 = vrot.lane.b32.xlu2 %v3807_v36, %s3317_s22 }
0x3581   :  { %2174 = vrot.lane.b32.xlu2 %v2161_v48, %s3318_s23 }
0x35c9   :  { %v2141_v53 = vpop.permute.xlu1 %2140 }
0x35ca   :  { %v2143_v55 = vadd.f32 %v2141_v53, %v2133_v50 }
0x35cb   :  { %v2118_v58 = vpop.permute.xlu2 %2117 }
0x35cc   :  { %3191 = vtanh.f32 %v2143_v55  ;;  %v2120_v36 = vadd.f32 %v2118_v58, %v2110_v56 }
0x35ce   :  { %3193 = vtanh.f32 %v2120_v36 }
0x35d2   :  { %v3192_v59 = vpop.eup %3191 }
0x35d3   :  { %2146 = vrot.lane.b32.xlu0 %v3192_v59, %s3318_s23  ;;  %v2165_v47 = vpop.permute.xlu2 %2164 }
0x35d4   :  { %v3194_v0 = vpop.eup %3193 }
0x35d5   :  { %2123 = vrot.lane.b32.xlu1 %v3194_v0, %s3318_s23 }
0x35db   :  { %v2175_v57 = vpop.permute.xlu2 %2174 }
0x3645   :  { %v2147_v61 = vpop.permute.xlu0 %2146 }
0x3646   :  { %v2149_v62 = vmul.f32 %v2147_v61, %v2129_v37  ;;  %v2220_v37 = vld [vmem:[#allocation2 + $0x60] sm:$0xff] }
0x3647   :  { %v2124_v63 = vpop.permute.xlu1 %2123  ;;  %2280 = vmatpush.msra.mxu0 %v2220_v37  ;;  %2371 = vmatpush.msrb.mxu1 %v2220_v37 }
0x3648   :  { %v2156_v51 = vsel %vm733_vm2, %v2149_v62, %v2064_v23  ;;  %v2126_v54 = vmul.f32 %v2124_v63, %v2106_v42  ;;  %2458 = vmatpush.msra.mxu2 %v2220_v37  ;;  %2801 = vmatpush.msrb.mxu3 %v2220_v37 }
0x3649   :  { %v2157_v3 = vsel %vm735_vm3, %v2156_v51, %v3837_v46  ;;  %2540 = vmatpush.msrb.mxu0 %v2223_v1  ;;  %2624 = vmatpush.msra.mxu1 %v2223_v1 }
0x364a   :  { %v2158_v5 = vsel %vm737_vm4, %v2157_v3, %v3821_v31  ;;  %v2155_v6 = vsel %vm737_vm4, %v3855_v24, %v2126_v54  ;;  %v3001_v31 = vld [vmem:[%s4077_s3 + $0x3] ss:$0 sm:$0xff]  ;;  %2711 = vmatpush.msrb.mxu2 %v2223_v1 }
0x364b   :  { %2172 = vrot.lane.b32.xlu0 %v2158_v5, %s3318_s23  ;;  %2166 = vrot.lane.b32.xlu1 %v2155_v6, %s3317_s22 }
0x364c   :  { %2541 = vmatpush.msrb.mxu0 %v2222_v34  ;;  %2625 = vmatpush.msra.mxu1 %v2222_v34 }
0x364d   :  { %2712 = vmatpush.msrb.mxu2 %v2222_v34 }
0x364e   :  { %2542 = vmatpush.msrb.mxu0 %v2221_v35  ;;  %2626 = vmatpush.msra.mxu1 %v2221_v35 }
0x364f   :  { %2713 = vmatpush.msrb.mxu2 %v2221_v35 }
0x3650   :  { %2543 = vmatpush.msrb.mxu0 %v2220_v37  ;;  %2627 = vmatpush.msra.mxu1 %v2220_v37 }
0x3651   :  { %2714 = vmatpush.msrb.mxu2 %v2220_v37 }
0x36bd   :  { %v2173_v11 = vpop.permute.xlu0 %2172  ;;  %v2167_v15 = vpop.permute.xlu1 %2166 }
0x36be   :  { %v2178_v12 = vsel %vm136_vm1, %v2165_v47, %v2173_v11  ;;  %v2179_v46 = vsel %vm136_vm1, %v2167_v15, %v2175_v57 }
0x36bf   :  { %2974 = vmatmul.msk.f32.vlgmr.msra.gmra.mxu3 %vm65_vm0, %v2178_v12 }
0x36c7   :  { %2975 = vmatmul.msk.f32.gmra.mxu3 %vm65_vm0, %v2179_v46 }
0x3742   :  { %v2213_v16 = vpop.f32.mrf.mxu3 }
0x3743   :  { %v3907_v8 = vadd.f32 %v3001_v31, %v2213_v16 }
0x3745   :  { %3195 = vtanh.f32 %v3907_v8 }
0x374a   :  { %v2216_v4 = vpop.f32.mrf.mxu3 }
0x374b   :  { %v3196_v45 = vpop.eup %3195  ;;  %v3910_v52 = vadd.f32 %v3001_v31, %v2216_v4 }
0x374c   :  { %2228 = vrot.lane.b32.xlu1 %v3196_v45, %s3315_s0  ;;  %v2225_v18 = vmul.f32 0.5, %v3196_v45 }
0x374d   :  { %3197 = vtanh.f32 %v3910_v52 }
0x374e   :  { %v2226_v19 = vadd.f32 0.5, %v2225_v18 }
0x3753   :  { %v3198_v17 = vpop.eup %3197 }
0x3754   :  { %2242 = vrot.lane.b32.xlu0 %v3198_v17, %s3315_s0  ;;  %v2239_v21 = vmul.f32 0.5, %v3198_v17 }
0x3756   :  { %v2240_v23 = vadd.f32 0.5, %v2239_v21 }
0x37be   :  { %v2229_v20 = vpop.permute.xlu1 %2228 }
0x37bf   :  { %v3915_v10 = vmul.f32 %v2229_v20, %v2226_v19 }
0x37c1   :  { %3199 = vtanh.f32 %v3915_v10  ;;  %v2296_v49 = vrot.slane %v3915_v10, 6 }
0x37c6   :  { %v2243_v24 = vpop.permute.xlu0 %2242 }
0x37c7   :  { %v3200_v27 = vpop.eup %3199  ;;  %v2245_v28 = vmul.f32 %v2243_v24, %v2240_v23 }
0x37c8   :  { %2234 = vrot.lane.b32.xlu0 %v3200_v27, %s3316_s21 }
0x37c9   :  { %3201 = vtanh.f32 %v2245_v28  ;;  %v2321_v14 = vrot.slane %v2245_v28, 2 }
0x37cf   :  { %v3202_v30 = vpop.eup %3201 }
0x37d0   :  { %2248 = vrot.lane.b32.xlu2 %v3202_v30, %s3316_s21 }
0x382a   :  { %v2249_v32 = vpop.permute.xlu2 %2248 }
0x382b   :  { %v3920_v7 = vmul.f32 %v2249_v32, %v2240_v23 }
0x382d   :  { %v2257_v2 = vrot.slane %v3920_v7, 6 }
0x382f   :  { %2258 = vrot.lane.b32.xlu2 %v2257_v2, %s3318_s23 }
0x3837   :  { %2322 = vrot.lane.b32.xlu2 %v2321_v14, %s3319_s24 }
0x383a   :  { %v2235_v13 = vpop.permute.xlu0 %2234 }
0x383b   :  { %v3925_v33 = vmul.f32 %v2235_v13, %v2226_v19 }
0x383d   :  { %2253 = vrot.lane.b32.xlu1 %v3925_v33, %s3317_s22 }
0x3889   :  { %v2259_v38 = vpop.permute.xlu2 %2258 }
0x3891   :  { %v2323_v25 = vpop.permute.xlu2 %2322 }
0x38af   :  { %v2254_v40 = vpop.permute.xlu1 %2253 }
0x38b0   :  { %v2261_v41 = vsel %vm136_vm1, %v2254_v40, %v2259_v38 }
0x38b1   :  { %2976 = vmatmul.msk.f32.vlgmr.msra.gmra.mxu0 %vm65_vm0, %v2261_v41 }
0x392e   :  { %v2282_v42 = vpop.f32.mrf.mxu0 }
0x392f   :  { %v2286_v43 = vrot.slane %v2282_v42, 6  ;;  %v2289_v39 = vrot.slane %v2282_v42, 4 }
0x3931   :  { %v2288_v9 = vadd.f32 %v2286_v43, %v3907_v8  ;;  %v2291_v44 = vadd.f32 %v2289_v39, %v3910_v52 }
0x3933   :  { %3203 = vtanh.f32 %v2288_v9 }
0x3934   :  { %3205 = vtanh.f32 %v2291_v44 }
0x3939   :  { %v3204_v48 = vpop.eup %3203 }
0x393a   :  { %v3206_v22 = vpop.eup %3205  ;;  %2302 = vrot.lane.b32.xlu1 %v3204_v48, %s3315_s0  ;;  %v2293_v50 = vmul.f32 0.5, %v3204_v48 }
0x393b   :  { %2327 = vrot.lane.b32.xlu0 %v3206_v22, %s3315_s0  ;;  %v2318_v53 = vmul.f32 0.5, %v3206_v22 }
0x393c   :  { %v2294_v55 = vadd.f32 0.5, %v2293_v50 }
0x393d   :  { %v2319_v56 = vadd.f32 0.5, %v2318_v53 }
0x393f   :  { %v2325_v63 = vmul.f32 %v2323_v25, %v2319_v56 }
0x3943   :  { %2297 = vrot.lane.b32.xlu0 %v2296_v49, %s3319_s24 }
0x39ac   :  { %v2303_v58 = vpop.permute.xlu1 %2302 }
0x39ad   :  { %v2328_v36 = vpop.permute.xlu0 %2327  ;;  %v2305_v59 = vmul.f32 %v2303_v58, %v2294_v55 }
0x39ae   :  { %v2330_v0 = vmul.f32 %v2328_v36, %v2319_v56 }
0x39af   :  { %2307 = vrot.lane.b32.xlu2 %v2305_v59, %s3319_s24 }
0x39b0   :  { %2332 = vrot.lane.b32.xlu1 %v2330_v0, %s3319_s24 }
0x39b5   :  { %v2298_v29 = vpop.permute.xlu0 %2297 }
0x39b6   :  { %v2300_v26 = vmul.f32 %v2298_v29, %v2294_v55 }
0x3a09   :  { %v2308_v60 = vpop.permute.xlu2 %2307 }
0x3a0a   :  { %v2310_v61 = vadd.f32 %v2308_v60, %v2300_v26 }
0x3a0c   :  { %3207 = vtanh.f32 %v2310_v61  ;;  %v2387_v2 = vrot.slane %v2310_v61, 6 }
0x3a12   :  { %v3208_v62 = vpop.eup %3207 }
0x3a13   :  { %2313 = vrot.lane.b32.xlu1 %v3208_v62, %s3318_s23 }
0x3a22   :  { %v2333_v51 = vpop.permute.xlu1 %2332 }
0x3a23   :  { %v2335_v54 = vadd.f32 %v2333_v51, %v2325_v63 }
0x3a25   :  { %3209 = vtanh.f32 %v2335_v54  ;;  %v2410_v35 = vrot.slane %v2335_v54, 2 }
0x3a2b   :  { %v3210_v3 = vpop.eup %3209 }
0x3a2c   :  { %2338 = vrot.lane.b32.xlu0 %v3210_v3, %s3318_s23 }
0x3a85   :  { %v2314_v5 = vpop.permute.xlu1 %2313 }
0x3a86   :  { %v2316_v6 = vmul.f32 %v2314_v5, %v2294_v55 }
0x3a88   :  { %2343 = vrot.lane.b32.xlu2 %v2316_v6, %s3317_s22  ;;  %v2857_v9 = vsel %vm733_vm2, %v3925_v33, %v2316_v6 }
0x3a9e   :  { %v2339_v47 = vpop.permute.xlu0 %2338 }
0x3a9f   :  { %v3942_v11 = vmul.f32 %v2339_v47, %v2319_v56 }
0x3aa1   :  { %v2347_v12 = vrot.slane %v3942_v11, 2 }
0x3aa3   :  { %2348 = vrot.lane.b32.xlu0 %v2347_v12, %s3318_s23 }
0x3ae2   :  { %v2344_v15 = vpop.permute.xlu2 %2343 }
0x3b15   :  { %v2349_v57 = vpop.permute.xlu0 %2348 }
0x3b16   :  { %v2351_v46 = vsel %vm136_vm1, %v2344_v15, %v2349_v57 }
0x3b17   :  { %v2353_v31 = vrot.slane %v2351_v46, 2 }
0x3b19   :  { %2977 = vmatmul.msk.f32.vlgmr.msrb.gmra.mxu1 %vm65_vm0, %v2353_v31 }
0x3b96   :  { %v2373_v16 = vpop.f32.mrf.mxu1 }
0x3b97   :  { %v2377_v4 = vrot.slane %v2373_v16, 4  ;;  %v2380_v45 = vrot.slane %v2373_v16, 6 }
0x3b99   :  { %v2379_v17 = vadd.f32 %v2377_v4, %v3907_v8  ;;  %v2382_v18 = vadd.f32 %v2380_v45, %v3910_v52 }
0x3b9b   :  { %3211 = vtanh.f32 %v2379_v17 }
0x3b9c   :  { %3213 = vtanh.f32 %v2382_v18 }
0x3ba1   :  { %v3212_v19 = vpop.eup %3211 }
0x3ba2   :  { %v3214_v20 = vpop.eup %3213  ;;  %2391 = vrot.lane.b32.xlu2 %v3212_v19, %s3315_s0  ;;  %v2384_v10 = vmul.f32 0.5, %v3212_v19 }
0x3ba3   :  { %2414 = vrot.lane.b32.xlu1 %v3214_v20, %s3315_s0  ;;  %v2407_v27 = vmul.f32 0.5, %v3214_v20 }
0x3ba4   :  { %v2385_v21 = vadd.f32 0.5, %v2384_v10 }
0x3ba5   :  { %v2408_v28 = vadd.f32 0.5, %v2407_v27 }
0x3ba6   :  { %v2389_v14 = vmul.f32 %v2387_v2, %v2385_v21 }
0x3ba7   :  { %v2412_v37 = vmul.f32 %v2410_v35, %v2408_v28 }
0x3bfc   :  { %v2392_v23 = vpop.permute.xlu2 %2391 }
0x3bfd   :  { %v2394_v24 = vmul.f32 %v2392_v23, %v2385_v21 }
0x3bff   :  { %2396 = vrot.lane.b32.xlu1 %v2394_v24, %s3319_s24 }
0x3c15   :  { %v2415_v30 = vpop.permute.xlu1 %2414 }
0x3c16   :  { %v2417_v32 = vmul.f32 %v2415_v30, %v2408_v28 }
0x3c18   :  { %2419 = vrot.lane.b32.xlu0 %v2417_v32, %s3319_s24 }
0x3c71   :  { %v2397_v13 = vpop.permute.xlu1 %2396 }
0x3c72   :  { %v2399_v1 = vadd.f32 %v2397_v13, %v2389_v14 }
0x3c74   :  { %3215 = vtanh.f32 %v2399_v1  ;;  %v2472_v12 = vrot.slane %v2399_v1, 6 }
0x3c7a   :  { %v3216_v34 = vpop.eup %3215 }
0x3c7b   :  { %2402 = vrot.lane.b32.xlu0 %v3216_v34, %s3318_s23 }
0x3c8a   :  { %v2420_v38 = vpop.permute.xlu0 %2419 }
0x3c8b   :  { %v2422_v40 = vadd.f32 %v2420_v38, %v2412_v37 }
0x3c8d   :  { %3217 = vtanh.f32 %v2422_v40  ;;  %v2495_v54 = vrot.slane %v2422_v40, 2 }
0x3c93   :  { %v3218_v41 = vpop.eup %3217 }
0x3c94   :  { %2425 = vrot.lane.b32.xlu2 %v3218_v41, %s3318_s23 }
0x3ced   :  { %v2403_v42 = vpop.permute.xlu0 %2402 }
0x3cee   :  { %v2426_v43 = vpop.permute.xlu2 %2425  ;;  %v2405_v39 = vmul.f32 %v2403_v42, %v2385_v21 }
0x3cef   :  { %v3958_v44 = vmul.f32 %v2426_v43, %v2408_v28 }
0x3cf0   :  { %v2858_v48 = vsel %vm735_vm3, %v2857_v9, %v2405_v39  ;;  %2430 = vrot.lane.b32.xlu1 %v2405_v39, %s3317_s22 }
0x3cf1   :  { %v2434_v22 = vrot.slane %v3958_v44, 6 }
0x3cf3   :  { %2435 = vrot.lane.b32.xlu2 %v2434_v22, %s3318_s23 }
0x3d4d   :  { %v2436_v49 = vpop.permute.xlu2 %2435 }
0x3d62   :  { %v2431_v50 = vpop.permute.xlu1 %2430 }
0x3d63   :  { %v2438_v53 = vsel %vm136_vm1, %v2431_v50, %v2436_v49 }
0x3d64   :  { %v2440_v55 = vrot.slane %v2438_v53, 4 }
0x3d66   :  { %2978 = vmatmul.msk.f32.vlgmr.msra.gmra.mxu2 %vm65_vm0, %v2440_v55 }
0x3de9   :  { %v2460_v56 = vpop.f32.mrf.mxu2 }
0x3dea   :  { %v2464_v58 = vrot.slane %v2460_v56, 2  ;;  %v2467_v33 = vadd.f32 %v2460_v56, %v3910_v52 }
0x3dec   :  { %v2466_v36 = vadd.f32 %v2464_v58, %v3907_v8  ;;  %3219 = vtanh.f32 %v2467_v33 }
0x3dee   :  { %3221 = vtanh.f32 %v2466_v36 }
0x3df2   :  { %v3220_v59 = vpop.eup %3219 }
0x3df3   :  { %2499 = vrot.lane.b32.xlu0 %v3220_v59, %s3315_s0  ;;  %v2492_v25 = vmul.f32 0.5, %v3220_v59 }
0x3df4   :  { %v3222_v0 = vpop.eup %3221 }
0x3df5   :  { %2476 = vrot.lane.b32.xlu1 %v3222_v0, %s3315_s0  ;;  %v2469_v29 = vmul.f32 0.5, %v3222_v0  ;;  %v2493_v26 = vadd.f32 0.5, %v2492_v25 }
0x3df7   :  { %v2470_v62 = vadd.f32 0.5, %v2469_v29  ;;  %v2497_v3 = vmul.f32 %v2495_v54, %v2493_v26 }
0x3df9   :  { %v2474_v15 = vmul.f32 %v2472_v12, %v2470_v62 }
0x3e65   :  { %v2500_v60 = vpop.permute.xlu0 %2499 }
0x3e66   :  { %v2502_v61 = vmul.f32 %v2500_v60, %v2493_v26 }
0x3e67   :  { %v2477_v63 = vpop.permute.xlu1 %2476 }
0x3e68   :  { %v2479_v51 = vmul.f32 %v2477_v63, %v2470_v62  ;;  %2504 = vrot.lane.b32.xlu2 %v2502_v61, %s3319_s24 }
0x3e6a   :  { %2481 = vrot.lane.b32.xlu0 %v2479_v51, %s3319_s24 }
0x3ec2   :  { %v2505_v5 = vpop.permute.xlu2 %2504 }
0x3ec3   :  { %v2507_v6 = vadd.f32 %v2505_v5, %v2497_v3 }
0x3ec5   :  { %3223 = vtanh.f32 %v2507_v6  ;;  %v2580_v42 = vrot.slane %v2507_v6, 2 }
0x3ecb   :  { %v3224_v47 = vpop.eup %3223 }
0x3ecc   :  { %2510 = vrot.lane.b32.xlu1 %v3224_v47, %s3318_s23 }
0x3edc   :  { %v2482_v57 = vpop.permute.xlu0 %2481 }
0x3edd   :  { %v2484_v46 = vadd.f32 %v2482_v57, %v2474_v15 }
0x3edf   :  { %3225 = vtanh.f32 %v2484_v46  ;;  %v2557_v41 = vrot.slane %v2484_v46, 6 }
0x3ee5   :  { %v3226_v31 = vpop.eup %3225 }
0x3ee6   :  { %2487 = vrot.lane.b32.xlu2 %v3226_v31, %s3318_s23 }
0x3f3e   :  { %v2511_v16 = vpop.permute.xlu1 %2510 }
0x3f3f   :  { %v3974_v4 = vmul.f32 %v2511_v16, %v2493_v26 }
0x3f40   :  { %v2488_v45 = vpop.permute.xlu2 %2487 }
0x3f41   :  { %v2519_v17 = vrot.slane %v3974_v4, 2  ;;  %v2490_v18 = vmul.f32 %v2488_v45, %v2470_v62 }
0x3f43   :  { %2520 = vrot.lane.b32.xlu1 %v2519_v17, %s3318_s23  ;;  %2515 = vrot.lane.b32.xlu0 %v2490_v18, %s3317_s22  ;;  %v3980_v19 = vsel %vm737_vm4, %v2858_v48, %v2490_v18 }
0x3fb5   :  { %v2521_v20 = vpop.permute.xlu1 %2520  ;;  %v2516_v10 = vpop.permute.xlu0 %2515 }
0x3fb6   :  { %v2523_v21 = vsel %vm136_vm1, %v2516_v10, %v2521_v20 }
0x3fb7   :  { %v2525_v23 = vrot.slane %v2523_v21, 6 }
0x3fb9   :  { %2979 = vmatmul.msk.f32.vlgmr.msrb.gmra.mxu0 %vm65_vm0, %v2525_v23 }
0x4036   :  { %v2545_v24 = vpop.f32.mrf.mxu0 }
0x4037   :  { %v2548_v27 = vadd.f32 %v2545_v24, %v3910_v52  ;;  %v2550_v28 = vrot.slane %v2545_v24, 2 }
0x4039   :  { %v2552_v30 = vadd.f32 %v2550_v28, %v3907_v8  ;;  %3227 = vtanh.f32 %v2548_v27 }
0x403b   :  { %3229 = vtanh.f32 %v2552_v30 }
0x403f   :  { %v3228_v32 = vpop.eup %3227 }
0x4040   :  { %2561 = vrot.lane.b32.xlu0 %v3228_v32, %s3315_s0  ;;  %v2554_v35 = vmul.f32 0.5, %v3228_v32 }
0x4041   :  { %v3230_v2 = vpop.eup %3229 }
0x4042   :  { %2584 = vrot.lane.b32.xlu2 %v3230_v2, %s3315_s0  ;;  %v2577_v14 = vmul.f32 0.5, %v3230_v2  ;;  %v2555_v37 = vadd.f32 0.5, %v2554_v35 }
0x4044   :  { %v2578_v13 = vadd.f32 0.5, %v2577_v14  ;;  %v2559_v43 = vmul.f32 %v2557_v41, %v2555_v37 }
0x4046   :  { %v2582_v48 = vmul.f32 %v2580_v42, %v2578_v13 }
0x409c   :  { %v2585_v1 = vpop.permute.xlu2 %2584 }
0x409d   :  { %v2587_v34 = vmul.f32 %v2585_v1, %v2578_v13 }
0x409f   :  { %2589 = vrot.lane.b32.xlu1 %v2587_v34, %s3319_s24 }
0x40b2   :  { %v2562_v38 = vpop.permute.xlu0 %2561 }
0x40b3   :  { %v2564_v40 = vmul.f32 %v2562_v38, %v2555_v37 }
0x40b5   :  { %2566 = vrot.lane.b32.xlu2 %v2564_v40, %s3319_s24 }
0x410f   :  { %v2567_v39 = vpop.permute.xlu2 %2566 }
0x4110   :  { %v2569_v9 = vadd.f32 %v2567_v39, %v2559_v43 }
0x4111   :  { %v2590_v22 = vpop.permute.xlu1 %2589 }
0x4112   :  { %3231 = vtanh.f32 %v2569_v9  ;;  %v2592_v49 = vadd.f32 %v2590_v22, %v2582_v48  ;;  %v2643_v46 = vrot.slane %v2569_v9, 6 }
0x4114   :  { %3233 = vtanh.f32 %v2592_v49  ;;  %v2666_v18 = vrot.slane %v2592_v49, 2 }
0x4118   :  { %v3232_v50 = vpop.eup %3231 }
0x4119   :  { %2572 = vrot.lane.b32.xlu1 %v3232_v50, %s3318_s23 }
0x411a   :  { %v3234_v53 = vpop.eup %3233 }
0x411b   :  { %2595 = vrot.lane.b32.xlu0 %v3234_v53, %s3318_s23 }
0x418b   :  { %v2573_v55 = vpop.permute.xlu1 %2572 }
0x418c   :  { %v3992_v56 = vmul.f32 %v2573_v55, %v2555_v37 }
0x418d   :  { %v2596_v58 = vpop.permute.xlu0 %2595 }
0x418e   :  { %v3994_v33 = vmul.f32 %v2596_v58, %v2578_v13  ;;  %2600 = vrot.lane.b32.xlu2 %v3992_v56, %s3317_s22 }
0x4190   :  { %v2604_v36 = vrot.slane %v3994_v33, 6 }
0x4192   :  { %2605 = vrot.lane.b32.xlu0 %v2604_v36, %s3318_s23 }
0x41e8   :  { %v2601_v59 = vpop.permute.xlu2 %2600 }
0x4204   :  { %v2606_v0 = vpop.permute.xlu0 %2605 }
0x4205   :  { %v2608_v25 = vsel %vm136_vm1, %v2601_v59, %v2606_v0 }
0x4206   :  { %2980 = vmatmul.msk.f32.vlgmr.msra.gmra.mxu1 %vm65_vm0, %v2608_v25 }
0x4283   :  { %v2629_v29 = vpop.f32.mrf.mxu1 }
0x4284   :  { %v2633_v26 = vrot.slane %v2629_v29, 6  ;;  %v2636_v60 = vrot.slane %v2629_v29, 4 }
0x4286   :  { %v2635_v61 = vadd.f32 %v2633_v26, %v3910_v52  ;;  %v2638_v62 = vadd.f32 %v2636_v60, %v3907_v8 }
0x4288   :  { %3235 = vtanh.f32 %v2635_v61 }
0x4289   :  { %3237 = vtanh.f32 %v2638_v62 }
0x428e   :  { %v3236_v63 = vpop.eup %3235 }
0x428f   :  { %v3238_v51 = vpop.eup %3237  ;;  %2647 = vrot.lane.b32.xlu2 %v3236_v63, %s3315_s0  ;;  %v2640_v54 = vmul.f32 0.5, %v3236_v63 }
0x4290   :  { %2670 = vrot.lane.b32.xlu1 %v3238_v51, %s3315_s0  ;;  %v2663_v47 = vmul.f32 0.5, %v3238_v51 }
0x4291   :  { %v2641_v3 = vadd.f32 0.5, %v2640_v54 }
0x4292   :  { %v2664_v12 = vadd.f32 0.5, %v2663_v47 }
0x4293   :  { %v2645_v31 = vmul.f32 %v2643_v46, %v2641_v3 }
0x4294   :  { %v2668_v20 = vmul.f32 %v2666_v18, %v2664_v12 }
0x42e9   :  { %v2648_v5 = vpop.permute.xlu2 %2647 }
0x42ea   :  { %v2650_v6 = vmul.f32 %v2648_v5, %v2641_v3 }
0x42ec   :  { %2652 = vrot.lane.b32.xlu1 %v2650_v6, %s3319_s24 }
0x4302   :  { %v2671_v15 = vpop.permute.xlu1 %2670 }
0x4303   :  { %v2673_v57 = vmul.f32 %v2671_v15, %v2664_v12 }
0x4305   :  { %2675 = vrot.lane.b32.xlu0 %v2673_v57, %s3319_s24 }
0x435e   :  { %v2653_v16 = vpop.permute.xlu1 %2652 }
0x435f   :  { %v2655_v45 = vadd.f32 %v2653_v16, %v2645_v31 }
0x4361   :  { %3239 = vtanh.f32 %v2655_v45  ;;  %v2730_v25 = vrot.slane %v2655_v45, 6 }
0x4367   :  { %v3240_v17 = vpop.eup %3239 }
0x4368   :  { %2658 = vrot.lane.b32.xlu0 %v3240_v17, %s3318_s23 }
0x4377   :  { %v2676_v10 = vpop.permute.xlu0 %2675 }
0x4378   :  { %v2678_v21 = vadd.f32 %v2676_v10, %v2668_v20 }
0x437a   :  { %3241 = vtanh.f32 %v2678_v21  ;;  %v2753_v55 = vrot.slane %v2678_v21, 2 }
0x4380   :  { %v3242_v23 = vpop.eup %3241 }
0x4381   :  { %2681 = vrot.lane.b32.xlu2 %v3242_v23, %s3318_s23 }
0x43da   :  { %v2659_v24 = vpop.permute.xlu0 %2658 }
0x43db   :  { %v2682_v27 = vpop.permute.xlu2 %2681  ;;  %v2661_v28 = vmul.f32 %v2659_v24, %v2641_v3 }
0x43dc   :  { %v4010_v30 = vmul.f32 %v2682_v27, %v2664_v12 }
0x43dd   :  { %2686 = vrot.lane.b32.xlu1 %v2661_v28, %s3317_s22  ;;  %v2860_v54 = vsel %vm733_vm2, %v3992_v56, %v2661_v28 }
0x43de   :  { %v2690_v32 = vrot.slane %v4010_v30, 2 }
0x43e0   :  { %2691 = vrot.lane.b32.xlu2 %v2690_v32, %s3318_s23 }
0x443a   :  { %v2692_v2 = vpop.permute.xlu2 %2691 }
0x444f   :  { %v2687_v14 = vpop.permute.xlu1 %2686 }
0x4450   :  { %v2694_v13 = vsel %vm136_vm1, %v2687_v14, %v2692_v2 }
0x4451   :  { %v2696_v1 = vrot.slane %v2694_v13, 2 }
0x4453   :  { %2981 = vmatmul.msk.f32.vlgmr.msrb.gmra.mxu2 %vm65_vm0, %v2696_v1 }
0x44d6   :  { %v2716_v34 = vpop.f32.mrf.mxu2 }
0x44d7   :  { %v2720_v35 = vrot.slane %v2716_v34, 4  ;;  %v2723_v37 = vrot.slane %v2716_v34, 6 }
0x44d9   :  { %v2722_v38 = vadd.f32 %v2720_v35, %v3910_v52  ;;  %v2725_v40 = vadd.f32 %v2723_v37, %v3907_v8 }
0x44db   :  { %3243 = vtanh.f32 %v2722_v38 }
0x44dc   :  { %3245 = vtanh.f32 %v2725_v40  ;;  %v2887_v40 = vld [vmem:[#allocation4] sm:$0xff] }
0x44e1   :  { %v3244_v41 = vpop.eup %3243 }
0x44e2   :  { %v3246_v42 = vpop.eup %3245  ;;  %2734 = vrot.lane.b32.xlu1 %v3244_v41, %s3315_s0  ;;  %v2727_v43 = vmul.f32 0.5, %v3244_v41 }
0x44e3   :  { %2757 = vrot.lane.b32.xlu0 %v3246_v42, %s3315_s0  ;;  %v2750_v39 = vmul.f32 0.5, %v3246_v42 }
0x44e4   :  { %v2728_v9 = vadd.f32 0.5, %v2727_v43 }
0x44e5   :  { %v2751_v48 = vadd.f32 0.5, %v2750_v39 }
0x44e6   :  { %v2732_v29 = vmul.f32 %v2730_v25, %v2728_v9 }
0x44e7   :  { %v2755_v58 = vmul.f32 %v2753_v55, %v2751_v48 }
0x4554   :  { %v2735_v22 = vpop.permute.xlu1 %2734 }
0x4555   :  { %v2758_v49 = vpop.permute.xlu0 %2757  ;;  %v2737_v50 = vmul.f32 %v2735_v22, %v2728_v9 }
0x4556   :  { %v2760_v53 = vmul.f32 %v2758_v49, %v2751_v48 }
0x4557   :  { %2739 = vrot.lane.b32.xlu0 %v2737_v50, %s3319_s24 }
0x4558   :  { %2762 = vrot.lane.b32.xlu2 %v2760_v53, %s3319_s24 }
0x45b2   :  { %v2763_v36 = vpop.permute.xlu2 %2762 }
0x45b3   :  { %v2765_v59 = vadd.f32 %v2763_v36, %v2755_v58 }
0x45b5   :  { %3247 = vtanh.f32 %v2765_v59  ;;  %v2838_v2 = vrot.slane %v2765_v59, 2 }
0x45bb   :  { %v3248_v0 = vpop.eup %3247 }
0x45bc   :  { %2768 = vrot.lane.b32.xlu1 %v3248_v0, %s3318_s23 }
0x45c9   :  { %v2740_v26 = vpop.permute.xlu0 %2739 }
0x45ca   :  { %v2742_v60 = vadd.f32 %v2740_v26, %v2732_v29 }
0x45cc   :  { %3249 = vtanh.f32 %v2742_v60  ;;  %v2815_v14 = vrot.slane %v2742_v60, 6 }
0x45d2   :  { %v3250_v61 = vpop.eup %3249 }
0x45d3   :  { %2745 = vrot.lane.b32.xlu2 %v3250_v61, %s3318_s23 }
0x462d   :  { %v2746_v62 = vpop.permute.xlu2 %2745 }
0x462e   :  { %v2769_v63 = vpop.permute.xlu1 %2768  ;;  %v2748_v51 = vmul.f32 %v2746_v62, %v2728_v9 }
0x462f   :  { %v2771_v3 = vmul.f32 %v2769_v63, %v2751_v48 }
0x4630   :  { %v4028_v5 = vsel %vm735_vm3, %v2860_v54, %v2748_v51  ;;  %2773 = vrot.lane.b32.xlu0 %v2748_v51, %s3317_s22 }
0x4631   :  { %v2777_v6 = vrot.slane %v2771_v3, 6 }
0x4633   :  { %2778 = vrot.lane.b32.xlu1 %v2777_v6, %s3318_s23 }
0x46a2   :  { %v2774_v47 = vpop.permute.xlu0 %2773 }
0x46a5   :  { %v2779_v12 = vpop.permute.xlu1 %2778 }
0x46a6   :  { %v2781_v15 = vsel %vm136_vm1, %v2774_v47, %v2779_v12 }
0x46a7   :  { %v2783_v57 = vrot.slane %v2781_v15, 4 }
0x46a9   :  { %2982 = vmatmul.msk.f32.vlgmr.msrb.gmra.mxu3 %vm65_vm0, %v2783_v57 }
0x472c   :  { %v2803_v46 = vpop.f32.mrf.mxu3 }
0x472d   :  { %v2807_v31 = vrot.slane %v2803_v46, 2  ;;  %v2810_v56 = vadd.f32 %v2803_v46, %v3907_v8 }
0x472f   :  { %v2809_v16 = vadd.f32 %v2807_v31, %v3910_v52  ;;  %3251 = vtanh.f32 %v2810_v56  ;;  %v2866_v52 = vsel %vm733_vm2, %v3974_v4, %v3958_v44  ;;  %v2888_v4 = vld [vmem:[#allocation4 + $0x8] sm:$0xff] }
0x4730   :  { %v2867_v28 = vsel %vm735_vm3, %v2866_v52, %v3942_v11  ;;  %v2890_v11 = vld [vmem:[#allocation4 + $0x18] sm:$0xff] }
0x4731   :  { %3253 = vtanh.f32 %v2809_v16  ;;  %v2868_v32 = vsel %vm737_vm4, %v2867_v28, %v3920_v7  ;;  %v2889_v7 = vld [vmem:[#allocation4 + $0x10] sm:$0xff]  ;;  %2913 = vmatpush.msra.mxu0 %v2890_v11 }
0x4733   :  { %2914 = vmatpush.msra.mxu0 %v2889_v7 }
0x4735   :  { %v3252_v45 = vpop.eup %3251  ;;  %2915 = vmatpush.msra.mxu0 %v2888_v4 }
0x4736   :  { %2842 = vrot.lane.b32.xlu2 %v3252_v45, %s3315_s0  ;;  %v2835_v18 = vmul.f32 0.5, %v3252_v45 }
0x4737   :  { %v3254_v17 = vpop.eup %3253  ;;  %2916 = vmatpush.msra.mxu0 %v2887_v40 }
0x4738   :  { %2819 = vrot.lane.b32.xlu0 %v3254_v17, %s3315_s0  ;;  %v2836_v20 = vadd.f32 0.5, %v2835_v18  ;;  %v2812_v23 = vmul.f32 0.5, %v3254_v17 }
0x473a   :  { %v2813_v24 = vadd.f32 0.5, %v2812_v23  ;;  %v2840_v13 = vmul.f32 %v2838_v2, %v2836_v20 }
0x473c   :  { %v2817_v35 = vmul.f32 %v2815_v14, %v2813_v24 }
0x4790   :  { %v2843_v10 = vpop.permute.xlu2 %2842 }
0x4791   :  { %v2845_v21 = vmul.f32 %v2843_v10, %v2836_v20 }
0x4793   :  { %2847 = vrot.lane.b32.xlu1 %v2845_v21, %s3319_s24 }
0x47aa   :  { %v2820_v27 = vpop.permute.xlu0 %2819 }
0x47ab   :  { %v2822_v8 = vmul.f32 %v2820_v27, %v2813_v24 }
0x47ad   :  { %2824 = vrot.lane.b32.xlu2 %v2822_v8, %s3319_s24 }
0x47b5   :  { %2871 = vrot.lane.b32.xlu2 %v3980_v19, %s3317_s22 }
0x47bd   :  { %2881 = vrot.lane.b32.xlu2 %v2868_v32, %s3318_s23 }
0x4805   :  { %v2848_v1 = vpop.permute.xlu1 %2847 }
0x4806   :  { %v2850_v34 = vadd.f32 %v2848_v1, %v2840_v13 }
0x4807   :  { %v2825_v37 = vpop.permute.xlu2 %2824 }
0x4808   :  { %3255 = vtanh.f32 %v2850_v34  ;;  %v2827_v19 = vadd.f32 %v2825_v37, %v2817_v35 }
0x480a   :  { %3257 = vtanh.f32 %v2827_v19 }
0x480e   :  { %v3256_v38 = vpop.eup %3255 }
0x480f   :  { %2853 = vrot.lane.b32.xlu0 %v3256_v38, %s3318_s23  ;;  %v2872_v50 = vpop.permute.xlu2 %2871 }
0x4810   :  { %v3258_v44 = vpop.eup %3257 }
0x4811   :  { %2830 = vrot.lane.b32.xlu1 %v3258_v44, %s3318_s23 }
0x4817   :  { %v2882_v36 = vpop.permute.xlu2 %2881 }
0x4881   :  { %v2854_v41 = vpop.permute.xlu0 %2853 }
0x4882   :  { %v2856_v42 = vmul.f32 %v2854_v41, %v2836_v20 }
0x4883   :  { %v2831_v43 = vpop.permute.xlu1 %2830 }
0x4884   :  { %v2863_v39 = vsel %vm733_vm2, %v2856_v42, %v2771_v3  ;;  %v2833_v9 = vmul.f32 %v2831_v43, %v2813_v24 }
0x4885   :  { %v2864_v48 = vsel %vm735_vm3, %v2863_v39, %v4010_v30 }
0x4886   :  { %v2865_v22 = vsel %vm737_vm4, %v2864_v48, %v3994_v33  ;;  %v2862_v49 = vsel %vm737_vm4, %v4028_v5, %v2833_v9  ;;  %v3002_v33 = vld [vmem:[%s4079_s5] ss:$0 sm:$0xff] }
0x4887   :  { %2879 = vrot.lane.b32.xlu0 %v2865_v22, %s3318_s23  ;;  %2873 = vrot.lane.b32.xlu1 %v2862_v49, %s3317_s22 }
0x48f9   :  { %v2880_v53 = vpop.permute.xlu0 %2879  ;;  %v2874_v58 = vpop.permute.xlu1 %2873 }
0x48fa   :  { %v2885_v55 = vsel %vm136_vm1, %v2872_v50, %v2880_v53  ;;  %v2886_v30 = vsel %vm136_vm1, %v2874_v58, %v2882_v36 }
0x48fb   :  { %2983 = vmatmul.msk.f32.vlgmr.msra.gmra.mxu0 %vm65_vm0, %v2885_v55 }
0x4903   :  { %2984 = vmatmul.msk.f32.gmra.mxu0 %vm65_vm0, %v2886_v30 }
0x4978   :  { %v2918_v59 = vpop.f32.mrf.mxu0 }
0x4979   :  { %v2919_v0 = vadd.f32 %v3002_v33, %v2918_v59 }
0x497b   :  { %2924 = vst [vmem:[%s4080_s6] sm:$0xff] %v2919_v0 }
0x4980   :  { %v2921_v25 = vpop.f32.mrf.mxu0 }
0x4981   :  { %v2922_v29 = vadd.f32 %v3002_v33, %v2921_v25 }
0x4983   :  { %2925 = vst [vmem:[%s4080_s6 + $0x8] sm:$0xff] %v2922_v29 }
0x4984   :  { %2930 = vsyncpa [#allocation3], 1 }
0x4985   :  { %2931 = vsyncpa [#allocation5], 1 }

</bundles_post_ra>
